<compile_context>
chip_gen: v5e
topology: v5e:2x2
jax: 0.10.0
libtpu: 0.0.40
codegen_flags: <defaults>
</compile_context>

<pallas_src>
import jax
import jax.numpy as jnp
from jax.experimental import pallas as pl
from jax.experimental.pallas import tpu as pltpu

K_IN = 28 * 28          # 784 (full last dim of x -> legal BlockSpec width)
HID = 512
N_OUT = 10
N_PAD = 128             # lane-dense logits / output tile
NEG_INF = -1e30


def _cdiv(a, b):
    return -(-a // b)


def _round_up(n, m):
    return _cdiv(n, m) * m


def mnist_mlp_kernel(x_ref, w1_ref, b1_ref, w2_ref, b2_ref, w3_ref, b3_ref,
                     out_ref):
    # x_ref: (TB, 784) f32 ; weights bf16 ; biases f32 ; out (TB, 128) f32.
    # Cast activations to bf16 in-kernel (avoids a wrapper-side HBM pass).
    x = x_ref[...].astype(jnp.bfloat16)

    # fc1 + ReLU  (bf16 GEMM, f32 accumulate / bias / ReLU)
    h1 = jnp.dot(x, w1_ref[...], preferred_element_type=jnp.float32)
    h1 = jnp.maximum(h1 + b1_ref[...], 0.0).astype(jnp.bfloat16)

    # fc2 + ReLU
    h2 = jnp.dot(h1, w2_ref[...], preferred_element_type=jnp.float32)
    h2 = jnp.maximum(h2 + b2_ref[...], 0.0).astype(jnp.bfloat16)

    # fc3 -> (TB, 128) logits.  w3 pad columns are zero and b3 pad lanes are
    # -1e30, so the pad lanes are already masked by the bias add alone.
    logits = jnp.dot(h2, w3_ref[...], preferred_element_type=jnp.float32)
    logits = logits + b3_ref[...]

    # Softmax over lanes (pad lanes contribute exp(-huge) == 0).
    m = jnp.max(logits, axis=1, keepdims=True)
    e = jnp.exp(logits - m)
    denom = jnp.sum(e, axis=1, keepdims=True)
    out_ref[...] = e * pl.reciprocal(denom, approx=True)


def _pick_batch_tile(batch, block_batch):
    """Tile that (a) minimizes last-tile padding, (b) gives >=2 grid steps
    when the batch allows it (keeps both v7x TensorCores busy), (c) is a
    multiple of 16 for bf16 sublane packing."""
    num_steps = _cdiv(batch, block_batch)
    if num_steps == 1 and batch > 16:
        num_steps = 2
    return _round_up(_cdiv(batch, num_steps), 16)


def mnist_net_forward(x_nchw, params, *, block_batch=1024):
    """x_nchw: (B, 1, 28, 28) float32.  Returns (B, 10) softmax probabilities."""
    w1, b1, w2, b2, w3, b3 = params
    B = x_nchw.shape[0]

    # Glue: x.view(-1, 784).  Free reshape; no dtype/feature-dim padding pass.
    x = x_nchw.reshape(B, K_IN).astype(jnp.float32)

    tb = _pick_batch_tile(B, block_batch)
    b_pad = _round_up(B, tb)
    if b_pad != B:
        x = jnp.pad(x, ((0, b_pad - B), (0, 0)))

    # Weight prep (cheap, parameter-sized only; zero padding is exact).
    w1_p = w1.astype(jnp.bfloat16)                                   # (784, 512)
    w2_p = w2.astype(jnp.bfloat16)                                   # (512, 512)
    w3_p = jnp.pad(w3, ((0, 0), (0, N_PAD - N_OUT))).astype(jnp.bfloat16)
    b1_p = b1.astype(jnp.float32)
    b2_p = b2.astype(jnp.float32)
    # Bake the lane mask into b3: pad lanes get -1e30 (w3 pad cols are zero).
    b3_p = jnp.full((1, N_PAD), NEG_INF, jnp.float32)
    b3_p = b3_p.at[:, :N_OUT].set(b3.reshape(1, N_OUT).astype(jnp.float32))

    const2 = lambda i: (0, 0)   # weights/biases: same block every grid step

    out = pl.pallas_call(
        mnist_mlp_kernel,
        out_shape=jax.ShapeDtypeStruct((b_pad, N_PAD), jnp.float32),
        grid=(b_pad // tb,),
        in_specs=[
            pl.BlockSpec((tb, K_IN), lambda i: (i, 0)),    # x tile (pipelined)
            pl.BlockSpec((K_IN, HID), const2),             # w1 (resident)
            pl.BlockSpec((1, HID), const2),                # b1
            pl.BlockSpec((HID, HID), const2),              # w2
            pl.BlockSpec((1, HID), const2),                # b2
            pl.BlockSpec((HID, N_PAD), const2),            # w3
            pl.BlockSpec((1, N_PAD), const2),              # b3 (mask baked in)
        ],
        out_specs=pl.BlockSpec((tb, N_PAD), lambda i: (i, 0)),
        compiler_params=pltpu.CompilerParams(
            dimension_semantics=("parallel",),
            vmem_limit_bytes=32 * 1024 * 1024),
    )(x, w1_p, b1_p, w2_p, b2_p, w3_p, b3_p)

    return out[:B, :N_OUT]


def init_params(key):
    """Deterministic init matching nn.Linear shapes.

    PyTorch stores weight as (out, in); we keep the transposed (in, out) so the
    kernel computes x @ W.  Biases are (1, out) 2-D tiles.
    """
    def linear(key, fan_in, fan_out):
        kw, kb = jax.random.split(key)
        bound = 1.0 / jnp.sqrt(fan_in)
        w = jax.random.uniform(kw, (fan_in, fan_out), jnp.float32, -bound, bound)
        b = jax.random.uniform(kb, (1, fan_out), jnp.float32, -bound, bound)
        return w, b

    k1, k2, k3 = jax.random.split(key, 3)
    w1, b1 = linear(k1, K_IN, HID)
    w2, b2 = linear(k2, HID, HID)
    w3, b3 = linear(k3, HID, N_OUT)
    return (w1, b1, w2, b2, w3, b3)


def mnist_ref(x_nchw, params):
    """Pure-JAX reference with the same bf16 GEMM numerics (for sanity check)."""
    w1, b1, w2, b2, w3, b3 = params
    x = x_nchw.reshape(x_nchw.shape[0], K_IN).astype(jnp.bfloat16)
    h1 = jnp.maximum(
        jnp.dot(x, w1.astype(jnp.bfloat16), preferred_element_type=jnp.float32)
        + b1, 0.0).astype(jnp.bfloat16)
    h2 = jnp.maximum(
        jnp.dot(h1, w2.astype(jnp.bfloat16), preferred_element_type=jnp.float32)
        + b2, 0.0).astype(jnp.bfloat16)
    logits = jnp.dot(h2, w3.astype(jnp.bfloat16),
                     preferred_element_type=jnp.float32) + b3
    return jax.nn.softmax(logits, axis=1)


if __name__ == "__main__":
    key = jax.random.PRNGKey(0)
    k_params, k_x = jax.random.split(key)

    params = init_params(k_params)
    # B=200 exercises the multi-step batch grid (2 x 112-row tiles) and the
    # partial final tile (padded to 224 rows internally, sliced back to 200).
    B = 200
    x = jax.random.normal(k_x, (B, 1, 28, 28), dtype=jnp.float32)

    out = mnist_net_forward(x, params)
    out = jax.block_until_ready(out)

    assert out.shape == (B, N_OUT)

    # Softmax rows sum to ~1 (approx reciprocal -> loose tolerance).
    row_sums = jnp.sum(out, axis=1)
    assert bool(jnp.all(jnp.abs(row_sums - 1.0) < 2e-2))

    # Match a pure-JAX reference with equivalent bf16 numerics.
    ref = mnist_ref(x, params)
    assert bool(jnp.max(jnp.abs(out - ref)) < 2e-2)

    print("KERNEL_OK")
</pallas_src>

<mosaic_0001>
module attributes {stable_mosaic.version = 11 : i64} {
  func.func @mnist_mlp_kernel(%arg0: i32, %arg1: memref<112x784xf32, #tpu.memory_space<vmem>>, %arg2: memref<784x512xbf16, #tpu.memory_space<vmem>>, %arg3: memref<1x512xf32, #tpu.memory_space<vmem>>, %arg4: memref<512x512xbf16, #tpu.memory_space<vmem>>, %arg5: memref<1x512xf32, #tpu.memory_space<vmem>>, %arg6: memref<512x128xbf16, #tpu.memory_space<vmem>>, %arg7: memref<1x128xf32, #tpu.memory_space<vmem>>, %arg8: memref<112x128xf32, #tpu.memory_space<vmem>>) attributes {dimension_semantics = [#tpu.dimension_semantics<parallel>], iteration_bounds = array<i64: 2>, scalar_prefetch = 0 : i64, scratch_operands = 0 : i64, tpu.core_type = #tpu.core_type<tc>, window_params = [{transform_indices = @transform_0, window_bounds = array<i64: 112, 784>}, {pipeline_mode = #tpu.pipeline_mode<synchronous>, transform_indices = @transform_1, window_bounds = array<i64: 784, 512>}, {pipeline_mode = #tpu.pipeline_mode<synchronous>, transform_indices = @transform_2, window_bounds = array<i64: 1, 512>}, {pipeline_mode = #tpu.pipeline_mode<synchronous>, transform_indices = @transform_3, window_bounds = array<i64: 512, 512>}, {pipeline_mode = #tpu.pipeline_mode<synchronous>, transform_indices = @transform_4, window_bounds = array<i64: 1, 512>}, {pipeline_mode = #tpu.pipeline_mode<synchronous>, transform_indices = @transform_5, window_bounds = array<i64: 512, 128>}, {pipeline_mode = #tpu.pipeline_mode<synchronous>, transform_indices = @transform_6, window_bounds = array<i64: 1, 128>}, {transform_indices = @transform_7, window_bounds = array<i64: 112, 128>}]} {
    %c0 = arith.constant 0 : index
    %c0_0 = arith.constant 0 : index
    %0 = vector.load %arg1[%c0, %c0_0] : memref<112x784xf32, #tpu.memory_space<vmem>>, vector<112x784xf32>
    %1 = arith.truncf %0 : vector<112x784xf32> to vector<112x784xbf16>
    %c0_1 = arith.constant 0 : index
    %c0_2 = arith.constant 0 : index
    %2 = vector.load %arg2[%c0_1, %c0_2] : memref<784x512xbf16, #tpu.memory_space<vmem>>, vector<784x512xbf16>
    %cst = arith.constant dense<0.000000e+00> : vector<112x512xf32>
    %3 = tpu.matmul %1, %2, %cst {dimension_numbers = #tpu.dot_dimension_numbers<[1], [0], [0], [1], [0, 0, 1, 1], [], []>} : vector<112x784xbf16>, vector<784x512xbf16>, vector<112x512xf32> -> vector<112x512xf32>
    %c0_3 = arith.constant 0 : index
    %c0_4 = arith.constant 0 : index
    %4 = vector.load %arg3[%c0_3, %c0_4] : memref<1x512xf32, #tpu.memory_space<vmem>>, vector<1x512xf32>
    %5 = vector.broadcast %4 : vector<1x512xf32> to vector<112x512xf32>
    %6 = arith.addf %3, %5 : vector<112x512xf32>
    %cst_5 = arith.constant 0.000000e+00 : f32
    %7 = vector.broadcast %cst_5 : f32 to vector<112x512xf32>
    %8 = arith.maximumf %6, %7 : vector<112x512xf32>
    %9 = arith.truncf %8 : vector<112x512xf32> to vector<112x512xbf16>
    %c0_6 = arith.constant 0 : index
    %c0_7 = arith.constant 0 : index
    %10 = vector.load %arg4[%c0_6, %c0_7] : memref<512x512xbf16, #tpu.memory_space<vmem>>, vector<512x512xbf16>
    %cst_8 = arith.constant dense<0.000000e+00> : vector<112x512xf32>
    %11 = tpu.matmul %9, %10, %cst_8 {dimension_numbers = #tpu.dot_dimension_numbers<[1], [0], [0], [1], [0, 0, 1, 1], [], []>} : vector<112x512xbf16>, vector<512x512xbf16>, vector<112x512xf32> -> vector<112x512xf32>
    %c0_9 = arith.constant 0 : index
    %c0_10 = arith.constant 0 : index
    %12 = vector.load %arg5[%c0_9, %c0_10] : memref<1x512xf32, #tpu.memory_space<vmem>>, vector<1x512xf32>
    %13 = vector.broadcast %12 : vector<1x512xf32> to vector<112x512xf32>
    %14 = arith.addf %11, %13 : vector<112x512xf32>
    %cst_11 = arith.constant 0.000000e+00 : f32
    %15 = vector.broadcast %cst_11 : f32 to vector<112x512xf32>
    %16 = arith.maximumf %14, %15 : vector<112x512xf32>
    %17 = arith.truncf %16 : vector<112x512xf32> to vector<112x512xbf16>
    %c0_12 = arith.constant 0 : index
    %c0_13 = arith.constant 0 : index
    %18 = vector.load %arg6[%c0_12, %c0_13] : memref<512x128xbf16, #tpu.memory_space<vmem>>, vector<512x128xbf16>
    %cst_14 = arith.constant dense<0.000000e+00> : vector<112x128xf32>
    %19 = tpu.matmul %17, %18, %cst_14 {dimension_numbers = #tpu.dot_dimension_numbers<[1], [0], [0], [1], [0, 0, 1, 1], [], []>} : vector<112x512xbf16>, vector<512x128xbf16>, vector<112x128xf32> -> vector<112x128xf32>
    %c0_15 = arith.constant 0 : index
    %c0_16 = arith.constant 0 : index
    %20 = vector.load %arg7[%c0_15, %c0_16] : memref<1x128xf32, #tpu.memory_space<vmem>>, vector<1x128xf32>
    %21 = vector.broadcast %20 : vector<1x128xf32> to vector<112x128xf32>
    %22 = arith.addf %19, %21 : vector<112x128xf32>
    %cst_17 = arith.constant dense<0xFF800000> : vector<112xf32>
    %23 = vector.multi_reduction <maximumf>, %22, %cst_17 [1] : vector<112x128xf32> to vector<112xf32>
    %24 = vector.shape_cast %23 : vector<112xf32> to vector<112x1xf32>
    %25 = vector.broadcast %24 : vector<112x1xf32> to vector<112x128xf32>
    %26 = arith.subf %22, %25 : vector<112x128xf32>
    %27 = math.exp %26 : vector<112x128xf32>
    %cst_18 = arith.constant dense<0.000000e+00> : vector<112xf32>
    %28 = vector.multi_reduction <add>, %27, %cst_18 [1] : vector<112x128xf32> to vector<112xf32>
    %29 = vector.shape_cast %28 : vector<112xf32> to vector<112x1xf32>
    %30 = tpu.reciprocal %29 {approx = true} : vector<112x1xf32> -> vector<112x1xf32>
    %31 = vector.broadcast %30 : vector<112x1xf32> to vector<112x128xf32>
    %32 = arith.mulf %27, %31 : vector<112x128xf32>
    %c0_19 = arith.constant 0 : index
    %c0_20 = arith.constant 0 : index
    %33 = vector.load %arg8[%c0_19, %c0_20] : memref<112x128xf32, #tpu.memory_space<vmem>>, vector<112x128xf32>
    tpu.vector_store %arg8[%c0_19, %c0_20], %32 {strides = array<i32>} : memref<112x128xf32, #tpu.memory_space<vmem>>, vector<112x128xf32>,
    return
  }
  func.func @transform_0(%arg0: i32) -> (i32, i32) {
    %c0_i32 = arith.constant 0 : i32
    %c0_i32_0 = arith.constant 0 : i32
    return %arg0, %c0_i32 : i32, i32
  }
  func.func @transform_1(%arg0: i32) -> (i32, i32) {
    %c0_i32 = arith.constant 0 : i32
    %c0_i32_0 = arith.constant 0 : i32
    %c0_i32_1 = arith.constant 0 : i32
    return %c0_i32, %c0_i32_0 : i32, i32
  }
  func.func @transform_2(%arg0: i32) -> (i32, i32) {
    %c0_i32 = arith.constant 0 : i32
    %c0_i32_0 = arith.constant 0 : i32
    %c0_i32_1 = arith.constant 0 : i32
    return %c0_i32, %c0_i32_0 : i32, i32
  }
  func.func @transform_3(%arg0: i32) -> (i32, i32) {
    %c0_i32 = arith.constant 0 : i32
    %c0_i32_0 = arith.constant 0 : i32
    %c0_i32_1 = arith.constant 0 : i32
    return %c0_i32, %c0_i32_0 : i32, i32
  }
  func.func @transform_4(%arg0: i32) -> (i32, i32) {
    %c0_i32 = arith.constant 0 : i32
    %c0_i32_0 = arith.constant 0 : i32
    %c0_i32_1 = arith.constant 0 : i32
    return %c0_i32, %c0_i32_0 : i32, i32
  }
  func.func @transform_5(%arg0: i32) -> (i32, i32) {
    %c0_i32 = arith.constant 0 : i32
    %c0_i32_0 = arith.constant 0 : i32
    %c0_i32_1 = arith.constant 0 : i32
    return %c0_i32, %c0_i32_0 : i32, i32
  }
  func.func @transform_6(%arg0: i32) -> (i32, i32) {
    %c0_i32 = arith.constant 0 : i32
    %c0_i32_0 = arith.constant 0 : i32
    %c0_i32_1 = arith.constant 0 : i32
    return %c0_i32, %c0_i32_0 : i32, i32
  }
  func.func @transform_7(%arg0: i32) -> (i32, i32) {
    %c0_i32 = arith.constant 0 : i32
    %c0_i32_0 = arith.constant 0 : i32
    return %arg0, %c0_i32 : i32, i32
  }
}

</mosaic_0001>

<bundles_post_ra>
// kernel: tpu_custom_call.1
= control target key start
LH: loop header
LB: loop body
LE: loop exit
PB: predicated region body
PF: predicated region fallthrough
CT: control target
= control target key end

     0   :  { %s9222_s0 = inlined_call_operand.hbm [shape: f32[224,784], index: 0, kind: input, shape index: {}]   ;;  %s9223_s1 = inlined_call_operand.hbm [shape: bf16[784,512], index: 1, kind: input, shape index: {}]   ;;  %s9224_s2 = inlined_call_operand.hbm [shape: f32[1,512], index: 2, kind: input, shape index: {}]   ;;  %s9225_s3 = inlined_call_operand.hbm [shape: bf16[512,512], index: 3, kind: input, shape index: {}]   ;;  %s9226_s4 = inlined_call_operand.hbm [shape: f32[1,512], index: 4, kind: input, shape index: {}]   ;;  %s9227_s5 = inlined_call_operand.hbm [shape: bf16[512,128], index: 5, kind: input, shape index: {}]   ;;  %s9228_s6 = inlined_call_operand.vmem [shape: f32[1,128], index: 6, kind: input, shape index: {}]   ;;  %s9229_s7 = inlined_call_operand.hbm [shape: f32[224,128], index: 7, kind: output, shape index: {}]  }
   0x1   :  { %9287 = sst [smem:[#allocation53_spill]] %s9223_s1 }
   0x2   :  { %9288 = sst [smem:[#allocation54_spill]] %s9224_s2 }
   0x3   :  { %9289 = sst [smem:[#allocation55_spill]] %s9225_s3 }
   0x4   :  { %12 = vsyncpa [#allocation3], 0 }
   0x5   :  { %14 = vsyncpa [#allocation3 + $0x1], 0 }
   0x6   :  { %15 = vsyncpa [#allocation6], 0 }
   0x7   :  { %16 = vsyncpa [#allocation9], 0 }
   0x8   :  { %17 = vsyncpa [#allocation12], 0 }
   0x9   :  { %18 = vsyncpa [#allocation4], 0 }
   0xa   :  { %20 = vsyncpa [#allocation4 + $0x1], 0  ;;  %s7642_s24 = smov 0   ;;  %s7644_s25 = smov 0  }
   0xb   :  { %s7646_s26 = smov 0   ;;  %s7648_s27 = smov 0  }
   0xc LB: > { %s9290_s1 = sld [smem:[#allocation53_spill]]  ;;  %s7666_s8 = sadd.s32 4294967295, %s7587_s27   ;;  %s7587_s27 = sphi %s7648_s27, %s9395_s27   ;;  %s7583_s26 = sphi %s7646_s26, %s9394_s26   ;;  %s7579_s25 = sphi %s7644_s25, %s9393_s25   ;;  %s7575_s24 = sphi %s7642_s24, %s9392_s24  }
   0xd   : > { %p5333_p0 = scmp.ge.s32.totalorder %s7587_s27, 1  ;;  %p47_p1 = scmp.eq.s32.totalorder %s7666_s8, 0 }
   0xe   : > { %p209_p2 = scmp.lt.s32.totalorder %s7587_s27, 3  ;;  %s7589_s10 = smov [#allocation5]  }
   0xf   : > { %s222_s11 = sshll.u32 %s7589_s10, 4  ;;  %s9293_s3 = sld [smem:[#allocation55_spill]]  ;;  %s223_s11 = int_to_ptr.vmem [resolvable:$true] %s222_s11 }
  0x10   : > { %p7671_p3 = pnand %p5333_p0, %p209_p2  ;;  %s7590_s16 = smov [#allocation8]  }
  0x11   : > { %s248_s17 = sshll.u32 %s7590_s16, 4  ;;  %s7591_s18 = smov 256   ;;  %s249_s17 = int_to_ptr.vmem [resolvable:$true] %s248_s17 }
  0x12   : > { %s220_s30 = sshll.u32 %s9290_s1, 4  ;;  %p7187_p4 = pneg %p7671_p3  ;;  %s221_s30 = int_to_ptr.hbm [resolvable:$true] %s220_s30 }
  0x13   : > { %s7592_s19 = smov 16   ;;  %s9294_s2 = sld [smem:[#allocation54_spill]] }
  0x14   : > { %p7680_p6 = pnand %p7187_p4, %p47_p1  ;;  %s7593_s23 = smov [#allocation7]  }
  0x15   : > { %s246_s15 = sshll.u32 %s9293_s3, 4  ;;  %s237_s28 = sshll.u32 %s7593_s23, 4  ;;  %s247_s15 = int_to_ptr.hbm [resolvable:$true] %s246_s15  ;;  %s238_s28 = int_to_ptr.vmem [resolvable:$true] %s237_s28 }
  0x16   : > { %7190 = dma.hbm_to_vmem [thread:$0]  (!%p7680_p6), %s221_s30, 25088, %s223_s11, [#allocation6], %s7591_s18, %s7591_s18, %s7592_s19  }
  0x17   : > { %7196 = dma.hbm_to_vmem [thread:$0]  (!%p7680_p6), %s247_s15, 16384, %s249_s17, [#allocation9], %s7591_s18, %s7591_s18, %s7592_s19  }
  0x18   : > { %s261_s13 = sshll.u32 %s9226_s4, 4  ;;  %s272_s14 = sshll.u32 %s9227_s5, 4  ;;  %s262_s13 = int_to_ptr.hbm [resolvable:$true] %s261_s13  ;;  %s273_s14 = int_to_ptr.hbm [resolvable:$true] %s272_s14 }
  0x19   : > { %s235_s22 = sshll.u32 %s9294_s2, 4  ;;  %s7594_s15 = smov [#allocation10]   ;;  %s236_s22 = int_to_ptr.hbm [resolvable:$true] %s235_s22 }
  0x1a   : > { %7193 = dma.hbm_to_vmem [thread:$0]  (!%p7680_p6), %s236_s22, 64, %s238_s28, [#allocation6]  }
  0x1b   : > { %s263_s16 = sshll.u32 %s7594_s15, 4  ;;  %s7595_s17 = smov [#allocation11]   ;;  %s264_s16 = int_to_ptr.vmem [resolvable:$true] %s263_s16 }
  0x1c   : > { %7199 = dma.hbm_to_vmem [thread:$0]  (!%p7680_p6), %s262_s13, 64, %s264_s16, [#allocation9]  }
  0x1d   : > { %s274_s18 = sshll.u32 %s7595_s17, 4  ;;  %s7596_s19 = smov 64   ;;  %s275_s18 = int_to_ptr.vmem [resolvable:$true] %s274_s18 }
  0x1e   : > { %s7597_s20 = smov 4   ;;  %s5332_s21 = sadd.s32 4294967294, %s7587_s27  }
  0x1f   : > { %7202 = dma.hbm_to_vmem [thread:$0]  (!%p7680_p6), %s273_s14, 4096, %s275_s18, [#allocation12], %s7596_s19, %s7596_s19, %s7597_s20  }
  0x20   : > { %s7708_s22 = sadd.s32 1, %s7587_s27   ;;  %s33_s28 = sadd.s32 1, %s7583_s26 }
  0x21   : > { %s30_s23 = ssub.s32 %s7587_s27, %s7708_s22  ;;  %p40_p8 = scmp.ne.s32.totalorder %s7583_s26, %s7579_s25 }
  0x22   : > { %p31_p7 = scmp.eq.s32.totalorder %s30_s23, 0  ;;  %p41_p9 = scmp.eq.s32.totalorder %s7587_s27, 0 }
  0x23   : > { %p46_p10 = scmp.ne.s32.totalorder %s7579_s25, %s7575_s24  ;;  %p196_p13 = scmp.eq.s32.totalorder %s7666_s8, 1 }
  0x24   : > { %s7719_s29 = scalar_select %p31_p7, %s7583_s26, %s33_s28  }
  0x25   : > { %p42_p11 = por %p41_p9, %p40_p8  ;;  %p7723_p12 = por %p47_p1, %p46_p10 }
  0x26   : > { %p202_p0 = scmp.eq.s32.totalorder %s5332_s21, 1  ;;  %p7216_p2 = scmp.lt.s32.totalorder %s7587_s27, 2 }
  0x27   : > { %s291_s12 = sand.u32 1, %s7583_s26   ;;  %p7730_p4 = por %p196_p13, %p40_p8 }
  0x28   : > { %p7734_p6 = por %p202_p0, %p46_p10  ;;  %s7159_s11 = smul.u32 784, %s291_s12 }
  0x29   : > { %s7217_s14 = smul.u32 784, %s7587_s27  ;;  %p7739_p7 = pnand %p7216_p2, %p42_p11 }
  0x2a   : > { %s295_s19 = scalar_lea.vmem [#allocation2], %s7159_s11  ;;  %s292_s23 = scalar_lea.sflag [#allocation3], %s291_s12 }
  0x2b   : > { %s301_s18 = scalar_lea.hbm %s9222_s0, %s7217_s14  ;;  %s304_s20 = sshll.u32 %s295_s19, 4  ;;  %s305_s20 = int_to_ptr.vmem [resolvable:$true] %s304_s20 }
  0x2c   : > { %s302_s21 = sshll.u32 %s301_s18, 4  ;;  %p7483_p9 = pneg %p7739_p7  ;;  %s303_s21 = int_to_ptr.hbm [resolvable:$true] %s302_s21 }
  0x2d   : > { %s7479_s28 = sshra.s32 %s303_s21, 4  ;;  %s7486_s16 = scalar_lea.hbm %s9222_s0, 1568  ;;  %s7480_s28 = int_to_ptr.hbm [resolvable:$true] %s7479_s28 }
  0x2e   : > { %s7481_s1 = scalar_lea.hbm %s7480_s28, 784  ;;  %p7487_p13 = scmp.lt.s32.totalorder %s7480_s28, %s9222_s0 }
  0x2f   : > { %p7482_p8 = scmp.ne.s32.totalorder %s7480_s28, %s7481_s1  ;;  %p7488_p0 = scmp.lt.s32.totalorder %s7486_s16, %s7481_s1 }
  0x31   : > { %p7484_p10 = pnand %p7483_p9, %p7482_p8  ;;  %p7489_p2 = por %p7488_p0, %p7487_p13 }
  0x33   : > { %p7485_p11 = pneg %p7484_p10 }
  0x35   : > { %p7490_p5 = pnand %p7489_p2, %p7485_p11 }
  0x37   : > { %7493 = shalt.err (!%p7490_p5)
}
  0x38   : > { %s7598_s12 = smov 896   ;;  %s7599_s11 = smov 56  }
  0x39   : > { %7206 = dma.hbm_to_vmem [thread:$0]  (!%p7739_p7), %s303_s21, 12544, %s305_s20, %s292_s23, %s7598_s12, %s7598_s12, %s7599_s11  }
  0x3a   : > { %316 = sbr.rel (%p7671_p3) target bundleno = 1907 (0x773), region = 48 }
  0x3f   : > { %s7759_s2 = sand.u32 1, %s7579_s25  }
  0x40   : > { %s7161_s3 = smul.u32 784, %s7759_s2  ;;  %s319_s18 = scalar_lea.sflag [#allocation3], %s7759_s2 }
  0x42   : > { %s7763_s1 = scalar_lea.vmem [#allocation2], %s7161_s3 }
  0x43   : > { %7554 = dma.done.wait (%p7723_p12), %s319_s18, 12544  }
  0x44   : > { %7556 = vsyncadd (%p7723_p12), %s319_s18, 4294954752 }
  0x45   : > { %7558 = dma.done.wait (%p47_p1), [#allocation6], 25152  }
  0x46   : > { %7560 = vsyncadd (%p47_p1), [#allocation6], 4294942144 }
  0x47   : > { %7562 = dma.done.wait (%p47_p1), [#allocation9], 16448  }
  0x48   : > { %7564 = vsyncadd (%p47_p1), [#allocation9], 4294950848 }
  0x49   : > { %7566 = dma.done.wait (%p47_p1), [#allocation12], 4096  }
  0x4a   : > { %7568 = vsyncadd (%p47_p1), [#allocation12], 4294963200  ;;  %v5461_v0 = vld [vmem:[#allocation5 + $0xe0] sm:$0xf]  ;;  %v6832_v1 = vld [vmem:[#allocation5 + $0xec] sm:$0xf0] }
  0x4b   : > { %v5589_v2 = vld [vmem:[#allocation5 + $0x1e0] sm:$0xf]  ;;  %v5462_v3 = vor.u32 %v6832_v1, %v5461_v0  ;;  %v6864_v4 = vld [vmem:[#allocation5 + $0x1ec] sm:$0xf0]  ;;  %vm1715_vm0 = vcmask 130048   ;;  %s7162_s15 = smul.u32 112, %s7759_s2 }
  0x4c   : > { %v5717_v5 = vld [vmem:[#allocation5 + $0x2e0] sm:$0xf]  ;;  %v6896_v6 = vld [vmem:[#allocation5 + $0x2ec] sm:$0xf0]  ;;  %v5590_v7 = vor.u32 %v6864_v4, %v5589_v2  ;;  %s7158_s20 = smul.u32 112, %s7666_s8  ;;  %s5196_s8 = scalar_lea.sflag [#allocation4], %s7759_s2 }
  0x4d   : > { %v5718_v8 = vor.u32 %v6896_v6, %v5717_v5  ;;  %v5845_v9 = vld [vmem:[#allocation5 + $0x3e0] sm:$0xf]  ;;  %v6928_v10 = vld [vmem:[#allocation5 + $0x3ec] sm:$0xf0]  ;;  %1737 = vmatpush.bf16.msra.mxu0 %v5462_v3  ;;  %s9159_s19 = scalar_lea.vmem [#allocation13], %s7162_s15  ;;  %s7529_s18 = scalar_lea.hbm %s9229_s7, 224 }
  0x4e   : > { %v5445_v11 = vld [vmem:[#allocation5 + $0xc0] sm:$0xf]  ;;  %v5846_v12 = vor.u32 %v6928_v10, %v5845_v9  ;;  %v6828_v13 = vld [vmem:[#allocation5 + $0xcc] sm:$0xf0]  ;;  %1781 = vmatpush.bf16.msra.mxu1 %v5590_v7  ;;  %s5207_s28 = scalar_lea.hbm %s9229_s7, %s7158_s20  ;;  %s5208_s16 = sshll.u32 %s9159_s19, 4  ;;  %s5209_s16 = int_to_ptr.vmem [resolvable:$true] %s5208_s16 }
  0x4f   : > { %v5573_v14 = vld [vmem:[#allocation5 + $0x1c0] sm:$0xf]  ;;  %v6860_v15 = vld [vmem:[#allocation5 + $0x1cc] sm:$0xf0]  ;;  %1825 = vmatpush.bf16.msra.mxu2 %v5718_v8  ;;  %v5446_v16 = vor.u32 %v6828_v13, %v5445_v11  ;;  %s5210_s17 = sshll.u32 %s5207_s28, 4  ;;  %s5211_s17 = int_to_ptr.hbm [resolvable:$true] %s5210_s17 }
  0x50   : > { %v5574_v17 = vor.u32 %v6860_v15, %v5573_v14  ;;  %v5701_v18 = vld [vmem:[#allocation5 + $0x2c0] sm:$0xf]  ;;  %v6892_v19 = vld [vmem:[#allocation5 + $0x2cc] sm:$0xf0]  ;;  %1869 = vmatpush.bf16.msra.mxu3 %v5846_v12  ;;  %s7523_s14 = sshra.s32 %s5211_s17, 4  ;;  %s7524_s14 = int_to_ptr.hbm [resolvable:$true] %s7523_s14 }
  0x51   : > { %v5829_v20 = vld [vmem:[#allocation5 + $0x3c0] sm:$0xf]  ;;  %v5702_v21 = vor.u32 %v6892_v19, %v5701_v18  ;;  %v6924_v22 = vld [vmem:[#allocation5 + $0x3cc] sm:$0xf0]  ;;  %1738 = vmatpush.bf16.msra.mxu0 %v5446_v16  ;;  %s7525_s12 = scalar_lea.hbm %s7524_s14, 112  ;;  %p7530_p12 = scmp.lt.s32.totalorder %s7524_s14, %s9229_s7 }
  0x52   : > { %v5429_v23 = vld [vmem:[#allocation5 + $0xa0] sm:$0xf]  ;;  %v6824_v24 = vld [vmem:[#allocation5 + $0xac] sm:$0xf0]  ;;  %v5830_v25 = vor.u32 %v6924_v22, %v5829_v20  ;;  %1782 = vmatpush.bf16.msra.mxu1 %v5574_v17  ;;  %p7526_p1 = scmp.ne.s32.totalorder %s7524_s14, %s7525_s12  ;;  %p7531_p7 = scmp.lt.s32.totalorder %s7529_s18, %s7525_s12 }
  0x53   : > { %v5557_v26 = vld [vmem:[#allocation5 + $0x1a0] sm:$0xf]  ;;  %v6856_v27 = vld [vmem:[#allocation5 + $0x1ac] sm:$0xf0]  ;;  %v5430_v29 = vor.u32 %v6824_v24, %v5429_v23  ;;  %1826 = vmatpush.bf16.msra.mxu2 %v5702_v21 }
  0x54   : > { %v5685_v28 = vld [vmem:[#allocation5 + $0x2a0] sm:$0xf]  ;;  %v6888_v30 = vld [vmem:[#allocation5 + $0x2ac] sm:$0xf0]  ;;  %v5558_v33 = vor.u32 %v6856_v27, %v5557_v26  ;;  %1870 = vmatpush.bf16.msra.mxu3 %v5830_v25  ;;  %p7527_p3 = pnand %p7526_p1, %p7730_p4  ;;  %p7532_p8 = por %p7531_p7, %p7530_p12 }
  0x55   : > { %v5813_v31 = vld [vmem:[#allocation5 + $0x3a0] sm:$0xf]  ;;  %v6920_v32 = vld [vmem:[#allocation5 + $0x3ac] sm:$0xf0]  ;;  %v5686_v34 = vor.u32 %v6888_v30, %v5685_v28  ;;  %1739 = vmatpush.bf16.msra.mxu0 %v5430_v29  ;;  %v389_v29 = vld [vmem:[%s7763_s1 + $0x38] sm:$0xff] }
  0x56   : > { %v5413_v35 = vld [vmem:[#allocation5 + $0x80] sm:$0xf]  ;;  %v6820_v36 = vld [vmem:[#allocation5 + $0x8c] sm:$0xf0]  ;;  %v5814_v38 = vor.u32 %v6920_v32, %v5813_v31  ;;  %1783 = vmatpush.bf16.msra.mxu1 %v5558_v33  ;;  %v383_v30 = vld [vmem:[%s7763_s1 + $0x8] sm:$0xff]  ;;  %p7528_p5 = pneg %p7527_p3 }
  0x57   : > { %v5541_v37 = vld [vmem:[#allocation5 + $0x180] sm:$0xf]  ;;  %v6852_v39 = vld [vmem:[#allocation5 + $0x18c] sm:$0xf0]  ;;  %v5414_v44 = vor.u32 %v6820_v36, %v5413_v35  ;;  %1827 = vmatpush.bf16.msra.mxu2 %v5686_v34  ;;  %v6830_v35 = vld [vmem:[#allocation5 + $0xe4] sm:$0xf] }
  0x58   : > { %v5669_v40 = vld [vmem:[#allocation5 + $0x280] sm:$0xf]  ;;  %v6884_v41 = vld [vmem:[#allocation5 + $0x28c] sm:$0xf0]  ;;  %v5542_v45 = vor.u32 %v6852_v39, %v5541_v37  ;;  %1871 = vmatpush.bf16.msra.mxu3 %v5814_v38  ;;  %v5463_v36 = vld [vmem:[#allocation5 + $0xf0] sm:$0xf0]  ;;  %p7533_p9 = pnand %p7532_p8, %p7528_p5 }
  0x59   : > { %v5797_v42 = vld [vmem:[#allocation5 + $0x380] sm:$0xf]  ;;  %v6916_v43 = vld [vmem:[#allocation5 + $0x38c] sm:$0xf0]  ;;  %v5670_v46 = vor.u32 %v6884_v41, %v5669_v40  ;;  %1740 = vmatpush.bf16.msra.mxu0 %v5414_v44  ;;  %v391_v40 = vld [vmem:[%s7763_s1 + $0x48] sm:$0xff] }
  0x5a   : > { %v5397_v47 = vld [vmem:[#allocation5 + $0x60] sm:$0xf]  ;;  %v6816_v48 = vld [vmem:[#allocation5 + $0x6c] sm:$0xf0]  ;;  %v5798_v50 = vor.u32 %v6916_v43, %v5797_v42  ;;  %1784 = vmatpush.bf16.msra.mxu1 %v5542_v45  ;;  %v385_v41 = vld [vmem:[%s7763_s1 + $0x18] sm:$0xff] }
  0x5b   : > { %v5525_v49 = vld [vmem:[#allocation5 + $0x160] sm:$0xf]  ;;  %v6848_v51 = vld [vmem:[#allocation5 + $0x16c] sm:$0xf0]  ;;  %v5398_v56 = vor.u32 %v6816_v48, %v5397_v47  ;;  %1828 = vmatpush.bf16.msra.mxu2 %v5670_v46  ;;  %v5466_v48 = vor.u32 %v6830_v35, %v5463_v36  ;;  %v5399_v35 = vld [vmem:[#allocation5 + $0x70] sm:$0xf0] }
  0x5c   : > { %v5653_v52 = vld [vmem:[#allocation5 + $0x260] sm:$0xf]  ;;  %v6880_v53 = vld [vmem:[#allocation5 + $0x26c] sm:$0xf0]  ;;  %v5526_v57 = vor.u32 %v6848_v51, %v5525_v49  ;;  %1872 = vmatpush.bf16.msra.mxu3 %v5798_v50 }
  0x5d   : > { %v5781_v54 = vld [vmem:[#allocation5 + $0x360] sm:$0xf]  ;;  %v6912_v55 = vld [vmem:[#allocation5 + $0x36c] sm:$0xf0]  ;;  %v5654_v58 = vor.u32 %v6880_v53, %v5653_v52  ;;  %1741 = vmatpush.bf16.msra.mxu0 %v5398_v56  ;;  %v6826_v53 = vld [vmem:[#allocation5 + $0xc4] sm:$0xf] }
  0x5e   : > { %v5381_v59 = vld [vmem:[#allocation5 + $0x40] sm:$0xf]  ;;  %v6812_v60 = vld [vmem:[#allocation5 + $0x4c] sm:$0xf0]  ;;  %v5782_v62 = vor.u32 %v6912_v55, %v5781_v54  ;;  %1785 = vmatpush.bf16.msra.mxu1 %v5526_v57  ;;  %v5447_v54 = vld [vmem:[#allocation5 + $0xd0] sm:$0xf0] }
  0x5f   : > { %v5509_v61 = vld [vmem:[#allocation5 + $0x140] sm:$0xf]  ;;  %v6844_v63 = vld [vmem:[#allocation5 + $0x14c] sm:$0xf0]  ;;  %v5382_v4 = vor.u32 %v6812_v60, %v5381_v59  ;;  %1829 = vmatpush.bf16.msra.mxu2 %v5654_v58  ;;  %v5450_v60 = vor.u32 %v6826_v53, %v5447_v54 }
  0x60   : > { %v5637_v0 = vld [vmem:[#allocation5 + $0x240] sm:$0xf]  ;;  %v6876_v1 = vld [vmem:[#allocation5 + $0x24c] sm:$0xf0]  ;;  %v5510_v5 = vor.u32 %v6844_v63, %v5509_v61  ;;  %1873 = vmatpush.bf16.msra.mxu3 %v5782_v62  ;;  %v6822_v63 = vld [vmem:[#allocation5 + $0xa4] sm:$0xf] }
  0x61   : > { %v5765_v2 = vld [vmem:[#allocation5 + $0x340] sm:$0xf]  ;;  %v6908_v3 = vld [vmem:[#allocation5 + $0x34c] sm:$0xf0]  ;;  %v5638_v6 = vor.u32 %v6876_v1, %v5637_v0  ;;  %1742 = vmatpush.bf16.msra.mxu0 %v5382_v4  ;;  %v5431_v0 = vld [vmem:[#allocation5 + $0xb0] sm:$0xf0] }
  0x62   : > { %v5365_v7 = vld [vmem:[#allocation5 + $0x20] sm:$0xf]  ;;  %v6808_v8 = vld [vmem:[#allocation5 + $0x2c] sm:$0xf0]  ;;  %v5766_v10 = vor.u32 %v6908_v3, %v5765_v2  ;;  %1786 = vmatpush.bf16.msra.mxu1 %v5510_v5  ;;  %v5434_v5 = vor.u32 %v6822_v63, %v5431_v0 }
  0x63   : > { %v5493_v9 = vld [vmem:[#allocation5 + $0x120] sm:$0xf]  ;;  %v6840_v11 = vld [vmem:[#allocation5 + $0x12c] sm:$0xf0]  ;;  %v5366_v17 = vor.u32 %v6808_v8, %v5365_v7  ;;  %1830 = vmatpush.bf16.msra.mxu2 %v5638_v6  ;;  %v6818_v8 = vld [vmem:[#allocation5 + $0x84] sm:$0xf] }
  0x64   : > { %v5621_v12 = vld [vmem:[#allocation5 + $0x220] sm:$0xf]  ;;  %v6872_v13 = vld [vmem:[#allocation5 + $0x22c] sm:$0xf0]  ;;  %v5494_v21 = vor.u32 %v6840_v11, %v5493_v9  ;;  %1874 = vmatpush.bf16.msra.mxu3 %v5766_v10  ;;  %v5415_v9 = vld [vmem:[#allocation5 + $0x90] sm:$0xf0] }
  0x65   : > { %v5749_v14 = vld [vmem:[#allocation5 + $0x320] sm:$0xf]  ;;  %v6904_v15 = vld [vmem:[#allocation5 + $0x32c] sm:$0xf0]  ;;  %v5622_v22 = vor.u32 %v6872_v13, %v5621_v12  ;;  %1743 = vmatpush.bf16.msra.mxu0 %v5366_v17 }
  0x66   : > { %v5349_v16 = vld [vmem:[#allocation5] sm:$0xf]  ;;  %v6804_v18 = vld [vmem:[#allocation5 + $0xc] sm:$0xf0]  ;;  %v5750_v26 = vor.u32 %v6904_v15, %v5749_v14  ;;  %1787 = vmatpush.bf16.msra.mxu1 %v5494_v21  ;;  %v5418_v14 = vor.u32 %v6818_v8, %v5415_v9 }
  0x67   : > { %v5477_v19 = vld [vmem:[#allocation5 + $0x100] sm:$0xf]  ;;  %v6836_v20 = vld [vmem:[#allocation5 + $0x10c] sm:$0xf0]  ;;  %v5350_v33 = vor.u32 %v6804_v18, %v5349_v16  ;;  %1831 = vmatpush.bf16.msra.mxu2 %v5622_v22  ;;  %v403_v18 = vld [vmem:[%s7763_s1 + $0xa8] sm:$0xff] }
  0x68   : > { %v5605_v23 = vld [vmem:[#allocation5 + $0x200] sm:$0xf]  ;;  %v6868_v24 = vld [vmem:[#allocation5 + $0x20c] sm:$0xf0]  ;;  %v5478_v37 = vor.u32 %v6836_v20, %v5477_v19  ;;  %1875 = vmatpush.bf16.msra.mxu3 %v5750_v26  ;;  %v397_v19 = vld [vmem:[%s7763_s1 + $0x78] sm:$0xff] }
  0x69   : > { %v5733_v25 = vld [vmem:[#allocation5 + $0x300] sm:$0xf]  ;;  %v6900_v27 = vld [vmem:[#allocation5 + $0x30c] sm:$0xf0]  ;;  %v5606_v38 = vor.u32 %v6868_v24, %v5605_v23  ;;  %1744 = vmatpush.bf16.msra.mxu0 %v5350_v33  ;;  %v405_v22 = vld [vmem:[%s7763_s1 + $0xb8] sm:$0xff] }
  0x6a   : > { %v382_v28 = vld [vmem:[%s7763_s1] sm:$0xff]  ;;  %v384_v39 = vld [vmem:[%s7763_s1 + $0x10] sm:$0xff]  ;;  %v5734_v42 = vor.u32 %v6900_v27, %v5733_v25  ;;  %1788 = vmatpush.bf16.msra.mxu1 %v5478_v37  ;;  %v399_v24 = vld [vmem:[%s7763_s1 + $0x88] sm:$0xff] }
  0x6b   : > { %v6117_v31 = vld [vmem:[#allocation5 + $0x600] sm:$0xf]  ;;  %v6996_v32 = vld [vmem:[#allocation5 + $0x60c] sm:$0xf0]  ;;  %v7789_v47 = vpack.c.bf16 %v389_v29, %v382_v28  ;;  %v7793_v52 = vpack.c.bf16 %v391_v40, %v384_v39  ;;  %1832 = vmatpush.bf16.msra.mxu2 %v5606_v38  ;;  %v6814_v33 = vld [vmem:[#allocation5 + $0x64] sm:$0xf] }
  0x6c   : > { %v390_v34 = vld [vmem:[%s7763_s1 + $0x40] sm:$0xff]  ;;  %v392_v43 = vld [vmem:[%s7763_s1 + $0x50] sm:$0xff]  ;;  %v6118_v44 = vor.u32 %v6996_v32, %v6117_v31  ;;  %1876 = vmatpush.bf16.msra.mxu3 %v5734_v42  ;;  %v5402_v38 = vor.u32 %v6814_v33, %v5399_v35  ;;  %v411_v42 = vld [vmem:[%s7763_s1 + $0xe8] sm:$0xff] }
  0x6d   : > { %v5973_v45 = vld [vmem:[#allocation5 + $0x4e0] sm:$0xf]  ;;  %v6960_v46 = vld [vmem:[#allocation5 + $0x4ec] sm:$0xf0]  ;;  %v7791_v51 = vpack.c.bf16 %v390_v34, %v383_v30  ;;  %v7795_v55 = vpack.c.bf16 %v392_v43, %v385_v41  ;;  %1745 = vmatmul.bf16.vlgmr.msra.gmra.mxu0 %v7789_v47  ;;  %v417_v41 = vld [vmem:[%s7763_s1 + $0x118] sm:$0xff] }
  0x6e   : > { %v6101_v49 = vld [vmem:[#allocation5 + $0x5e0] sm:$0xf]  ;;  %v6992_v50 = vld [vmem:[#allocation5 + $0x5ec] sm:$0xf0]  ;;  %v5974_v56 = vor.u32 %v6960_v46, %v5973_v45  ;;  %1833 = vmatmul.bf16.vlgmr.msra.gmra.mxu2 %v7793_v52  ;;  %v419_v45 = vld [vmem:[%s7763_s1 + $0x128] sm:$0xff] }
  0x6f   : > { %9299 = vst [vmem:[#allocation19_spill] sm:$0xff] %v7795_v55  ;;  %2008 = vmatpush.bf16.msrb.mxu2 %v6118_v44  ;;  %v6102_v57 = vor.u32 %v6992_v50, %v6101_v49  ;;  %v5957_v58 = vld [vmem:[#allocation5 + $0x4c0] sm:$0xf]  ;;  %v6956_v59 = vld [vmem:[#allocation5 + $0x4cc] sm:$0xf0]  ;;  %1789 = vmatmul.bf16.vlgmr.msra.gmra.mxu1 %v7791_v51  ;;  %v413_v46 = vld [vmem:[%s7763_s1 + $0xf8] sm:$0xff] }
  0x70   : > { %2045 = vmatpush.bf16.msrb.mxu3 %v5466_v48  ;;  %v6085_v61 = vld [vmem:[#allocation5 + $0x5c0] sm:$0xf]  ;;  %v6988_v62 = vld [vmem:[#allocation5 + $0x5cc] sm:$0xf0]  ;;  %1913 = vmatpush.bf16.msrb.mxu0 %v5974_v56  ;;  %v5958_v1 = vor.u32 %v6956_v59, %v5957_v58  ;;  %v6810_v58 = vld [vmem:[#allocation5 + $0x44] sm:$0xf] }
  0x71   : > { %1877 = vmatmul.bf16.vlgmr.msra.gmra.mxu3 %v7795_v55  ;;  %1957 = vmatpush.bf16.msrb.mxu1 %v6102_v57  ;;  %v6086_v2 = vor.u32 %v6988_v62, %v6085_v61  ;;  %v5941_v3 = vld [vmem:[#allocation5 + $0x4a0] sm:$0xf]  ;;  %v6952_v4 = vld [vmem:[#allocation5 + $0x4ac] sm:$0xf0] }
  0x72   : > { %v6069_v6 = vld [vmem:[#allocation5 + $0x5a0] sm:$0xf]  ;;  %v6984_v7 = vld [vmem:[#allocation5 + $0x5ac] sm:$0xf0]  ;;  %v5942_v10 = vor.u32 %v6952_v4, %v5941_v3  ;;  %v425_v3 = vld [vmem:[%s7763_s1 + $0x158] sm:$0xff] }
  0x73   : > { %v6070_v11 = vor.u32 %v6984_v7, %v6069_v6  ;;  %v5925_v12 = vld [vmem:[#allocation5 + $0x480] sm:$0xf]  ;;  %v6948_v13 = vld [vmem:[#allocation5 + $0x48c] sm:$0xf0]  ;;  %v433_v6 = vld [vmem:[%s7763_s1 + $0x198] sm:$0xff] }
  0x74   : > { %2046 = vmatpush.bf16.msrb.mxu3 %v5450_v60  ;;  %1914 = vmatpush.bf16.msrb.mxu0 %v5958_v1  ;;  %v6053_v15 = vld [vmem:[#allocation5 + $0x580] sm:$0xf]  ;;  %v6980_v16 = vld [vmem:[#allocation5 + $0x58c] sm:$0xf0]  ;;  %v5926_v23 = vor.u32 %v6948_v13, %v5925_v12  ;;  %v5383_v60 = vld [vmem:[#allocation5 + $0x50] sm:$0xf0] }
  0x75   : > { %1958 = vmatpush.bf16.msrb.mxu1 %v6086_v2  ;;  %v396_v17 = vld [vmem:[%s7763_s1 + $0x70] sm:$0xff]  ;;  %v398_v21 = vld [vmem:[%s7763_s1 + $0x80] sm:$0xff]  ;;  %v6054_v26 = vor.u32 %v6980_v16, %v6053_v15  ;;  %v5386_v63 = vor.u32 %v6810_v58, %v5383_v60  ;;  %v431_v2 = vld [vmem:[%s7763_s1 + $0x188] sm:$0xff] }
  0x76   : > { %v404_v20 = vld [vmem:[%s7763_s1 + $0xb0] sm:$0xff]  ;;  %v406_v25 = vld [vmem:[%s7763_s1 + $0xc0] sm:$0xff]  ;;  %v7809_v27 = vpack.c.bf16 %v403_v18, %v396_v17  ;;  %v7813_v29 = vpack.c.bf16 %v405_v22, %v398_v21  ;;  %v427_v7 = vld [vmem:[%s7763_s1 + $0x168] sm:$0xff] }
  0x77   : > { %v7811_v28 = vpack.c.bf16 %v404_v20, %v397_v19  ;;  %v7815_v30 = vpack.c.bf16 %v406_v25, %v399_v24  ;;  %v5909_v31 = vld [vmem:[#allocation5 + $0x460] sm:$0xf]  ;;  %v6944_v32 = vld [vmem:[#allocation5 + $0x46c] sm:$0xf0]  ;;  %v6806_v15 = vld [vmem:[#allocation5 + $0x24] sm:$0xf] }
  0x78   : > { %2047 = vmatpush.bf16.msrb.mxu3 %v5434_v5  ;;  %1915 = vmatpush.bf16.msrb.mxu0 %v5942_v10  ;;  %9300 = vst [vmem:[#allocation20_spill] sm:$0xff] %v7809_v27  ;;  %v5910_v34 = vor.u32 %v6944_v32, %v5909_v31  ;;  %v6037_v36 = vld [vmem:[#allocation5 + $0x560] sm:$0xf]  ;;  %v6976_v37 = vld [vmem:[#allocation5 + $0x56c] sm:$0xf0]  ;;  %v439_v24 = vld [vmem:[%s7763_s1 + $0x1c8] sm:$0xff] }
  0x79   : > { %1959 = vmatpush.bf16.msrb.mxu1 %v6070_v11  ;;  %9301 = vst [vmem:[#allocation21_spill] sm:$0xff] %v7811_v28  ;;  %v6038_v39 = vor.u32 %v6976_v37, %v6037_v36  ;;  %v410_v40 = vld [vmem:[%s7763_s1 + $0xe0] sm:$0xff]  ;;  %v412_v44 = vld [vmem:[%s7763_s1 + $0xf0] sm:$0xff]  ;;  %v447_v31 = vld [vmem:[%s7763_s1 + $0x208] sm:$0xff] }
  0x7a   : > { %v418_v43 = vld [vmem:[%s7763_s1 + $0x120] sm:$0xff]  ;;  %v420_v48 = vld [vmem:[%s7763_s1 + $0x130] sm:$0xff]  ;;  %v7829_v49 = vpack.c.bf16 %v417_v41, %v410_v40  ;;  %v7833_v53 = vpack.c.bf16 %v419_v45, %v412_v44  ;;  %v441_v32 = vld [vmem:[%s7763_s1 + $0x1d8] sm:$0xff] }
  0x7b   : > { %v7831_v50 = vpack.c.bf16 %v418_v43, %v411_v42  ;;  %v7835_v54 = vpack.c.bf16 %v420_v48, %v413_v46  ;;  %v5893_v56 = vld [vmem:[#allocation5 + $0x440] sm:$0xf]  ;;  %v6940_v57 = vld [vmem:[#allocation5 + $0x44c] sm:$0xf0]  ;;  %v5367_v17 = vld [vmem:[#allocation5 + $0x30] sm:$0xf0] }
  0x7c   : > { %2048 = vmatpush.bf16.msrb.mxu3 %v5418_v14  ;;  %1916 = vmatpush.bf16.msrb.mxu0 %v5926_v23  ;;  %9302 = vst [vmem:[#allocation22_spill] sm:$0xff] %v7829_v49  ;;  %v5894_v59 = vor.u32 %v6940_v57, %v5893_v56  ;;  %v6021_v61 = vld [vmem:[#allocation5 + $0x540] sm:$0xf]  ;;  %v6972_v62 = vld [vmem:[#allocation5 + $0x54c] sm:$0xf0]  ;;  %v5370_v20 = vor.u32 %v6806_v15, %v5367_v17  ;;  %v445_v23 = vld [vmem:[%s7763_s1 + $0x1f8] sm:$0xff] }
  0x7d   : > { %1960 = vmatpush.bf16.msrb.mxu1 %v6054_v26  ;;  %1750 = vmatmul.bf16.gmra.mxu0 %v7809_v27  ;;  %9303 = vst [vmem:[#allocation23_spill] sm:$0xff] %v7831_v50  ;;  %v6022_v0 = vor.u32 %v6972_v62, %v6021_v61  ;;  %v424_v1 = vld [vmem:[%s7763_s1 + $0x150] sm:$0xff]  ;;  %v426_v5 = vld [vmem:[%s7763_s1 + $0x160] sm:$0xff]  ;;  %v459_v56 = vld [vmem:[%s7763_s1 + $0x268] sm:$0xff] }
  0x7e   : > { %1838 = vmatmul.bf16.gmra.mxu2 %v7813_v29  ;;  %v432_v4 = vld [vmem:[%s7763_s1 + $0x190] sm:$0xff]  ;;  %v434_v8 = vld [vmem:[%s7763_s1 + $0x1a0] sm:$0xff]  ;;  %v7849_v9 = vpack.c.bf16 %v431_v2, %v424_v1  ;;  %v7853_v11 = vpack.c.bf16 %v433_v6, %v426_v5  ;;  %v453_v57 = vld [vmem:[%s7763_s1 + $0x238] sm:$0xff] }
  0x7f   : > { %1794 = vmatmul.bf16.gmra.mxu1 %v7811_v28  ;;  %v7851_v10 = vpack.c.bf16 %v432_v4, %v425_v3  ;;  %v7855_v12 = vpack.c.bf16 %v434_v8, %v427_v7  ;;  %v5877_v13 = vld [vmem:[#allocation5 + $0x420] sm:$0xf]  ;;  %v6936_v14 = vld [vmem:[#allocation5 + $0x42c] sm:$0xf0]  ;;  %v6802_v40 = vld [vmem:[#allocation5 + $0x4] sm:$0xf] }
  0x80   : > { %1917 = vmatpush.bf16.msrb.mxu0 %v5910_v34  ;;  %2049 = vmatpush.bf16.msrb.mxu3 %v5402_v38  ;;  %9304 = vst [vmem:[#allocation24_spill] sm:$0xff] %v7849_v9  ;;  %v5878_v16 = vor.u32 %v6936_v14, %v5877_v13  ;;  %v6005_v18 = vld [vmem:[#allocation5 + $0x520] sm:$0xf]  ;;  %v6968_v19 = vld [vmem:[#allocation5 + $0x52c] sm:$0xf0]  ;;  %v461_v60 = vld [vmem:[%s7763_s1 + $0x278] sm:$0xff] }
  0x81   : > { %1882 = vmatmul.bf16.gmra.mxu3 %v7815_v30  ;;  %1961 = vmatpush.bf16.msrb.mxu1 %v6038_v39  ;;  %9305 = vst [vmem:[#allocation25_spill] sm:$0xff] %v7851_v10  ;;  %v6006_v21 = vor.u32 %v6968_v19, %v6005_v18  ;;  %v438_v22 = vld [vmem:[%s7763_s1 + $0x1c0] sm:$0xff]  ;;  %v440_v26 = vld [vmem:[%s7763_s1 + $0x1d0] sm:$0xff]  ;;  %v455_v61 = vld [vmem:[%s7763_s1 + $0x248] sm:$0xff] }
  0x82   : > { %v446_v25 = vld [vmem:[%s7763_s1 + $0x200] sm:$0xff]  ;;  %v448_v33 = vld [vmem:[%s7763_s1 + $0x210] sm:$0xff]  ;;  %v7869_v34 = vpack.c.bf16 %v445_v23, %v438_v22  ;;  %v7873_v36 = vpack.c.bf16 %v447_v31, %v440_v26 }
  0x83   : > { %v7871_v35 = vpack.c.bf16 %v446_v25, %v439_v24  ;;  %v7875_v37 = vpack.c.bf16 %v448_v33, %v441_v32  ;;  %v5861_v38 = vld [vmem:[#allocation5 + $0x400] sm:$0xf]  ;;  %v6932_v39 = vld [vmem:[#allocation5 + $0x40c] sm:$0xf0]  ;;  %v5351_v42 = vld [vmem:[#allocation5 + $0x10] sm:$0xf0] }
  0x84   : > { %1918 = vmatpush.bf16.msrb.mxu0 %v5894_v59  ;;  %2050 = vmatpush.bf16.msrb.mxu3 %v5386_v63  ;;  %9306 = vst [vmem:[#allocation26_spill] sm:$0xff] %v7869_v34  ;;  %v5862_v41 = vor.u32 %v6932_v39, %v5861_v38  ;;  %v5989_v43 = vld [vmem:[#allocation5 + $0x500] sm:$0xf]  ;;  %v6964_v44 = vld [vmem:[#allocation5 + $0x50c] sm:$0xf0]  ;;  %v5354_v45 = vor.u32 %v6802_v40, %v5351_v42  ;;  %v475_v24 = vld [vmem:[%s7763_s1 + $0x2e8] sm:$0xff] }
  0x85   : > { %1962 = vmatpush.bf16.msrb.mxu1 %v6022_v0  ;;  %9307 = vst [vmem:[#allocation27_spill] sm:$0xff] %v7871_v35  ;;  %v5990_v46 = vor.u32 %v6964_v44, %v5989_v43  ;;  %v452_v48 = vld [vmem:[%s7763_s1 + $0x230] sm:$0xff]  ;;  %v454_v59 = vld [vmem:[%s7763_s1 + $0x240] sm:$0xff]  ;;  %v469_v25 = vld [vmem:[%s7763_s1 + $0x2b8] sm:$0xff] }
  0x86   : > { %v460_v58 = vld [vmem:[%s7763_s1 + $0x270] sm:$0xff]  ;;  %v462_v62 = vld [vmem:[%s7763_s1 + $0x280] sm:$0xff]  ;;  %v7889_v63 = vpack.c.bf16 %v459_v56, %v452_v48  ;;  %v7893_v1 = vpack.c.bf16 %v461_v60, %v454_v59  ;;  %v393_v60 = vld [vmem:[%s7763_s1 + $0x58] sm:$0xff] }
  0x87   : > { %v7891_v0 = vpack.c.bf16 %v460_v58, %v453_v57  ;;  %v7895_v2 = vpack.c.bf16 %v462_v62, %v455_v61  ;;  %v6926_v3 = vld [vmem:[#allocation5 + $0x3e4] sm:$0xf]  ;;  %v5847_v4 = vld [vmem:[#allocation5 + $0x3f0] sm:$0xf0]  ;;  %v387_v61 = vld [vmem:[%s7763_s1 + $0x28] sm:$0xff] }
  0x88   : > { %1919 = vmatpush.bf16.msrb.mxu0 %v5878_v16  ;;  %2051 = vmatpush.bf16.msrb.mxu3 %v5370_v20  ;;  %9308 = vst [vmem:[#allocation28_spill] sm:$0xff] %v7889_v63  ;;  %v6862_v5 = vld [vmem:[#allocation5 + $0x1e4] sm:$0xf]  ;;  %v5850_v6 = vor.u32 %v6926_v3, %v5847_v4  ;;  %v5591_v7 = vld [vmem:[#allocation5 + $0x1f0] sm:$0xf0]  ;;  %v473_v20 = vld [vmem:[%s7763_s1 + $0x2d8] sm:$0xff] }
  0x89   : > { %1963 = vmatpush.bf16.msrb.mxu1 %v6006_v21  ;;  %9309 = vst [vmem:[#allocation29_spill] sm:$0xff] %v7891_v0  ;;  %v6958_v8 = vld [vmem:[#allocation5 + $0x4e4] sm:$0xf]  ;;  %v5975_v13 = vld [vmem:[#allocation5 + $0x4f0] sm:$0xf0]  ;;  %v5594_v14 = vor.u32 %v6862_v5, %v5591_v7  ;;  %v467_v21 = vld [vmem:[%s7763_s1 + $0x2a8] sm:$0xff] }
  0x8a   : > { %v5978_v15 = vor.u32 %v6958_v8, %v5975_v13  ;;  %v6894_v16 = vld [vmem:[#allocation5 + $0x2e4] sm:$0xf]  ;;  %v5719_v17 = vld [vmem:[#allocation5 + $0x2f0] sm:$0xf0]  ;;  %2177 = vmatpush.bf16.msra.mxu2 %v5850_v6  ;;  %v395_v4 = vld [vmem:[%s7763_s1 + $0x68] sm:$0xff] }
  0x8b   : > { %v5722_v18 = vor.u32 %v6894_v16, %v5719_v17  ;;  %v466_v19 = vld [vmem:[%s7763_s1 + $0x2a0] sm:$0xff]  ;;  %v468_v23 = vld [vmem:[%s7763_s1 + $0x2b0] sm:$0xff] }
  0x8c   : > { %1920 = vmatpush.bf16.msrb.mxu0 %v5862_v41  ;;  %2052 = vmatpush.bf16.msrb.mxu3 %v5354_v45  ;;  %v474_v22 = vld [vmem:[%s7763_s1 + $0x2e0] sm:$0xff]  ;;  %v476_v26 = vld [vmem:[%s7763_s1 + $0x2f0] sm:$0xff]  ;;  %v7909_v31 = vpack.c.bf16 %v473_v20, %v466_v19  ;;  %v7913_v33 = vpack.c.bf16 %v475_v24, %v468_v23 }
  0x8d   : > { %1755 = vmatmul.bf16.gmra.mxu0 %v7829_v49  ;;  %1964 = vmatpush.bf16.msrb.mxu1 %v5990_v46  ;;  %v7911_v32 = vpack.c.bf16 %v474_v22, %v467_v21  ;;  %v7915_v38 = vpack.c.bf16 %v476_v26, %v469_v25  ;;  %v6922_v39 = vld [vmem:[#allocation5 + $0x3c4] sm:$0xf]  ;;  %v5831_v40 = vld [vmem:[#allocation5 + $0x3d0] sm:$0xf0]  ;;  %v725_v24 = vld [vmem:[#allocation7] sm:$0xf] }
  0x8e   : > { %1843 = vmatmul.bf16.gmra.mxu2 %v7833_v53  ;;  %9310 = vst [vmem:[#allocation30_spill] sm:$0xff] %v7909_v31  ;;  %v5834_v41 = vor.u32 %v6922_v39, %v5831_v40  ;;  %v6858_v42 = vld [vmem:[#allocation5 + $0x1c4] sm:$0xf]  ;;  %v5575_v43 = vld [vmem:[#allocation5 + $0x1d0] sm:$0xf0]  ;;  %v407_v40 = vld [vmem:[%s7763_s1 + $0xc8] sm:$0xff] }
  0x8f   : > { %1799 = vmatmul.bf16.gmra.mxu1 %v7831_v50  ;;  %9311 = vst [vmem:[#allocation31_spill] sm:$0xff] %v7911_v32  ;;  %v6954_v44 = vld [vmem:[#allocation5 + $0x4c4] sm:$0xf]  ;;  %v5578_v45 = vor.u32 %v6858_v42, %v5575_v43  ;;  %v5959_v46 = vld [vmem:[#allocation5 + $0x4d0] sm:$0xf0]  ;;  %v7941_v43 = vperm.slane %v725_v24, 0 }
  0x90   : > { %2089 = vmatpush.bf16.msra.mxu0 %v5594_v14  ;;  %2221 = vmatpush.bf16.msra.mxu3 %v5978_v15  ;;  %v6890_v48 = vld [vmem:[#allocation5 + $0x2c4] sm:$0xf]  ;;  %v5703_v56 = vld [vmem:[#allocation5 + $0x2d0] sm:$0xf0]  ;;  %v5962_v57 = vor.u32 %v6954_v44, %v5959_v46  ;;  %v409_v46 = vld [vmem:[%s7763_s1 + $0xd8] sm:$0xff] }
  0x91   : > { %1887 = vmatmul.bf16.gmra.mxu3 %v7835_v54  ;;  %2133 = vmatpush.bf16.msra.mxu1 %v5722_v18  ;;  %v5706_v58 = vor.u32 %v6890_v48, %v5703_v56  ;;  %v386_v59 = vld [vmem:[%s7763_s1 + $0x20] sm:$0xff]  ;;  %v388_v3 = vld [vmem:[%s7763_s1 + $0x30] sm:$0xff] }
  0x92   : > { %2178 = vmatpush.bf16.msra.mxu2 %v5834_v41  ;;  %v394_v62 = vld [vmem:[%s7763_s1 + $0x60] sm:$0xff]  ;;  %v7927_v5 = vpack.c.bf16 %v393_v60, %v386_v59  ;;  %v7931_v7 = vpack.c.bf16 %v395_v4, %v388_v3  ;;  %v400_v39 = vld [vmem:[%s7763_s1 + $0x90] sm:$0xff]  ;;  %v401_v41 = vld [vmem:[%s7763_s1 + $0x98] sm:$0xff] }
  0x93   : > { %v7929_v6 = vpack.c.bf16 %v394_v62, %v387_v61  ;;  %v6918_v8 = vld [vmem:[#allocation5 + $0x3a4] sm:$0xf]  ;;  %v5815_v13 = vld [vmem:[#allocation5 + $0x3b0] sm:$0xf0]  ;;  %v7946_v48 = vpack.c.bf16 %v407_v40, %v400_v39  ;;  %v415_v40 = vld [vmem:[%s7763_s1 + $0x108] sm:$0xff] }
  0x94   : > { %2090 = vmatpush.bf16.msra.mxu0 %v5578_v45  ;;  %2222 = vmatpush.bf16.msra.mxu3 %v5962_v57  ;;  %9312 = vst [vmem:[#allocation32_spill] sm:$0xff] %v7927_v5  ;;  %v5818_v14 = vor.u32 %v6918_v8, %v5815_v13  ;;  %v6854_v15 = vld [vmem:[#allocation5 + $0x1a4] sm:$0xf]  ;;  %v5559_v16 = vld [vmem:[#allocation5 + $0x1b0] sm:$0xf0] }
  0x95   : > { %2134 = vmatpush.bf16.msra.mxu1 %v5706_v58  ;;  %9313 = vst [vmem:[#allocation33_spill] sm:$0xff] %v7929_v6  ;;  %v6950_v17 = vld [vmem:[#allocation5 + $0x4a4] sm:$0xf]  ;;  %v5562_v18 = vor.u32 %v6854_v15, %v5559_v16  ;;  %v5943_v19 = vld [vmem:[#allocation5 + $0x4b0] sm:$0xf0] }
  0x96   : > { %2179 = vmatpush.bf16.msra.mxu2 %v5818_v14  ;;  %v5946_v20 = vor.u32 %v6950_v17, %v5943_v19  ;;  %v6886_v21 = vld [vmem:[#allocation5 + $0x2a4] sm:$0xf]  ;;  %v5687_v22 = vld [vmem:[#allocation5 + $0x2b0] sm:$0xf0] }
  0x97   : > { %v5690_v23 = vor.u32 %v6886_v21, %v5687_v22  ;;  %v6914_v25 = vld [vmem:[#allocation5 + $0x384] sm:$0xf]  ;;  %v5799_v26 = vld [vmem:[#allocation5 + $0x390] sm:$0xf0] }
  0x98   : > { %2091 = vmatpush.bf16.msra.mxu0 %v5562_v18  ;;  %2223 = vmatpush.bf16.msra.mxu3 %v5946_v20  ;;  %v5802_v42 = vor.u32 %v6914_v25, %v5799_v26  ;;  %v408_v44 = vld [vmem:[%s7763_s1 + $0xd0] sm:$0xff]  ;;  %v402_v45 = vld [vmem:[%s7763_s1 + $0xa0] sm:$0xff]  ;;  %v421_v26 = vld [vmem:[%s7763_s1 + $0x138] sm:$0xff] }
  0x99   : > { %2135 = vmatpush.bf16.msra.mxu1 %v5690_v23  ;;  %v7948_v57 = vpack.c.bf16 %v408_v44, %v401_v41  ;;  %v7950_v58 = vpack.c.bf16 %v409_v46, %v402_v45  ;;  %v6850_v61 = vld [vmem:[#allocation5 + $0x184] sm:$0xf]  ;;  %v5543_v62 = vld [vmem:[#allocation5 + $0x190] sm:$0xf0] }
  0x9a   : > { %2180 = vmatpush.bf16.msra.mxu2 %v5802_v42  ;;  %v6946_v3 = vld [vmem:[#allocation5 + $0x484] sm:$0xf]  ;;  %v5546_v8 = vor.u32 %v6850_v61, %v5543_v62  ;;  %v5927_v13 = vld [vmem:[#allocation5 + $0x490] sm:$0xf0]  ;;  %v423_v62 = vld [vmem:[%s7763_s1 + $0x148] sm:$0xff] }
  0x9b   : > { %9314 = vst [vmem:[#allocation34_spill] sm:$0xff] %v7950_v58  ;;  %v6882_v14 = vld [vmem:[#allocation5 + $0x284] sm:$0xf]  ;;  %v5671_v15 = vld [vmem:[#allocation5 + $0x290] sm:$0xf0]  ;;  %v5930_v16 = vor.u32 %v6946_v3, %v5927_v13 }
  0x9c   : > { %v5674_v17 = vor.u32 %v6882_v14, %v5671_v15  ;;  %2092 = vmatpush.bf16.msra.mxu0 %v5546_v8  ;;  %v414_v25 = vld [vmem:[%s7763_s1 + $0x100] sm:$0xff]  ;;  %v416_v61 = vld [vmem:[%s7763_s1 + $0x110] sm:$0xff] }
  0x9d   : > { %1760 = vmatmul.bf16.gmra.mxu0 %v7849_v9  ;;  %2224 = vmatpush.bf16.msra.mxu3 %v5930_v16  ;;  %v6910_v41 = vld [vmem:[#allocation5 + $0x364] sm:$0xf]  ;;  %v5783_v42 = vld [vmem:[#allocation5 + $0x370] sm:$0xf0]  ;;  %v7967_v13 = vpack.c.bf16 %v421_v26, %v414_v25 }
  0x9e   : > { %1848 = vmatmul.bf16.gmra.mxu2 %v7853_v11  ;;  %2136 = vmatpush.bf16.msra.mxu1 %v5674_v17  ;;  %v6846_v44 = vld [vmem:[#allocation5 + $0x164] sm:$0xf]  ;;  %v5786_v45 = vor.u32 %v6910_v41, %v5783_v42  ;;  %v5527_v46 = vld [vmem:[#allocation5 + $0x170] sm:$0xf0] }
  0x9f   : > { %1804 = vmatmul.bf16.gmra.mxu1 %v7851_v10  ;;  %v5530_v3 = vor.u32 %v6846_v44, %v5527_v46 }
  0xa0   : > { %2181 = vmatpush.bf16.msra.mxu2 %v5786_v45 }
  0xa1   : > { %1892 = vmatmul.bf16.gmra.mxu3 %v7855_v12  ;;  %2093 = vmatpush.bf16.msra.mxu0 %v5530_v3  ;;  %v430_v3 = vld [vmem:[%s7763_s1 + $0x180] sm:$0xff] }
  0xad   : > { %1765 = vmatmul.bf16.gmra.mxu0 %v7869_v34 }
  0xae   : > { %1853 = vmatmul.bf16.gmra.mxu2 %v7873_v36 }
  0xaf   : > { %1809 = vmatmul.bf16.gmra.mxu1 %v7871_v35 }
  0xb1   : > { %1897 = vmatmul.bf16.gmra.mxu3 %v7875_v37 }
  0xbd   : > { %1770 = vmatmul.bf16.gmra.mxu0 %v7889_v63 }
  0xbe   : > { %1858 = vmatmul.bf16.gmra.mxu2 %v7893_v1 }
  0xbf   : > { %1814 = vmatmul.bf16.gmra.mxu1 %v7891_v0 }
  0xc1   : > { %1902 = vmatmul.bf16.gmra.mxu3 %v7895_v2 }
  0xcd   : > { %1775 = vmatmul.bf16.gmra.mxu0 %v7909_v31 }
  0xce   : > { %1863 = vmatmul.bf16.gmra.mxu2 %v7913_v33 }
  0xcf   : > { %1819 = vmatmul.bf16.gmra.mxu1 %v7911_v32 }
  0xd1   : > { %1907 = vmatmul.bf16.gmra.mxu3 %v7915_v38 }
  0xdd   : > { %1921 = vmatmul.bf16.vlgmr.msrb.gmra.mxu0 %v7927_v5 }
  0xde   : > { %6131 = vmatmul.msk.bf16.vlgmr.msrb.gmra.mxu2 %vm1715_vm0, %v7931_v7 }
  0xdf   : > { %1965 = vmatmul.bf16.vlgmr.msrb.gmra.mxu1 %v7929_v6 }
  0xe1   : > { %2053 = vmatmul.bf16.vlgmr.msrb.gmra.mxu3 %v7789_v47 }
  0xea   : > { %v1746_v56 = vpop.f32.mrf.mxu0 }
  0xeb   : > { %v1747_v59 = vadd.f32 %v1746_v56, %v7941_v43  ;;  %v6942_v56 = vld [vmem:[#allocation5 + $0x464] sm:$0xf] }
  0xec   : > { %v1790_v60 = vpop.f32.mrf.mxu1 }
  0xed   : > { %v1791_v4 = vadd.f32 %v1790_v60, %v1747_v59  ;;  %1926 = vmatmul.bf16.gmra.mxu0 %v7946_v48  ;;  %v5911_v59 = vld [vmem:[#allocation5 + $0x470] sm:$0xf0] }
  0xee   : > { %6132 = vmatmul.msk.bf16.gmra.mxu2 %vm1715_vm0, %v7950_v58  ;;  %v422_v60 = vld [vmem:[%s7763_s1 + $0x140] sm:$0xff] }
  0xef   : > { %1970 = vmatmul.bf16.gmra.mxu1 %v7948_v57  ;;  %v7969_v17 = vpack.c.bf16 %v422_v60, %v415_v40 }
  0xf1   : > { %2058 = vmatmul.bf16.gmra.mxu3 %v7809_v27  ;;  %v1834_v18 = vpop.f32.mrf.mxu2  ;;  %9315 = vst [vmem:[#allocation35_spill] sm:$0xff] %v7969_v17 }
  0xf2   : > { %v1835_v19 = vadd.f32 %v1834_v18, %v1791_v4  ;;  %v1748_v21 = vpop.f32.mrf.mxu0  ;;  %v5914_v4 = vor.u32 %v6942_v56, %v5911_v59  ;;  %v7971_v18 = vpack.c.bf16 %v423_v62, %v416_v61  ;;  %v428_v56 = vld [vmem:[%s7763_s1 + $0x170] sm:$0xff]  ;;  %v435_v59 = vld [vmem:[%s7763_s1 + $0x1a8] sm:$0xff]  ;;  %v429_v61 = vld [vmem:[%s7763_s1 + $0x178] sm:$0xff] }
  0xf3   : > { %v1749_v22 = vadd.f32 %v1748_v21, %v7941_v43  ;;  %v436_v62 = vld [vmem:[%s7763_s1 + $0x1b0] sm:$0xff] }
  0xf4   : > { %v1878_v20 = vpop.f32.mrf.mxu3  ;;  %v1792_v23 = vpop.f32.mrf.mxu1  ;;  %2225 = vmatpush.bf16.msra.mxu3 %v5914_v4  ;;  %9316 = vst [vmem:[#allocation36_spill] sm:$0xff] %v7971_v18  ;;  %v6906_v4 = vld [vmem:[#allocation5 + $0x344] sm:$0xf] }
  0xf5   : > { %v7959_v24 = vadd.f32 %v1878_v20, %v1835_v19  ;;  %v1793_v39 = vadd.f32 %v1792_v23, %v1749_v22  ;;  %v6878_v22 = vld [vmem:[#allocation5 + $0x264] sm:$0xf]  ;;  %v5655_v23 = vld [vmem:[#allocation5 + $0x270] sm:$0xf0] }
  0xf6   : > { %v5658_v26 = vor.u32 %v6878_v22, %v5655_v23  ;;  %v437_v22 = vld [vmem:[%s7763_s1 + $0x1b8] sm:$0xff] }
  0xf8   : > { %2137 = vmatpush.bf16.msra.mxu1 %v5658_v26  ;;  %v6874_v26 = vld [vmem:[#allocation5 + $0x244] sm:$0xf] }
  0xf9   : > { %v1836_v8 = vpop.f32.mrf.mxu2 }
  0xfa   : > { %v1837_v14 = vadd.f32 %v1836_v8, %v1793_v39  ;;  %v1751_v16 = vpop.f32.mrf.mxu0  ;;  %v5767_v8 = vld [vmem:[#allocation5 + $0x350] sm:$0xf0] }
  0xfb   : > { %v1752_v19 = vadd.f32 %v1751_v16, %v7941_v43  ;;  %v5511_v16 = vld [vmem:[#allocation5 + $0x150] sm:$0xf0] }
  0xfc   : > { %v1880_v15 = vpop.f32.mrf.mxu3  ;;  %v1795_v20 = vpop.f32.mrf.mxu1 }
  0xfd   : > { %v7974_v21 = vadd.f32 %v1880_v15, %v1837_v14  ;;  %v1796_v25 = vadd.f32 %v1795_v20, %v1752_v19  ;;  %1931 = vmatmul.bf16.gmra.mxu0 %v7967_v13  ;;  %v6842_v14 = vld [vmem:[#allocation5 + $0x144] sm:$0xf]  ;;  %v5770_v15 = vor.u32 %v6906_v4, %v5767_v8  ;;  %v5895_v20 = vld [vmem:[#allocation5 + $0x450] sm:$0xf0]  ;;  %v7994_v4 = vpack.c.bf16 %v437_v22, %v430_v3 }
  0xfe   : > { %6133 = vmatmul.msk.bf16.gmra.mxu2 %vm1715_vm0, %v7971_v18  ;;  %v6938_v19 = vld [vmem:[#allocation5 + $0x444] sm:$0xf]  ;;  %v5514_v23 = vor.u32 %v6842_v14, %v5511_v16  ;;  %v7992_v18 = vpack.c.bf16 %v436_v62, %v429_v61 }
  0xff   : > { %1975 = vmatmul.bf16.gmra.mxu1 %v7969_v17  ;;  %2182 = vmatpush.bf16.msra.mxu2 %v5770_v15  ;;  %9318 = vst [vmem:[#allocation38_spill] sm:$0xff] %v7994_v4  ;;  %v6902_v22 = vld [vmem:[#allocation5 + $0x324] sm:$0xf] }
 0x100   : > { %2094 = vmatpush.bf16.msra.mxu0 %v5514_v23  ;;  %9317 = vst [vmem:[#allocation37_spill] sm:$0xff] %v7992_v18  ;;  %v5751_v23 = vld [vmem:[#allocation5 + $0x330] sm:$0xf0] }
 0x101   : > { %2063 = vmatmul.bf16.gmra.mxu3 %v7829_v49  ;;  %v1839_v39 = vpop.f32.mrf.mxu2 }
 0x102   : > { %v1840_v40 = vadd.f32 %v1839_v39, %v1796_v25  ;;  %v1753_v42 = vpop.f32.mrf.mxu0  ;;  %v5898_v25 = vor.u32 %v6938_v19, %v5895_v20  ;;  %v5639_v39 = vld [vmem:[#allocation5 + $0x250] sm:$0xf0]  ;;  %v449_v20 = vld [vmem:[%s7763_s1 + $0x218] sm:$0xff] }
 0x103   : > { %v1754_v44 = vadd.f32 %v1753_v42, %v7941_v43  ;;  %v7990_v42 = vpack.c.bf16 %v435_v59, %v428_v56  ;;  %v442_v19 = vld [vmem:[%s7763_s1 + $0x1e0] sm:$0xff] }
 0x104   : > { %v1883_v41 = vpop.f32.mrf.mxu3  ;;  %v1797_v45 = vpop.f32.mrf.mxu1  ;;  %2226 = vmatpush.bf16.msra.mxu3 %v5898_v25 }
 0x105   : > { %v7982_v46 = vadd.f32 %v1883_v41, %v1840_v40  ;;  %v1798_v60 = vadd.f32 %v1797_v45, %v1754_v44  ;;  %v5642_v40 = vor.u32 %v6874_v26, %v5639_v39  ;;  %v443_v26 = vld [vmem:[%s7763_s1 + $0x1e8] sm:$0xff]  ;;  %v5754_v39 = vor.u32 %v6902_v22, %v5751_v23 }
 0x107   : > { %2138 = vmatpush.bf16.msra.mxu1 %v5642_v40  ;;  %v6838_v40 = vld [vmem:[#allocation5 + $0x124] sm:$0xf]  ;;  %2183 = vmatpush.bf16.msra.mxu2 %v5754_v39 }
 0x109   : > { %v1841_v41 = vpop.f32.mrf.mxu2 }
 0x10a   : > { %v1842_v44 = vadd.f32 %v1841_v41, %v1798_v60  ;;  %v1756_v49 = vpop.f32.mrf.mxu0  ;;  %v5495_v41 = vld [vmem:[#allocation5 + $0x130] sm:$0xf0] }
 0x10b   : > { %v1757_v8 = vadd.f32 %v1756_v49, %v7941_v43 }
 0x10c   : > { %v1885_v45 = vpop.f32.mrf.mxu3  ;;  %v1800_v14 = vpop.f32.mrf.mxu1 }
 0x10d   : > { %v7997_v15 = vadd.f32 %v1885_v45, %v1842_v44  ;;  %v1801_v16 = vadd.f32 %v1800_v14, %v1757_v8  ;;  %1936 = vmatmul.bf16.gmra.mxu0 %v7990_v42  ;;  %v6934_v44 = vld [vmem:[#allocation5 + $0x424] sm:$0xf]  ;;  %v5498_v45 = vor.u32 %v6838_v40, %v5495_v41  ;;  %v5879_v8 = vld [vmem:[#allocation5 + $0x430] sm:$0xf0] }
 0x10e   : > { %6134 = vmatmul.msk.bf16.gmra.mxu2 %vm1715_vm0, %v7994_v4  ;;  %v6870_v14 = vld [vmem:[#allocation5 + $0x224] sm:$0xf] }
 0x10f   : > { %1980 = vmatmul.bf16.gmra.mxu1 %v7992_v18  ;;  %2095 = vmatpush.bf16.msra.mxu0 %v5498_v45  ;;  %v8013_v18 = vpack.c.bf16 %v449_v20, %v442_v19 }
 0x111   : > { %2068 = vmatmul.bf16.gmra.mxu3 %v7849_v9  ;;  %v1844_v56 = vpop.f32.mrf.mxu2 }
 0x112   : > { %v1845_v59 = vadd.f32 %v1844_v56, %v1801_v16  ;;  %v1758_v61 = vpop.f32.mrf.mxu0  ;;  %v5623_v16 = vld [vmem:[#allocation5 + $0x230] sm:$0xf0] }
 0x113   : > { %v1759_v49 = vadd.f32 %v1758_v61, %v7941_v43  ;;  %v450_v56 = vld [vmem:[%s7763_s1 + $0x220] sm:$0xff]  ;;  %v444_v61 = vld [vmem:[%s7763_s1 + $0x1f0] sm:$0xff]  ;;  %v5626_v9 = vor.u32 %v6870_v14, %v5623_v16 }
 0x114   : > { %v1888_v60 = vpop.f32.mrf.mxu3  ;;  %v1802_v62 = vpop.f32.mrf.mxu1  ;;  %v8015_v23 = vpack.c.bf16 %v450_v56, %v443_v26  ;;  %v6834_v14 = vld [vmem:[#allocation5 + $0x104] sm:$0xf]  ;;  %v5479_v16 = vld [vmem:[#allocation5 + $0x110] sm:$0xf0] }
 0x115   : > { %v8005_v3 = vadd.f32 %v1888_v60, %v1845_v59  ;;  %v1803_v25 = vadd.f32 %v1802_v62, %v1759_v49  ;;  %v451_v59 = vld [vmem:[%s7763_s1 + $0x228] sm:$0xff]  ;;  %v5882_v60 = vor.u32 %v6934_v44, %v5879_v8  ;;  %2139 = vmatpush.bf16.msra.mxu1 %v5626_v9  ;;  %v6898_v9 = vld [vmem:[#allocation5 + $0x304] sm:$0xf] }
 0x116   : > { %9319 = vst [vmem:[#allocation39_spill] sm:$0xff] %v8015_v23  ;;  %v8017_v40 = vpack.c.bf16 %v451_v59, %v444_v61  ;;  %v6930_v56 = vld [vmem:[#allocation5 + $0x404] sm:$0xf]  ;;  %v5482_v59 = vor.u32 %v6834_v14, %v5479_v16 }
 0x117   : > { %2227 = vmatpush.bf16.msra.mxu3 %v5882_v60  ;;  %v5863_v60 = vld [vmem:[#allocation5 + $0x410] sm:$0xf0] }
 0x118   : > { %9320 = vst [vmem:[#allocation40_spill] sm:$0xff] %v8017_v40  ;;  %2096 = vmatpush.bf16.msra.mxu0 %v5482_v59  ;;  %v6833_v59 = vld [vmem:[#allocation5 + $0xf4] sm:$0xf0] }
 0x119   : > { %v1846_v4 = vpop.f32.mrf.mxu2 }
 0x11a   : > { %v1847_v49 = vadd.f32 %v1846_v4, %v1803_v25  ;;  %v1761_v22 = vpop.f32.mrf.mxu0  ;;  %v5735_v4 = vld [vmem:[#allocation5 + $0x310] sm:$0xf0] }
 0x11b   : > { %v1762_v41 = vadd.f32 %v1761_v22, %v7941_v43  ;;  %v5738_v19 = vor.u32 %v6898_v9, %v5735_v4  ;;  %v456_v22 = vld [vmem:[%s7763_s1 + $0x250] sm:$0xff]  ;;  %v5866_v9 = vor.u32 %v6930_v56, %v5863_v60 }
 0x11c   : > { %v1890_v62 = vpop.f32.mrf.mxu3  ;;  %v1805_v17 = vpop.f32.mrf.mxu1 }
 0x11d   : > { %v8020_v27 = vadd.f32 %v1890_v62, %v1847_v49  ;;  %v1806_v39 = vadd.f32 %v1805_v17, %v1762_v41  ;;  %1941 = vmatmul.bf16.gmra.mxu0 %v8013_v18  ;;  %2184 = vmatpush.bf16.msra.mxu2 %v5738_v19  ;;  %v6866_v49 = vld [vmem:[#allocation5 + $0x204] sm:$0xf]  ;;  %v5607_v62 = vld [vmem:[#allocation5 + $0x210] sm:$0xf0]  ;;  %v463_v41 = vld [vmem:[%s7763_s1 + $0x288] sm:$0xff] }
 0x11e   : > { %6135 = vmatmul.msk.bf16.gmra.mxu2 %vm1715_vm0, %v8017_v40  ;;  %v5610_v4 = vor.u32 %v6866_v49, %v5607_v62  ;;  %v464_v19 = vld [vmem:[%s7763_s1 + $0x290] sm:$0xff]  ;;  %2228 = vmatpush.bf16.msra.mxu3 %v5866_v9  ;;  %v6865_v9 = vld [vmem:[#allocation5 + $0x1f4] sm:$0xf0] }
 0x11f   : > { %1985 = vmatmul.bf16.gmra.mxu1 %v8015_v23  ;;  %v6990_v62 = vld [vmem:[#allocation5 + $0x5e4] sm:$0xf] }
 0x120   : > { %2140 = vmatpush.bf16.msra.mxu1 %v5610_v4 }
 0x121   : > { %2073 = vmatmul.bf16.gmra.mxu3 %v7869_v34  ;;  %v1849_v20 = vpop.f32.mrf.mxu2 }
 0x122   : > { %v1850_v25 = vadd.f32 %v1849_v20, %v1806_v39  ;;  %v1763_v44 = vpop.f32.mrf.mxu0  ;;  %v457_v39 = vld [vmem:[%s7763_s1 + $0x258] sm:$0xff]  ;;  %v458_v20 = vld [vmem:[%s7763_s1 + $0x260] sm:$0xff] }
 0x123   : > { %v1764_v17 = vadd.f32 %v1763_v44, %v7941_v43  ;;  %v465_v44 = vld [vmem:[%s7763_s1 + $0x298] sm:$0xff]  ;;  %v8038_v14 = vpack.c.bf16 %v464_v19, %v457_v39 }
 0x124   : > { %v1893_v26 = vpop.f32.mrf.mxu3  ;;  %v1807_v45 = vpop.f32.mrf.mxu1  ;;  %v8040_v16 = vpack.c.bf16 %v465_v44, %v458_v20  ;;  %v5597_v39 = vld [vmem:[#allocation5 + $0x1e8] sm:$0xf] }
 0x125   : > { %v8028_v8 = vadd.f32 %v1893_v26, %v1850_v25  ;;  %v1808_v61 = vadd.f32 %v1807_v45, %v1764_v17  ;;  %v8036_v26 = vpack.c.bf16 %v463_v41, %v456_v22  ;;  %9322 = vst [vmem:[#allocation42_spill] sm:$0xff] %v8038_v14  ;;  %v6103_v41 = vld [vmem:[#allocation5 + $0x5f0] sm:$0xf0] }
 0x126   : > { %9323 = vst [vmem:[#allocation43_spill] sm:$0xff] %v8040_v16 }
 0x127   : > { %9321 = vst [vmem:[#allocation41_spill] sm:$0xff] %v8036_v26 }
 0x129   : > { %v1851_v25 = vpop.f32.mrf.mxu2 }
 0x12a   : > { %v1852_v34 = vadd.f32 %v1851_v25, %v1808_v61  ;;  %v1766_v45 = vpop.f32.mrf.mxu0  ;;  %v5469_v61 = vld [vmem:[#allocation5 + $0xe8] sm:$0xf] }
 0x12b   : > { %v1767_v40 = vadd.f32 %v1766_v45, %v7941_v43  ;;  %v5470_v22 = vor.u32 %v6833_v59, %v5469_v61  ;;  %v6119_v61 = vld [vmem:[#allocation5 + $0x610] sm:$0xf0] }
 0x12c   : > { %v1895_v17 = vpop.f32.mrf.mxu3  ;;  %v1810_v56 = vpop.f32.mrf.mxu1 }
 0x12d   : > { %v8043_v60 = vadd.f32 %v1895_v17, %v1852_v34  ;;  %v1811_v49 = vadd.f32 %v1810_v56, %v1767_v40  ;;  %1946 = vmatmul.bf16.gmra.mxu0 %v8036_v26  ;;  %v6106_v34 = vor.u32 %v6990_v62, %v6103_v41  ;;  %v5598_v40 = vor.u32 %v6865_v9, %v5597_v39  ;;  %v6994_v56 = vld [vmem:[#allocation5 + $0x604] sm:$0xf]  ;;  %v477_v39 = vld [vmem:[%s7763_s1 + $0x2f8] sm:$0xff] }
 0x12e   : > { %6136 = vmatmul.msk.bf16.gmra.mxu2 %vm1715_vm0, %v8040_v16  ;;  %v6122_v62 = vor.u32 %v6994_v56, %v6119_v61  ;;  %v470_v41 = vld [vmem:[%s7763_s1 + $0x2c0] sm:$0xff]  ;;  %v5453_v61 = vld [vmem:[#allocation5 + $0xc8] sm:$0xf] }
 0x12f   : > { %1990 = vmatmul.bf16.gmra.mxu1 %v8038_v14  ;;  %2353 = vmatpush.bf16.msrb.mxu2 %v5470_v22  ;;  %v478_v9 = vld [vmem:[%s7763_s1 + $0x300] sm:$0xff]  ;;  %v8059_v22 = vpack.c.bf16 %v477_v39, %v470_v41  ;;  %v5581_v41 = vld [vmem:[#allocation5 + $0x1c8] sm:$0xf] }
 0x130   : > { %2265 = vmatpush.bf16.msrb.mxu0 %v6106_v34  ;;  %2397 = vmatpush.bf16.msrb.mxu3 %v5598_v40 }
 0x131   : > { %2078 = vmatmul.bf16.gmra.mxu3 %v7889_v63  ;;  %v1854_v4 = vpop.f32.mrf.mxu2  ;;  %v479_v63 = vld [vmem:[%s7763_s1 + $0x308] sm:$0xff]  ;;  %2316 = vmatpush.bf16.msrb.mxu1 %v6122_v62 }
 0x132   : > { %v1855_v19 = vadd.f32 %v1854_v4, %v1811_v49  ;;  %v1768_v44 = vpop.f32.mrf.mxu0  ;;  %v471_v49 = vld [vmem:[%s7763_s1 + $0x2c8] sm:$0xff]  ;;  %v472_v4 = vld [vmem:[%s7763_s1 + $0x2d0] sm:$0xff] }
 0x133   : > { %v1769_v25 = vadd.f32 %v1768_v44, %v7941_v43  ;;  %v8061_v40 = vpack.c.bf16 %v478_v9, %v471_v49  ;;  %v6829_v62 = vld [vmem:[#allocation5 + $0xd4] sm:$0xf0] }
 0x134   : > { %v1898_v20 = vpop.f32.mrf.mxu3  ;;  %v1812_v17 = vpop.f32.mrf.mxu1 }
 0x135   : > { %v8051_v45 = vadd.f32 %v1898_v20, %v1855_v19  ;;  %v1813_v59 = vadd.f32 %v1812_v17, %v1769_v25  ;;  %9324 = vst [vmem:[#allocation44_spill] sm:$0xff] %v8061_v40  ;;  %v8063_v19 = vpack.c.bf16 %v479_v63, %v472_v4  ;;  %v6986_v63 = vld [vmem:[#allocation5 + $0x5c4] sm:$0xf] }
 0x137   : > { %9325 = vst [vmem:[#allocation45_spill] sm:$0xff] %v8063_v19 }
 0x139   : > { %v1856_v16 = vpop.f32.mrf.mxu2 }
 0x13a   : > { %v1857_v44 = vadd.f32 %v1856_v16, %v1813_v59  ;;  %v1771_v34 = vpop.f32.mrf.mxu0  ;;  %v5454_v16 = vor.u32 %v6829_v62, %v5453_v61  ;;  %v6087_v59 = vld [vmem:[#allocation5 + $0x5d0] sm:$0xf0] }
 0x13b   : > { %v1772_v20 = vadd.f32 %v1771_v34, %v7941_v43  ;;  %v6090_v39 = vor.u32 %v6986_v63, %v6087_v59 }
 0x13c   : > { %v1900_v14 = vpop.f32.mrf.mxu3  ;;  %v1815_v25 = vpop.f32.mrf.mxu1  ;;  %2354 = vmatpush.bf16.msrb.mxu2 %v5454_v16 }
 0x13d   : > { %v8066_v17 = vadd.f32 %v1900_v14, %v1857_v44  ;;  %v1816_v56 = vadd.f32 %v1815_v25, %v1772_v20  ;;  %1951 = vmatmul.bf16.gmra.mxu0 %v8059_v22  ;;  %v6861_v14 = vld [vmem:[#allocation5 + $0x1d4] sm:$0xf0] }
 0x13e   : > { %6137 = vmatmul.msk.bf16.gmra.mxu2 %vm1715_vm0, %v8063_v19  ;;  %v5582_v9 = vor.u32 %v6861_v14, %v5581_v41  ;;  %2266 = vmatpush.bf16.msrb.mxu0 %v6090_v39  ;;  %v5437_v41 = vld [vmem:[#allocation5 + $0xa8] sm:$0xf]  ;;  %v6825_v39 = vld [vmem:[#allocation5 + $0xb4] sm:$0xf0]  ;;  %v6982_v14 = vld [vmem:[#allocation5 + $0x5a4] sm:$0xf] }
 0x13f   : > { %1995 = vmatmul.bf16.gmra.mxu1 %v8061_v40 }
 0x140   : > { %2398 = vmatpush.bf16.msrb.mxu3 %v5582_v9  ;;  %v6071_v9 = vld [vmem:[#allocation5 + $0x5b0] sm:$0xf0] }
 0x141   : > { %2083 = vmatmul.bf16.gmra.mxu3 %v7909_v31  ;;  %v1859_v49 = vpop.f32.mrf.mxu2 }
 0x142   : > { %v1860_v4 = vadd.f32 %v1859_v49, %v1816_v56  ;;  %v1773_v34 = vpop.f32.mrf.mxu0  ;;  %v5438_v49 = vor.u32 %v6825_v39, %v5437_v41  ;;  %v6821_v41 = vld [vmem:[#allocation5 + $0x94] sm:$0xf0] }
 0x143   : > { %v1774_v20 = vadd.f32 %v1773_v34, %v7941_v43 }
 0x144   : > { %v1903_v44 = vpop.f32.mrf.mxu3  ;;  %v1817_v25 = vpop.f32.mrf.mxu1  ;;  %2355 = vmatpush.bf16.msrb.mxu2 %v5438_v49 }
 0x145   : > { %v8074_v19 = vadd.f32 %v1903_v44, %v1860_v4  ;;  %v1818_v61 = vadd.f32 %v1817_v25, %v1774_v20  ;;  %v5565_v4 = vld [vmem:[#allocation5 + $0x1a8] sm:$0xf]  ;;  %v6857_v44 = vld [vmem:[#allocation5 + $0x1b4] sm:$0xf0] }
 0x146   : > { %v5566_v34 = vor.u32 %v6857_v44, %v5565_v4 }
 0x148   : > { %2399 = vmatpush.bf16.msrb.mxu3 %v5566_v34  ;;  %v6055_v34 = vld [vmem:[#allocation5 + $0x590] sm:$0xf0] }
 0x149   : > { %v1861_v62 = vpop.f32.mrf.mxu2 }
 0x14a   : > { %v1862_v31 = vadd.f32 %v1861_v62, %v1818_v61  ;;  %v1776_v23 = vpop.f32.mrf.mxu0 }
 0x14b   : > { %v1777_v16 = vadd.f32 %v1776_v23, %v7941_v43  ;;  %v6074_v23 = vor.u32 %v6982_v14, %v6071_v9 }
 0x14c   : > { %v1905_v40 = vpop.f32.mrf.mxu3  ;;  %v1820_v63 = vpop.f32.mrf.mxu1 }
 0x14d   : > { %v8077_v59 = vadd.f32 %v1905_v40, %v1862_v31  ;;  %v1821_v56 = vadd.f32 %v1820_v63, %v1777_v16  ;;  %2097 = vmatmul.bf16.vlgmr.msra.gmra.mxu0 %v7791_v51 }
 0x14e   : > { %2185 = vmatmul.bf16.vlgmr.msra.gmra.mxu2 %v7795_v55  ;;  %2267 = vmatpush.bf16.msrb.mxu0 %v6074_v23 }
 0x14f   : > { %2141 = vmatmul.bf16.vlgmr.msra.gmra.mxu1 %v7793_v52 }
 0x151   : > { %2229 = vmatmul.bf16.vlgmr.msra.gmra.mxu3 %v7927_v5  ;;  %v1864_v31 = vpop.f32.mrf.mxu2  ;;  %v5421_v5 = vld [vmem:[#allocation5 + $0x88] sm:$0xf] }
 0x152   : > { %v1865_v40 = vadd.f32 %v1864_v31, %v1821_v56  ;;  %v1778_v25 = vpop.f32.mrf.mxu0  ;;  %v5422_v39 = vor.u32 %v6821_v41, %v5421_v5  ;;  %v5549_v5 = vld [vmem:[#allocation5 + $0x188] sm:$0xf]  ;;  %v6853_v31 = vld [vmem:[#allocation5 + $0x194] sm:$0xf0] }
 0x153   : > { %v1779_v61 = vadd.f32 %v1778_v25, %v7941_v43  ;;  %v6978_v43 = vld [vmem:[#allocation5 + $0x584] sm:$0xf] }
 0x154   : > { %v1908_v20 = vpop.f32.mrf.mxu3  ;;  %v1822_v62 = vpop.f32.mrf.mxu1  ;;  %2356 = vmatpush.bf16.msrb.mxu2 %v5422_v39  ;;  %v5405_v39 = vld [vmem:[#allocation5 + $0x68] sm:$0xf] }
 0x155   : > { %v8084_v16 = vadd.f32 %v1908_v20, %v1865_v40  ;;  %v1823_v63 = vadd.f32 %v1822_v62, %v1779_v61  ;;  %v5550_v40 = vor.u32 %v6853_v31, %v5549_v5 }
 0x157   : > { %2400 = vmatpush.bf16.msrb.mxu3 %v5550_v40 }
 0x159   : > { %v1866_v55 = vpop.f32.mrf.mxu2 }
 0x15a   : > { %v1867_v14 = vadd.f32 %v1866_v55, %v1823_v63  ;;  %v1922_v4 = vpop.f32.mrf.mxu0  ;;  %v6058_v55 = vor.u32 %v6978_v43, %v6055_v34  ;;  %v6849_v43 = vld [vmem:[#allocation5 + $0x174] sm:$0xf0] }
 0x15b   : > { %v1923_v56 = vadd.f32 %v1922_v4, %v7959_v24 }
 0x15c   : > { %v1910_v9 = vpop.f32.mrf.mxu3  ;;  %v1966_v49 = vpop.f32.mrf.mxu1  ;;  %2268 = vmatpush.bf16.msrb.mxu0 %v6058_v55 }
 0x15d   : > { %v8087_v44 = vadd.f32 %v1910_v9, %v1867_v14  ;;  %v1967_v23 = vadd.f32 %v1966_v49, %v1923_v56  ;;  %2102 = vmatmul.bf16.gmra.mxu0 %v7811_v28  ;;  %v6817_v14 = vld [vmem:[#allocation5 + $0x74] sm:$0xf0]  ;;  %v6974_v9 = vld [vmem:[#allocation5 + $0x564] sm:$0xf]  ;;  %v6039_v56 = vld [vmem:[#allocation5 + $0x570] sm:$0xf0] }
 0x15e   : > { %2190 = vmatmul.bf16.gmra.mxu2 %v7815_v30  ;;  %v5406_v4 = vor.u32 %v6817_v14, %v5405_v39  ;;  %v5533_v49 = vld [vmem:[#allocation5 + $0x168] sm:$0xf]  ;;  %v6042_v34 = vor.u32 %v6974_v9, %v6039_v56 }
 0x15f   : > { %2146 = vmatmul.bf16.gmra.mxu1 %v7813_v29  ;;  %v5534_v5 = vor.u32 %v6849_v43, %v5533_v49  ;;  %v5389_v49 = vld [vmem:[#allocation5 + $0x48] sm:$0xf]  ;;  %v6813_v43 = vld [vmem:[#allocation5 + $0x54] sm:$0xf0] }
 0x160   : > { %2357 = vmatpush.bf16.msrb.mxu2 %v5406_v4  ;;  %2269 = vmatpush.bf16.msrb.mxu0 %v6042_v34  ;;  %v6970_v34 = vld [vmem:[#allocation5 + $0x544] sm:$0xf] }
 0x161   : > { %2234 = vmatmul.bf16.gmra.mxu3 %v7946_v48  ;;  %v2010_v20 = vpop.f32.mrf.mxu2 }
 0x162   : > { %v2011_v24 = vadd.f32 %v2010_v20, %v1967_v23  ;;  %v1924_v61 = vpop.f32.mrf.mxu0  ;;  %2401 = vmatpush.bf16.msrb.mxu3 %v5534_v5  ;;  %v5390_v5 = vor.u32 %v6813_v43, %v5389_v49 }
 0x163   : > { %v1925_v62 = vadd.f32 %v1924_v61, %v7974_v21 }
 0x164   : > { %v8093_v25 = vpop.f32.mrf.mxu3  ;;  %v1968_v63 = vpop.f32.mrf.mxu1  ;;  %v2969_v61 = vmax.f32 %v2011_v24, 0.0  ;;  %2358 = vmatpush.bf16.msrb.mxu2 %v5390_v5 }
 0x165   : > { %v1969_v41 = vadd.f32 %v1968_v63, %v1925_v62 }
 0x169   : > { %v2012_v55 = vpop.f32.mrf.mxu2 }
 0x16a   : > { %v2013_v23 = vadd.f32 %v2012_v55, %v1969_v41  ;;  %v1927_v40 = vpop.f32.mrf.mxu0  ;;  %v6023_v55 = vld [vmem:[#allocation5 + $0x550] sm:$0xf0] }
 0x16b   : > { %v1928_v21 = vadd.f32 %v1927_v40, %v7982_v46  ;;  %v6845_v40 = vld [vmem:[#allocation5 + $0x154] sm:$0xf0] }
 0x16c   : > { %v8096_v31 = vpop.f32.mrf.mxu3  ;;  %v1971_v20 = vpop.f32.mrf.mxu1  ;;  %v2973_v62 = vmax.f32 %v2013_v23, 0.0  ;;  %v5517_v23 = vld [vmem:[#allocation5 + $0x148] sm:$0xf] }
 0x16d   : > { %v1972_v63 = vadd.f32 %v1971_v20, %v1928_v21  ;;  %2107 = vmatmul.bf16.gmra.mxu0 %v7831_v50  ;;  %v6026_v21 = vor.u32 %v6970_v34, %v6023_v55  ;;  %v5518_v20 = vor.u32 %v6845_v40, %v5517_v23  ;;  %v5373_v55 = vld [vmem:[#allocation5 + $0x28] sm:$0xf]  ;;  %v6809_v23 = vld [vmem:[#allocation5 + $0x34] sm:$0xf0] }
 0x16e   : > { %v8100_v39 = vpack.c.bf16 %v2973_v62, %v2969_v61  ;;  %2195 = vmatmul.bf16.gmra.mxu2 %v7835_v54 }
 0x16f   : > { %2151 = vmatmul.bf16.gmra.mxu1 %v7833_v53  ;;  %2270 = vmatpush.bf16.msrb.mxu0 %v6026_v21  ;;  %v5374_v21 = vor.u32 %v6809_v23, %v5373_v55  ;;  %v5357_v23 = vld [vmem:[#allocation5 + $0x8] sm:$0xf] }
 0x170   : > { %9326 = vst [vmem:[#allocation46_spill] sm:$0xff] %v8100_v39  ;;  %2402 = vmatpush.bf16.msrb.mxu3 %v5518_v20  ;;  %v6966_v20 = vld [vmem:[#allocation5 + $0x524] sm:$0xf] }
 0x171   : > { %2239 = vmatmul.bf16.gmra.mxu3 %v7967_v13  ;;  %v2015_v41 = vpop.f32.mrf.mxu2  ;;  %2359 = vmatpush.bf16.msrb.mxu2 %v5374_v21 }
 0x172   : > { %v2016_v14 = vadd.f32 %v2015_v41, %v1972_v63  ;;  %v1929_v4 = vpop.f32.mrf.mxu0 }
 0x173   : > { %v1930_v46 = vadd.f32 %v1929_v4, %v7997_v15 }
 0x174   : > { %v8105_v9 = vpop.f32.mrf.mxu3  ;;  %v1973_v24 = vpop.f32.mrf.mxu1 }
 0x175   : > { %v1974_v56 = vadd.f32 %v1973_v24, %v1930_v46  ;;  %v2977_v46 = vmax.f32 %v2016_v14, 0.0 }
 0x179   : > { %v2017_v61 = vpop.f32.mrf.mxu2 }
 0x17a   : > { %v2018_v62 = vadd.f32 %v2017_v61, %v1974_v56  ;;  %v1932_v41 = vpop.f32.mrf.mxu0  ;;  %v6007_v61 = vld [vmem:[#allocation5 + $0x530] sm:$0xf0] }
 0x17b   : > { %v1933_v15 = vadd.f32 %v1932_v41, %v8005_v3  ;;  %v6010_v41 = vor.u32 %v6966_v20, %v6007_v61 }
 0x17c   : > { %v8108_v63 = vpop.f32.mrf.mxu3  ;;  %v1976_v4 = vpop.f32.mrf.mxu1  ;;  %v2981_v24 = vmax.f32 %v2018_v62, 0.0  ;;  %v5501_v62 = vld [vmem:[#allocation5 + $0x128] sm:$0xf] }
 0x17d   : > { %v1977_v39 = vadd.f32 %v1976_v4, %v1933_v15  ;;  %2112 = vmatmul.bf16.gmra.mxu0 %v7851_v10  ;;  %v6841_v15 = vld [vmem:[#allocation5 + $0x134] sm:$0xf0] }
 0x17e   : > { %v8112_v49 = vpack.c.bf16 %v2981_v24, %v2977_v46  ;;  %2200 = vmatmul.bf16.gmra.mxu2 %v7855_v12  ;;  %v5502_v4 = vor.u32 %v6841_v15, %v5501_v62  ;;  %2271 = vmatpush.bf16.msrb.mxu0 %v6010_v41  ;;  %v5991_v15 = vld [vmem:[#allocation5 + $0x510] sm:$0xf0] }
 0x17f   : > { %2156 = vmatmul.bf16.gmra.mxu1 %v7853_v11 }
 0x180   : > { %9327 = vst [vmem:[#allocation47_spill] sm:$0xff] %v8112_v49  ;;  %2403 = vmatpush.bf16.msrb.mxu3 %v5502_v4 }
 0x181   : > { %2244 = vmatmul.bf16.gmra.mxu3 %v7990_v42  ;;  %v2020_v56 = vpop.f32.mrf.mxu2 }
 0x182   : > { %v2021_v43 = vadd.f32 %v2020_v56, %v1977_v39  ;;  %v1934_v5 = vpop.f32.mrf.mxu0 }
 0x183   : > { %v1935_v3 = vadd.f32 %v1934_v5, %v8020_v27 }
 0x184   : > { %v8117_v34 = vpop.f32.mrf.mxu3  ;;  %v1978_v14 = vpop.f32.mrf.mxu1  ;;  %v2985_v49 = vmax.f32 %v2021_v43, 0.0 }
 0x185   : > { %v1979_v40 = vadd.f32 %v1978_v14, %v1935_v3 }
 0x189   : > { %v2022_v46 = vpop.f32.mrf.mxu2 }
 0x18a   : > { %v2023_v39 = vadd.f32 %v2022_v46, %v1979_v40  ;;  %v1937_v56 = vpop.f32.mrf.mxu0  ;;  %v6805_v40 = vld [vmem:[#allocation5 + $0x14] sm:$0xf0] }
 0x18b   : > { %v1938_v27 = vadd.f32 %v1937_v56, %v8028_v8  ;;  %v5358_v21 = vor.u32 %v6805_v40, %v5357_v23  ;;  %v6837_v56 = vld [vmem:[#allocation5 + $0x114] sm:$0xf0] }
 0x18c   : > { %v8120_v24 = vpop.f32.mrf.mxu3  ;;  %v1981_v5 = vpop.f32.mrf.mxu1  ;;  %v2989_v3 = vmax.f32 %v2023_v39, 0.0  ;;  %v5485_v39 = vld [vmem:[#allocation5 + $0x108] sm:$0xf] }
 0x18d   : > { %v1982_v14 = vadd.f32 %v1981_v5, %v1938_v27  ;;  %2117 = vmatmul.bf16.gmra.mxu0 %v7871_v35  ;;  %2360 = vmatpush.bf16.msrb.mxu2 %v5358_v21  ;;  %v5486_v27 = vor.u32 %v6837_v56, %v5485_v39  ;;  %v6993_v39 = vld [vmem:[#allocation5 + $0x5f4] sm:$0xf0] }
 0x18e   : > { %v8124_v55 = vpack.c.bf16 %v2989_v3, %v2985_v49  ;;  %2205 = vmatmul.bf16.gmra.mxu2 %v7875_v37  ;;  %v6962_v49 = vld [vmem:[#allocation5 + $0x504] sm:$0xf] }
 0x18f   : > { %2161 = vmatmul.bf16.gmra.mxu1 %v7873_v36  ;;  %v5994_v46 = vor.u32 %v6962_v49, %v5991_v15  ;;  %2404 = vmatpush.bf16.msrb.mxu3 %v5486_v27  ;;  %v6961_v49 = vld [vmem:[#allocation5 + $0x4f4] sm:$0xf0]  ;;  %v5725_v15 = vld [vmem:[#allocation5 + $0x2e8] sm:$0xf] }
 0x190   : > { %9328 = vst [vmem:[#allocation48_spill] sm:$0xff] %v8124_v55 }
 0x191   : > { %2249 = vmatmul.bf16.gmra.mxu3 %v8013_v18  ;;  %v2025_v20 = vpop.f32.mrf.mxu2  ;;  %2272 = vmatpush.bf16.msrb.mxu0 %v5994_v46  ;;  %v6897_v46 = vld [vmem:[#allocation5 + $0x2f4] sm:$0xf0] }
 0x192   : > { %v2026_v61 = vadd.f32 %v2025_v20, %v1982_v14  ;;  %v1939_v43 = vpop.f32.mrf.mxu0  ;;  %v5726_v56 = vor.u32 %v6897_v46, %v5725_v15 }
 0x193   : > { %v1940_v62 = vadd.f32 %v1939_v43, %v8043_v60 }
 0x194   : > { %v8129_v8 = vpop.f32.mrf.mxu3  ;;  %v1983_v41 = vpop.f32.mrf.mxu1  ;;  %v2993_v20 = vmax.f32 %v2026_v61, 0.0 }
 0x195   : > { %v1984_v4 = vadd.f32 %v1983_v41, %v1940_v62  ;;  %v5981_v41 = vld [vmem:[#allocation5 + $0x4e8] sm:$0xf]  ;;  %2441 = vmatpush.bf16.msra.mxu0 %v5726_v56  ;;  %v6957_v56 = vld [vmem:[#allocation5 + $0x4d4] sm:$0xf0] }
 0x199   : > { %v2027_v5 = vpop.f32.mrf.mxu2 }
 0x19a   : > { %v2028_v3 = vadd.f32 %v2027_v5, %v1984_v4  ;;  %v1942_v14 = vpop.f32.mrf.mxu0  ;;  %v5982_v4 = vor.u32 %v6961_v49, %v5981_v41 }
 0x19b   : > { %v1943_v40 = vadd.f32 %v1942_v14, %v8051_v45  ;;  %v6109_v45 = vld [vmem:[#allocation5 + $0x5e8] sm:$0xf] }
 0x19c   : > { %v8132_v23 = vpop.f32.mrf.mxu3  ;;  %v1986_v21 = vpop.f32.mrf.mxu1  ;;  %v2997_v60 = vmax.f32 %v2028_v3, 0.0  ;;  %v6110_v27 = vor.u32 %v6993_v39, %v6109_v45  ;;  %2529 = vmatpush.bf16.msra.mxu2 %v5982_v4 }
 0x19d   : > { %v1987_v43 = vadd.f32 %v1986_v21, %v1943_v40  ;;  %2122 = vmatmul.bf16.gmra.mxu0 %v7891_v0 }
 0x19e   : > { %v8136_v62 = vpack.c.bf16 %v2997_v60, %v2993_v20  ;;  %2210 = vmatmul.bf16.gmra.mxu2 %v7895_v2  ;;  %2573 = vmatpush.bf16.msra.mxu3 %v6110_v27  ;;  %v5853_v20 = vld [vmem:[#allocation5 + $0x3e8] sm:$0xf]  ;;  %v6929_v60 = vld [vmem:[#allocation5 + $0x3f4] sm:$0xf0] }
 0x19f   : > { %2166 = vmatmul.bf16.gmra.mxu1 %v7893_v1  ;;  %v5854_v41 = vor.u32 %v6929_v60, %v5853_v20  ;;  %v5709_v27 = vld [vmem:[#allocation5 + $0x2c8] sm:$0xf] }
 0x1a0   : > { %9329 = vst [vmem:[#allocation49_spill] sm:$0xff] %v8136_v62 }
 0x1a1   : > { %2254 = vmatmul.bf16.gmra.mxu3 %v8036_v26  ;;  %v2030_v61 = vpop.f32.mrf.mxu2  ;;  %2485 = vmatpush.bf16.msra.mxu1 %v5854_v41 }
 0x1a2   : > { %v2031_v5 = vadd.f32 %v2030_v61, %v1987_v43  ;;  %v1944_v14 = vpop.f32.mrf.mxu0  ;;  %v5965_v61 = vld [vmem:[#allocation5 + $0x4c8] sm:$0xf] }
 0x1a3   : > { %v1945_v40 = vadd.f32 %v1944_v14, %v8066_v17  ;;  %v6893_v14 = vld [vmem:[#allocation5 + $0x2d4] sm:$0xf0] }
 0x1a4   : > { %v8141_v3 = vpop.f32.mrf.mxu3  ;;  %v1988_v21 = vpop.f32.mrf.mxu1  ;;  %v3001_v45 = vmax.f32 %v2031_v5, 0.0  ;;  %v6989_v5 = vld [vmem:[#allocation5 + $0x5d4] sm:$0xf0] }
 0x1a5   : > { %v1989_v62 = vadd.f32 %v1988_v21, %v1945_v40  ;;  %v5710_v40 = vor.u32 %v6893_v14, %v5709_v27  ;;  %v6925_v21 = vld [vmem:[#allocation5 + $0x3d4] sm:$0xf0] }
 0x1a7   : > { %2442 = vmatpush.bf16.msra.mxu0 %v5710_v40  ;;  %v5693_v40 = vld [vmem:[#allocation5 + $0x2a8] sm:$0xf] }
 0x1a9   : > { %v2032_v49 = vpop.f32.mrf.mxu2 }
 0x1aa   : > { %v2033_v55 = vadd.f32 %v2032_v49, %v1989_v62  ;;  %v1947_v15 = vpop.f32.mrf.mxu0  ;;  %v5966_v62 = vor.u32 %v6957_v56, %v5965_v61 }
 0x1ab   : > { %v1948_v43 = vadd.f32 %v1947_v15, %v8074_v19  ;;  %v6093_v19 = vld [vmem:[#allocation5 + $0x5c8] sm:$0xf] }
 0x1ac   : > { %v8144_v26 = vpop.f32.mrf.mxu3  ;;  %v1991_v46 = vpop.f32.mrf.mxu1  ;;  %v3005_v4 = vmax.f32 %v2033_v55, 0.0  ;;  %v5837_v55 = vld [vmem:[#allocation5 + $0x3c8] sm:$0xf]  ;;  %2530 = vmatpush.bf16.msra.mxu2 %v5966_v62  ;;  %v6094_v60 = vor.u32 %v6989_v5, %v6093_v19 }
 0x1ad   : > { %v1992_v39 = vadd.f32 %v1991_v46, %v1948_v43  ;;  %2127 = vmatmul.bf16.gmra.mxu0 %v7911_v32  ;;  %v5838_v41 = vor.u32 %v6925_v21, %v5837_v55  ;;  %v5949_v55 = vld [vmem:[#allocation5 + $0x4a8] sm:$0xf]  ;;  %v6953_v21 = vld [vmem:[#allocation5 + $0x4b4] sm:$0xf0] }
 0x1ae   : > { %v8148_v17 = vpack.c.bf16 %v3005_v4, %v3001_v45  ;;  %2215 = vmatmul.bf16.gmra.mxu2 %v7915_v38  ;;  %2574 = vmatpush.bf16.msra.mxu3 %v6094_v60  ;;  %v6889_v60 = vld [vmem:[#allocation5 + $0x2b4] sm:$0xf0] }
 0x1af   : > { %2171 = vmatmul.bf16.gmra.mxu1 %v7913_v33 }
 0x1b0   : > { %9330 = vst [vmem:[#allocation50_spill] sm:$0xff] %v8148_v17  ;;  %2486 = vmatpush.bf16.msra.mxu1 %v5838_v41  ;;  %v6077_v41 = vld [vmem:[#allocation5 + $0x5a8] sm:$0xf] }
 0x1b1   : > { %2259 = vmatmul.bf16.gmra.mxu3 %v8059_v22  ;;  %v2035_v20 = vpop.f32.mrf.mxu2 }
 0x1b2   : > { %v2036_v49 = vadd.f32 %v2035_v20, %v1992_v39  ;;  %v1949_v43 = vpop.f32.mrf.mxu0 }
 0x1b3   : > { %v1950_v46 = vadd.f32 %v1949_v43, %v8077_v59  ;;  %v5950_v59 = vor.u32 %v6953_v21, %v5949_v55  ;;  %v8169_v55 = vld [vmem:[#allocation7] sm:$0xf] }
 0x1b4   : > { %v8153_v15 = vpop.f32.mrf.mxu3  ;;  %v1993_v45 = vpop.f32.mrf.mxu1  ;;  %v3009_v5 = vmax.f32 %v2036_v49, 0.0  ;;  %v8172_v21 = vperm.slane %v8169_v55, 1 }
 0x1b5   : > { %v1994_v4 = vadd.f32 %v1993_v45, %v1950_v46  ;;  %v6985_v46 = vld [vmem:[#allocation5 + $0x5b4] sm:$0xf0]  ;;  %2531 = vmatpush.bf16.msra.mxu2 %v5950_v59  ;;  %v5821_v45 = vld [vmem:[#allocation5 + $0x3a8] sm:$0xf] }
 0x1b6   : > { %v6078_v49 = vor.u32 %v6985_v46, %v6077_v41 }
 0x1b8   : > { %2575 = vmatpush.bf16.msra.mxu3 %v6078_v49 }
 0x1b9   : > { %v2037_v61 = vpop.f32.mrf.mxu2 }
 0x1ba   : > { %v2038_v56 = vadd.f32 %v2037_v61, %v1994_v4  ;;  %v1952_v14 = vpop.f32.mrf.mxu0  ;;  %v6921_v4 = vld [vmem:[#allocation5 + $0x3b4] sm:$0xf0] }
 0x1bb   : > { %v1953_v62 = vadd.f32 %v1952_v14, %v8084_v16  ;;  %v5694_v16 = vor.u32 %v6889_v60, %v5693_v40  ;;  %v5822_v61 = vor.u32 %v6921_v4, %v5821_v45  ;;  %v5933_v40 = vld [vmem:[#allocation5 + $0x488] sm:$0xf]  ;;  %v6949_v60 = vld [vmem:[#allocation5 + $0x494] sm:$0xf0] }
 0x1bc   : > { %v8156_v27 = vpop.f32.mrf.mxu3  ;;  %v1996_v19 = vpop.f32.mrf.mxu1  ;;  %v3013_v39 = vmax.f32 %v2038_v56, 0.0  ;;  %v5934_v41 = vor.u32 %v6949_v60, %v5933_v40  ;;  %v6981_v40 = vld [vmem:[#allocation5 + $0x594] sm:$0xf0]  ;;  %v5805_v60 = vld [vmem:[#allocation5 + $0x388] sm:$0xf] }
 0x1bd   : > { %v1997_v20 = vadd.f32 %v1996_v19, %v1953_v62  ;;  %2273 = vmatmul.bf16.vlgmr.msrb.gmra.mxu0 %v7929_v6  ;;  %2487 = vmatpush.bf16.msra.mxu1 %v5822_v61 }
 0x1be   : > { %v8160_v43 = vpack.c.bf16 %v3013_v39, %v3009_v5  ;;  %2361 = vmatmul.bf16.vlgmr.msrb.gmra.mxu2 %v7789_v47  ;;  %2443 = vmatpush.bf16.msra.mxu0 %v5694_v16 }
 0x1bf   : > { %6138 = vmatmul.msk.bf16.vlgmr.msrb.gmra.mxu1 %vm1715_vm0, %v7931_v7  ;;  %2532 = vmatpush.bf16.msra.mxu2 %v5934_v41 }
 0x1c0   : > { %9331 = vst [vmem:[#allocation51_spill] sm:$0xff] %v8160_v43  ;;  %v6885_v43 = vld [vmem:[#allocation5 + $0x294] sm:$0xf0] }
 0x1c1   : > { %2405 = vmatmul.bf16.vlgmr.msrb.gmra.mxu3 %v7791_v51  ;;  %v2040_v56 = vpop.f32.mrf.mxu2 }
 0x1c2   : > { %v2041_v14 = vadd.f32 %v2040_v56, %v1997_v20  ;;  %v1954_v19 = vpop.f32.mrf.mxu0  ;;  %v2055_v20 = vadd.f32 %v8093_v25, %v8172_v21  ;;  %v9333_v25 = vld [vmem:[#allocation20_spill] sm:$0xff] }
 0x1c3   : > { %v1955_v5 = vadd.f32 %v1954_v19, %v8087_v44  ;;  %v5677_v19 = vld [vmem:[#allocation5 + $0x288] sm:$0xf] }
 0x1c4   : > { %v8166_v62 = vpop.f32.mrf.mxu3  ;;  %v1998_v39 = vpop.f32.mrf.mxu1  ;;  %v3017_v61 = vmax.f32 %v2041_v14, 0.0 }
 0x1c5   : > { %v1999_v59 = vadd.f32 %v1998_v39, %v1955_v5  ;;  %v5678_v5 = vor.u32 %v6885_v43, %v5677_v19  ;;  %v6061_v39 = vld [vmem:[#allocation5 + $0x588] sm:$0xf]  ;;  %v2057_v43 = vadd.f32 %v8096_v31, %v8172_v21  ;;  %v2060_v31 = vadd.f32 %v8105_v9, %v8172_v21  ;;  %v9336_v9 = vld [vmem:[#allocation22_spill] sm:$0xff] }
 0x1c7   : > { %2444 = vmatpush.bf16.msra.mxu0 %v5678_v5  ;;  %v6881_v5 = vld [vmem:[#allocation5 + $0x274] sm:$0xf0] }
 0x1c9   : > { %v2042_v16 = vpop.f32.mrf.mxu2 }
 0x1ca   : > { %v2043_v46 = vadd.f32 %v2042_v16, %v1999_v59  ;;  %v2098_v45 = vpop.f32.mrf.mxu0  ;;  %v6062_v59 = vor.u32 %v6981_v40, %v6061_v39  ;;  %v5917_v39 = vld [vmem:[#allocation5 + $0x468] sm:$0xf]  ;;  %v6945_v40 = vld [vmem:[#allocation5 + $0x474] sm:$0xf0] }
 0x1cb   : > { %v2099_v44 = vadd.f32 %v2098_v45, %v2055_v20  ;;  %v6917_v20 = vld [vmem:[#allocation5 + $0x394] sm:$0xf0] }
 0x1cc   : > { %v8176_v49 = vpop.f32.mrf.mxu3  ;;  %v2142_v4 = vpop.f32.mrf.mxu1  ;;  %v3021_v56 = vmax.f32 %v2043_v46, 0.0  ;;  %v5806_v14 = vor.u32 %v6917_v20, %v5805_v60  ;;  %2576 = vmatpush.bf16.msra.mxu3 %v6062_v59  ;;  %v6045_v60 = vld [vmem:[#allocation5 + $0x568] sm:$0xf]  ;;  %v6977_v59 = vld [vmem:[#allocation5 + $0x574] sm:$0xf0] }
 0x1cd   : > { %v2143_v17 = vadd.f32 %v2142_v4, %v2099_v44  ;;  %2278 = vmatmul.bf16.gmra.mxu0 %v7948_v57 }
 0x1ce   : > { %v8179_v41 = vpack.c.bf16 %v3021_v56, %v3017_v61  ;;  %2366 = vmatmul.bf16.gmra.mxu2 %v9333_v25  ;;  %2488 = vmatpush.bf16.msra.mxu1 %v5806_v14  ;;  %v6046_v25 = vor.u32 %v6977_v59, %v6045_v60 }
 0x1cf   : > { %6139 = vmatmul.msk.bf16.gmra.mxu1 %vm1715_vm0, %v7950_v58 }
 0x1d0   : > { %9332 = vst [vmem:[#allocation52_spill] sm:$0xff] %v8179_v41  ;;  %v5661_v41 = vld [vmem:[#allocation5 + $0x268] sm:$0xf]  ;;  %2577 = vmatpush.bf16.msra.mxu3 %v6046_v25  ;;  %v2062_v25 = vadd.f32 %v8108_v63, %v8172_v21  ;;  %v6909_v63 = vld [vmem:[#allocation5 + $0x354] sm:$0xf0] }
 0x1d1   : > { %2410 = vmatmul.bf16.gmra.mxu3 %v7811_v28  ;;  %v2186_v16 = vpop.f32.mrf.mxu2  ;;  %v5918_v28 = vor.u32 %v6945_v40, %v5917_v39  ;;  %v5662_v20 = vor.u32 %v6881_v5, %v5661_v41  ;;  %v9334_v40 = vld [vmem:[#allocation35_spill] sm:$0xff] }
 0x1d2   : > { %v2187_v46 = vadd.f32 %v2186_v16, %v2143_v17  ;;  %v2100_v44 = vpop.f32.mrf.mxu0 }
 0x1d3   : > { %v2101_v4 = vadd.f32 %v2100_v44, %v2057_v43  ;;  %2533 = vmatpush.bf16.msra.mxu2 %v5918_v28  ;;  %2445 = vmatpush.bf16.msra.mxu0 %v5662_v20  ;;  %v9335_v28 = vld [vmem:[#allocation36_spill] sm:$0xff] }
 0x1d4   : > { %v2230_v45 = vpop.f32.mrf.mxu3  ;;  %v2144_v61 = vpop.f32.mrf.mxu1 }
 0x1d5   : > { %v8187_v56 = vadd.f32 %v2230_v45, %v2187_v46  ;;  %v2145_v19 = vadd.f32 %v2144_v61, %v2101_v4  ;;  %v5789_v4 = vld [vmem:[#allocation5 + $0x368] sm:$0xf]  ;;  %v6913_v61 = vld [vmem:[#allocation5 + $0x374] sm:$0xf0] }
 0x1d6   : > { %v5790_v41 = vor.u32 %v6913_v61, %v5789_v4  ;;  %v6877_v4 = vld [vmem:[#allocation5 + $0x254] sm:$0xf0]  ;;  %v6029_v61 = vld [vmem:[#allocation5 + $0x548] sm:$0xf] }
 0x1d8   : > { %2489 = vmatpush.bf16.msra.mxu1 %v5790_v41 }
 0x1d9   : > { %v2188_v17 = vpop.f32.mrf.mxu2 }
 0x1da   : > { %v2189_v14 = vadd.f32 %v2188_v17, %v2145_v19  ;;  %v2103_v16 = vpop.f32.mrf.mxu0 }
 0x1db   : > { %v2104_v46 = vadd.f32 %v2103_v16, %v2060_v31  ;;  %v6941_v16 = vld [vmem:[#allocation5 + $0x454] sm:$0xf0] }
 0x1dc   : > { %v2232_v43 = vpop.f32.mrf.mxu3  ;;  %v2147_v45 = vpop.f32.mrf.mxu1 }
 0x1dd   : > { %v8191_v44 = vadd.f32 %v2232_v43, %v2189_v14  ;;  %v2148_v39 = vadd.f32 %v2147_v45, %v2104_v46  ;;  %2283 = vmatmul.bf16.gmra.mxu0 %v9334_v40  ;;  %v5901_v43 = vld [vmem:[#allocation5 + $0x448] sm:$0xf] }
 0x1de   : > { %2371 = vmatmul.bf16.gmra.mxu2 %v9336_v9  ;;  %v5645_v46 = vld [vmem:[#allocation5 + $0x248] sm:$0xf]  ;;  %v5902_v45 = vor.u32 %v6941_v16, %v5901_v43 }
 0x1df   : > { %6140 = vmatmul.msk.bf16.gmra.mxu1 %vm1715_vm0, %v9335_v28  ;;  %v5646_v41 = vor.u32 %v6877_v4, %v5645_v46  ;;  %v5773_v28 = vld [vmem:[#allocation5 + $0x348] sm:$0xf]  ;;  %v9338_v46 = vld [vmem:[#allocation38_spill] sm:$0xff] }
 0x1e0   : > { %2534 = vmatpush.bf16.msra.mxu2 %v5902_v45 }
 0x1e1   : > { %2415 = vmatmul.bf16.gmra.mxu3 %v7831_v50  ;;  %v2191_v19 = vpop.f32.mrf.mxu2  ;;  %v6973_v50 = vld [vmem:[#allocation5 + $0x554] sm:$0xf0]  ;;  %2446 = vmatpush.bf16.msra.mxu0 %v5646_v41 }
 0x1e2   : > { %v2192_v5 = vadd.f32 %v2191_v19, %v2148_v39  ;;  %v2105_v59 = vpop.f32.mrf.mxu0  ;;  %v6030_v9 = vor.u32 %v6973_v50, %v6029_v61  ;;  %v5774_v39 = vor.u32 %v6909_v63, %v5773_v28  ;;  %v9337_v50 = vld [vmem:[#allocation37_spill] sm:$0xff]  ;;  %v9339_v28 = vld [vmem:[#allocation24_spill] sm:$0xff] }
 0x1e3   : > { %v2106_v20 = vadd.f32 %v2105_v59, %v2062_v25  ;;  %v2065_v25 = vadd.f32 %v8117_v34, %v8172_v21  ;;  %v2067_v34 = vadd.f32 %v8120_v24, %v8172_v21 }
 0x1e4   : > { %v2235_v60 = vpop.f32.mrf.mxu3  ;;  %v2149_v31 = vpop.f32.mrf.mxu1  ;;  %2578 = vmatpush.bf16.msra.mxu3 %v6030_v9  ;;  %2490 = vmatpush.bf16.msra.mxu1 %v5774_v39  ;;  %v5885_v39 = vld [vmem:[#allocation5 + $0x428] sm:$0xf] }
 0x1e5   : > { %v8200_v17 = vadd.f32 %v2235_v60, %v2192_v5  ;;  %v2150_v14 = vadd.f32 %v2149_v31, %v2106_v20 }
 0x1e9   : > { %v2193_v19 = vpop.f32.mrf.mxu2 }
 0x1ea   : > { %v2194_v5 = vadd.f32 %v2193_v19, %v2150_v14  ;;  %v2108_v59 = vpop.f32.mrf.mxu0 }
 0x1eb   : > { %v2109_v20 = vadd.f32 %v2108_v59, %v2065_v25  ;;  %v6937_v25 = vld [vmem:[#allocation5 + $0x434] sm:$0xf0] }
 0x1ec   : > { %v2237_v60 = vpop.f32.mrf.mxu3  ;;  %v2152_v31 = vpop.f32.mrf.mxu1  ;;  %v6873_v59 = vld [vmem:[#allocation5 + $0x234] sm:$0xf0] }
 0x1ed   : > { %v8204_v43 = vadd.f32 %v2237_v60, %v2194_v5  ;;  %v2153_v16 = vadd.f32 %v2152_v31, %v2109_v20  ;;  %2288 = vmatmul.bf16.gmra.mxu0 %v9337_v50  ;;  %v5886_v5 = vor.u32 %v6937_v25, %v5885_v39  ;;  %v5629_v60 = vld [vmem:[#allocation5 + $0x228] sm:$0xf] }
 0x1ee   : > { %2376 = vmatmul.bf16.gmra.mxu2 %v9339_v28  ;;  %v6013_v20 = vld [vmem:[#allocation5 + $0x528] sm:$0xf]  ;;  %v5630_v31 = vor.u32 %v6873_v59, %v5629_v60 }
 0x1ef   : > { %6141 = vmatmul.msk.bf16.gmra.mxu1 %vm1715_vm0, %v9338_v46  ;;  %v5757_v28 = vld [vmem:[#allocation5 + $0x328] sm:$0xf]  ;;  %v6905_v46 = vld [vmem:[#allocation5 + $0x334] sm:$0xf0]  ;;  %2535 = vmatpush.bf16.msra.mxu2 %v5886_v5  ;;  %v9341_v5 = vld [vmem:[#allocation40_spill] sm:$0xff] }
 0x1f0   : > { %2447 = vmatpush.bf16.msra.mxu0 %v5630_v31  ;;  %v9340_v60 = vld [vmem:[#allocation39_spill] sm:$0xff] }
 0x1f1   : > { %2420 = vmatmul.bf16.gmra.mxu3 %v7851_v10  ;;  %v2196_v9 = vpop.f32.mrf.mxu2  ;;  %v6969_v10 = vld [vmem:[#allocation5 + $0x534] sm:$0xf0] }
 0x1f2   : > { %v2197_v14 = vadd.f32 %v2196_v9, %v2153_v16  ;;  %v2110_v4 = vpop.f32.mrf.mxu0  ;;  %v6014_v24 = vor.u32 %v6969_v10, %v6013_v20  ;;  %v5758_v16 = vor.u32 %v6905_v46, %v5757_v28  ;;  %v9342_v10 = vld [vmem:[#allocation26_spill] sm:$0xff]  ;;  %v6933_v46 = vld [vmem:[#allocation5 + $0x414] sm:$0xf0] }
 0x1f3   : > { %v2111_v61 = vadd.f32 %v2110_v4, %v2067_v34  ;;  %v2070_v34 = vadd.f32 %v8129_v8, %v8172_v21  ;;  %v5869_v8 = vld [vmem:[#allocation5 + $0x408] sm:$0xf] }
 0x1f4   : > { %v2240_v45 = vpop.f32.mrf.mxu3  ;;  %v2154_v41 = vpop.f32.mrf.mxu1  ;;  %2579 = vmatpush.bf16.msra.mxu3 %v6014_v24  ;;  %2491 = vmatpush.bf16.msra.mxu1 %v5758_v16  ;;  %v5870_v28 = vor.u32 %v6933_v46, %v5869_v8  ;;  %v6901_v8 = vld [vmem:[#allocation5 + $0x314] sm:$0xf0] }
 0x1f5   : > { %v8213_v63 = vadd.f32 %v2240_v45, %v2197_v14  ;;  %v2155_v19 = vadd.f32 %v2154_v41, %v2111_v61 }
 0x1f6   : > { %2536 = vmatpush.bf16.msra.mxu2 %v5870_v28 }
 0x1f9   : > { %v2198_v9 = vpop.f32.mrf.mxu2 }
 0x1fa   : > { %v2199_v14 = vadd.f32 %v2198_v9, %v2155_v19  ;;  %v2113_v4 = vpop.f32.mrf.mxu0  ;;  %v2072_v19 = vadd.f32 %v8132_v23, %v8172_v21  ;;  %v2075_v23 = vadd.f32 %v8141_v3, %v8172_v21  ;;  %v5599_v3 = vld [vmem:[#allocation5 + $0x1f8] sm:$0xf0] }
 0x1fb   : > { %v2114_v61 = vadd.f32 %v2113_v4, %v2070_v34  ;;  %v5997_v4 = vld [vmem:[#allocation5 + $0x508] sm:$0xf] }
 0x1fc   : > { %v2242_v45 = vpop.f32.mrf.mxu3  ;;  %v2157_v41 = vpop.f32.mrf.mxu1 }
 0x1fd   : > { %v8217_v39 = vadd.f32 %v2242_v45, %v2199_v14  ;;  %v2158_v25 = vadd.f32 %v2157_v41, %v2114_v61  ;;  %2293 = vmatmul.bf16.gmra.mxu0 %v9340_v60  ;;  %v5613_v14 = vld [vmem:[#allocation5 + $0x208] sm:$0xf]  ;;  %v6869_v45 = vld [vmem:[#allocation5 + $0x214] sm:$0xf0] }
 0x1fe   : > { %2381 = vmatmul.bf16.gmra.mxu2 %v9342_v10  ;;  %v5614_v41 = vor.u32 %v6869_v45, %v5613_v14  ;;  %v5741_v10 = vld [vmem:[#allocation5 + $0x308] sm:$0xf] }
 0x1ff   : > { %6142 = vmatmul.msk.bf16.gmra.mxu1 %vm1715_vm0, %v9341_v5  ;;  %v5742_v5 = vor.u32 %v6901_v8, %v5741_v10  ;;  %v9344_v14 = vld [vmem:[#allocation43_spill] sm:$0xff]  ;;  %v2077_v8 = vadd.f32 %v8144_v26, %v8172_v21  ;;  %v2080_v26 = vadd.f32 %v8153_v15, %v8172_v21  ;;  %v5583_v15 = vld [vmem:[#allocation5 + $0x1d8] sm:$0xf0] }
 0x200   : > { %2448 = vmatpush.bf16.msra.mxu0 %v5614_v41  ;;  %v6125_v10 = vld [vmem:[#allocation5 + $0x608] sm:$0xf]  ;;  %v5727_v41 = vld [vmem:[#allocation5 + $0x2f8] sm:$0xf0] }
 0x201   : > { %2425 = vmatmul.bf16.gmra.mxu3 %v7871_v35  ;;  %v2201_v59 = vpop.f32.mrf.mxu2  ;;  %v6965_v35 = vld [vmem:[#allocation5 + $0x514] sm:$0xf0]  ;;  %2492 = vmatpush.bf16.msra.mxu1 %v5742_v5  ;;  %v6863_v5 = vld [vmem:[#allocation5 + $0x1ec] sm:$0xf] }
 0x202   : > { %v2202_v20 = vadd.f32 %v2201_v59, %v2158_v25  ;;  %v2115_v24 = vpop.f32.mrf.mxu0  ;;  %v5998_v46 = vor.u32 %v6965_v35, %v5997_v4  ;;  %v9345_v35 = vld [vmem:[#allocation28_spill] sm:$0xff]  ;;  %v5602_v45 = vor.u32 %v6863_v5, %v5599_v3  ;;  %v6997_v4 = vld [vmem:[#allocation5 + $0x614] sm:$0xf0]  ;;  %v6831_v5 = vld [vmem:[#allocation5 + $0xec] sm:$0xf] }
 0x203   : > { %v2116_v16 = vadd.f32 %v2115_v24, %v2072_v19  ;;  %v5471_v3 = vld [vmem:[#allocation5 + $0xf8] sm:$0xf0] }
 0x204   : > { %v2245_v31 = vpop.f32.mrf.mxu3  ;;  %v2159_v34 = vpop.f32.mrf.mxu1  ;;  %2580 = vmatpush.bf16.msra.mxu3 %v5998_v46  ;;  %2705 = vmatpush.bf16.msrb.mxu2 %v5602_v45 }
 0x205   : > { %v8226_v9 = vadd.f32 %v2245_v31, %v2202_v20  ;;  %v2160_v61 = vadd.f32 %v2159_v34, %v2116_v16  ;;  %v9343_v34 = vld [vmem:[#allocation42_spill] sm:$0xff] }
 0x209   : > { %v2203_v25 = vpop.f32.mrf.mxu2 }
 0x20a   : > { %v2204_v28 = vadd.f32 %v2203_v25, %v2160_v61  ;;  %v2118_v59 = vpop.f32.mrf.mxu0  ;;  %v6895_v61 = vld [vmem:[#allocation5 + $0x2ec] sm:$0xf] }
 0x20b   : > { %v2119_v20 = vadd.f32 %v2118_v59, %v2075_v23  ;;  %v6126_v23 = vor.u32 %v6997_v4, %v6125_v10  ;;  %v5730_v25 = vor.u32 %v6895_v61, %v5727_v41 }
 0x20c   : > { %v2247_v19 = vpop.f32.mrf.mxu3  ;;  %v2162_v31 = vpop.f32.mrf.mxu1 }
 0x20d   : > { %v8230_v24 = vadd.f32 %v2247_v19, %v2204_v28  ;;  %v2163_v16 = vadd.f32 %v2162_v31, %v2119_v20  ;;  %2298 = vmatmul.bf16.gmra.mxu0 %v9343_v34  ;;  %2749 = vmatpush.bf16.msrb.mxu3 %v5730_v25  ;;  %v9347_v25 = vld [vmem:[#allocation45_spill] sm:$0xff] }
 0x20e   : > { %2386 = vmatmul.bf16.gmra.mxu2 %v9345_v35  ;;  %2624 = vmatpush.bf16.msrb.mxu0 %v6126_v23  ;;  %v9346_v23 = vld [vmem:[#allocation44_spill] sm:$0xff] }
 0x20f   : > { %6143 = vmatmul.msk.bf16.gmra.mxu1 %vm1715_vm0, %v9344_v14  ;;  %v5474_v14 = vor.u32 %v6831_v5, %v5471_v3  ;;  %v2082_v5 = vadd.f32 %v8156_v27, %v8172_v21 }
 0x211   : > { %2430 = vmatmul.bf16.gmra.mxu3 %v7891_v0  ;;  %v2206_v46 = vpop.f32.mrf.mxu2  ;;  %2661 = vmatpush.bf16.msrb.mxu1 %v5474_v14  ;;  %v6859_v14 = vld [vmem:[#allocation5 + $0x1cc] sm:$0xf] }
 0x212   : > { %v2207_v28 = vadd.f32 %v2206_v46, %v2163_v16  ;;  %v2120_v59 = vpop.f32.mrf.mxu0 }
 0x213   : > { %v2121_v20 = vadd.f32 %v2120_v59, %v2077_v8  ;;  %v5711_v59 = vld [vmem:[#allocation5 + $0x2d8] sm:$0xf0] }
 0x214   : > { %v2250_v19 = vpop.f32.mrf.mxu3  ;;  %v2164_v31 = vpop.f32.mrf.mxu1 }
 0x215   : > { %v8239_v0 = vadd.f32 %v2250_v19, %v2207_v28  ;;  %v2165_v35 = vadd.f32 %v2164_v31, %v2121_v20  ;;  %v9348_v28 = vld [vmem:[#allocation30_spill] sm:$0xff]  ;;  %v6891_v19 = vld [vmem:[#allocation5 + $0x2cc] sm:$0xf]  ;;  %v5455_v31 = vld [vmem:[#allocation5 + $0xd8] sm:$0xf0] }
 0x216   : > { %v6827_v20 = vld [vmem:[#allocation5 + $0xcc] sm:$0xf] }
 0x219   : > { %v2208_v10 = vpop.f32.mrf.mxu2 }
 0x21a   : > { %v2209_v4 = vadd.f32 %v2208_v10, %v2165_v35  ;;  %v2123_v61 = vpop.f32.mrf.mxu0  ;;  %v5586_v35 = vor.u32 %v6859_v14, %v5583_v15  ;;  %v5458_v10 = vor.u32 %v6827_v20, %v5455_v31  ;;  %v2085_v15 = vadd.f32 %v8166_v62, %v8172_v21  ;;  %v6855_v20 = vld [vmem:[#allocation5 + $0x1ac] sm:$0xf] }
 0x21b   : > { %v2124_v41 = vadd.f32 %v2123_v61, %v2080_v26  ;;  %v5714_v26 = vor.u32 %v6891_v19, %v5711_v59  ;;  %v6887_v62 = vld [vmem:[#allocation5 + $0x2ac] sm:$0xf] }
 0x21c   : > { %v2252_v16 = vpop.f32.mrf.mxu3  ;;  %v2167_v45 = vpop.f32.mrf.mxu1  ;;  %2706 = vmatpush.bf16.msrb.mxu2 %v5586_v35  ;;  %2662 = vmatpush.bf16.msrb.mxu1 %v5458_v10  ;;  %v5567_v35 = vld [vmem:[#allocation5 + $0x1b8] sm:$0xf0]  ;;  %v6823_v10 = vld [vmem:[#allocation5 + $0xac] sm:$0xf] }
 0x21d   : > { %v8243_v8 = vadd.f32 %v2252_v16, %v2209_v4  ;;  %v2168_v46 = vadd.f32 %v2167_v45, %v2124_v41  ;;  %2303 = vmatmul.bf16.gmra.mxu0 %v9346_v23  ;;  %2750 = vmatpush.bf16.msrb.mxu3 %v5714_v26  ;;  %v9350_v26 = vld [vmem:[#allocation32_spill] sm:$0xff] }
 0x21e   : > { %2391 = vmatmul.bf16.gmra.mxu2 %v9348_v28 }
 0x21f   : > { %6144 = vmatmul.msk.bf16.gmra.mxu1 %vm1715_vm0, %v9347_v25 }
 0x221   : > { %2435 = vmatmul.bf16.gmra.mxu3 %v7911_v32  ;;  %v2211_v3 = vpop.f32.mrf.mxu2 }
 0x222   : > { %v2212_v4 = vadd.f32 %v2211_v3, %v2168_v46  ;;  %v2125_v61 = vpop.f32.mrf.mxu0  ;;  %v9349_v3 = vld [vmem:[#allocation19_spill] sm:$0xff] }
 0x223   : > { %v2126_v41 = vadd.f32 %v2125_v61, %v2082_v5  ;;  %v5570_v5 = vor.u32 %v6855_v20, %v5567_v35  ;;  %v6851_v35 = vld [vmem:[#allocation5 + $0x18c] sm:$0xf] }
 0x224   : > { %v2255_v16 = vpop.f32.mrf.mxu3  ;;  %v2169_v45 = vpop.f32.mrf.mxu1 }
 0x225   : > { %v8252_v32 = vadd.f32 %v2255_v16, %v2212_v4  ;;  %v2170_v14 = vadd.f32 %v2169_v45, %v2126_v41  ;;  %2707 = vmatpush.bf16.msrb.mxu2 %v5570_v5  ;;  %v5439_v4 = vld [vmem:[#allocation5 + $0xb8] sm:$0xf0] }
 0x226   : > { %v5442_v61 = vor.u32 %v6823_v10, %v5439_v4  ;;  %v5551_v5 = vld [vmem:[#allocation5 + $0x198] sm:$0xf0]  ;;  %v6883_v10 = vld [vmem:[#allocation5 + $0x28c] sm:$0xf] }
 0x228   : > { %2663 = vmatpush.bf16.msrb.mxu1 %v5442_v61 }
 0x229   : > { %v2213_v28 = vpop.f32.mrf.mxu2 }
 0x22a   : > { %v2214_v25 = vadd.f32 %v2213_v28, %v2170_v14  ;;  %v2128_v58 = vpop.f32.mrf.mxu0  ;;  %v5695_v28 = vld [vmem:[#allocation5 + $0x2b8] sm:$0xf0] }
 0x22b   : > { %v2129_v19 = vadd.f32 %v2128_v58, %v2085_v15  ;;  %v5698_v58 = vor.u32 %v6887_v62, %v5695_v28 }
 0x22c   : > { %v2257_v27 = vpop.f32.mrf.mxu3  ;;  %v2172_v59 = vpop.f32.mrf.mxu1 }
 0x22d   : > { %v8256_v46 = vadd.f32 %v2257_v27, %v2214_v25  ;;  %v2173_v31 = vadd.f32 %v2172_v59, %v2129_v19  ;;  %2449 = vmatmul.bf16.vlgmr.msra.gmra.mxu0 %v7793_v52  ;;  %v2087_v25 = vadd.f32 %v8176_v49, %v8172_v21  ;;  %2751 = vmatpush.bf16.msrb.mxu3 %v5698_v58  ;;  %v5679_v58 = vld [vmem:[#allocation5 + $0x298] sm:$0xf0] }
 0x22e   : > { %2537 = vmatmul.bf16.vlgmr.msra.gmra.mxu2 %v9350_v26  ;;  %v5554_v26 = vor.u32 %v6851_v35, %v5551_v5 }
 0x22f   : > { %2493 = vmatmul.bf16.vlgmr.msra.gmra.mxu1 %v9349_v3 }
 0x230   : > { %2708 = vmatpush.bf16.msrb.mxu2 %v5554_v26 }
 0x231   : > { %2581 = vmatmul.bf16.vlgmr.msra.gmra.mxu3 %v7929_v6  ;;  %v2216_v16 = vpop.f32.mrf.mxu2 }
 0x232   : > { %v2217_v41 = vadd.f32 %v2216_v16, %v2173_v31  ;;  %v2130_v14 = vpop.f32.mrf.mxu0  ;;  %v8273_v16 = vperm.slane %v8169_v55, 2 }
 0x233   : > { %v2131_v15 = vadd.f32 %v2130_v14, %v2087_v25  ;;  %v5682_v25 = vor.u32 %v6883_v10, %v5679_v58 }
 0x234   : > { %v2260_v45 = vpop.f32.mrf.mxu3  ;;  %v2174_v27 = vpop.f32.mrf.mxu1 }
 0x235   : > { %v8264_v19 = vadd.f32 %v2260_v45, %v2217_v41  ;;  %v2175_v59 = vadd.f32 %v2174_v27, %v2131_v15  ;;  %2752 = vmatpush.bf16.msrb.mxu3 %v5682_v25 }
 0x239   : > { %v2218_v20 = vpop.f32.mrf.mxu2 }
 0x23a   : > { %v2219_v62 = vadd.f32 %v2218_v20, %v2175_v59  ;;  %v2274_v6 = vpop.f32.mrf.mxu0 }
 0x23b   : > { %v2275_v21 = vadd.f32 %v2274_v6, %v8187_v56  ;;  %v6819_v6 = vld [vmem:[#allocation5 + $0x8c] sm:$0xf]  ;;  %v5423_v56 = vld [vmem:[#allocation5 + $0x98] sm:$0xf0] }
 0x23c   : > { %v2262_v28 = vpop.f32.mrf.mxu3  ;;  %v2318_v49 = vpop.f32.mrf.mxu1  ;;  %v5426_v61 = vor.u32 %v6819_v6, %v5423_v56  ;;  %v5663_v56 = vld [vmem:[#allocation5 + $0x278] sm:$0xf0] }
 0x23d   : > { %v8267_v31 = vadd.f32 %v2262_v28, %v2219_v62  ;;  %v2319_v4 = vadd.f32 %v2318_v49, %v2275_v21  ;;  %2454 = vmatmul.bf16.gmra.mxu0 %v7813_v29  ;;  %v6847_v28 = vld [vmem:[#allocation5 + $0x16c] sm:$0xf]  ;;  %v5535_v21 = vld [vmem:[#allocation5 + $0x178] sm:$0xf0] }
 0x23e   : > { %2542 = vmatmul.bf16.gmra.mxu2 %v7946_v48  ;;  %2664 = vmatpush.bf16.msrb.mxu1 %v5426_v61  ;;  %v6879_v49 = vld [vmem:[#allocation5 + $0x26c] sm:$0xf]  ;;  %v5538_v6 = vor.u32 %v6847_v28, %v5535_v21 }
 0x23f   : > { %2498 = vmatmul.bf16.gmra.mxu1 %v7815_v30  ;;  %v2970_v55 = vmax.f32 %v2319_v4, 0.0  ;;  %v6815_v4 = vld [vmem:[#allocation5 + $0x6c] sm:$0xf] }
 0x240   : > { %2709 = vmatpush.bf16.msrb.mxu2 %v5538_v6  ;;  %v6843_v6 = vld [vmem:[#allocation5 + $0x14c] sm:$0xf] }
 0x241   : > { %2586 = vmatmul.bf16.gmra.mxu3 %v7948_v57  ;;  %v2362_v26 = vpop.f32.mrf.mxu2 }
 0x242   : > { %v2363_v41 = vadd.f32 %v2362_v26, %v8273_v16  ;;  %v2276_v14 = vpop.f32.mrf.mxu0  ;;  %v5666_v26 = vor.u32 %v6879_v49, %v5663_v56  ;;  %v5519_v56 = vld [vmem:[#allocation5 + $0x158] sm:$0xf0] }
 0x243   : > { %v2277_v15 = vadd.f32 %v2276_v14, %v8191_v44 }
 0x244   : > { %v2406_v45 = vpop.f32.mrf.mxu3  ;;  %v2320_v27 = vpop.f32.mrf.mxu1  ;;  %2753 = vmatpush.bf16.msrb.mxu3 %v5666_v26 }
 0x245   : > { %v8278_v59 = vadd.f32 %v2406_v45, %v2363_v41  ;;  %v2321_v20 = vadd.f32 %v2320_v27, %v2277_v15  ;;  %v5407_v45 = vld [vmem:[#allocation5 + $0x78] sm:$0xf0] }
 0x246   : > { %v5410_v15 = vor.u32 %v6815_v4, %v5407_v45  ;;  %v5522_v45 = vor.u32 %v6843_v6, %v5519_v56 }
 0x247   : > { %v2974_v35 = vmax.f32 %v2321_v20, 0.0 }
 0x248   : > { %2665 = vmatpush.bf16.msrb.mxu1 %v5410_v15  ;;  %v5647_v15 = vld [vmem:[#allocation5 + $0x258] sm:$0xf0]  ;;  %2710 = vmatpush.bf16.msrb.mxu2 %v5522_v45 }
 0x249   : > { %v8280_v5 = vpack.c.bf16 %v2974_v35, %v2970_v55  ;;  %v2364_v62 = vpop.f32.mrf.mxu2 }
 0x24a   : > { %v2365_v10 = vadd.f32 %v2364_v62, %v8273_v16  ;;  %v2279_v25 = vpop.f32.mrf.mxu0 }
 0x24b   : > { %v2280_v44 = vadd.f32 %v2279_v25, %v8200_v17 }
 0x24c   : > { %v2408_v58 = vpop.f32.mrf.mxu3  ;;  %v2323_v61 = vpop.f32.mrf.mxu1 }
 0x24d   : > { %v8284_v41 = vadd.f32 %v2408_v58, %v2365_v10  ;;  %v2324_v14 = vadd.f32 %v2323_v61, %v2280_v44  ;;  %2459 = vmatmul.bf16.gmra.mxu0 %v7833_v53  ;;  %v6875_v44 = vld [vmem:[#allocation5 + $0x24c] sm:$0xf] }
 0x24e   : > { %2547 = vmatmul.bf16.gmra.mxu2 %v7967_v13 }
 0x24f   : > { %2503 = vmatmul.bf16.gmra.mxu1 %v7835_v54  ;;  %v2978_v49 = vmax.f32 %v2324_v14, 0.0 }
 0x251   : > { %2591 = vmatmul.bf16.gmra.mxu3 %v9334_v40  ;;  %v2367_v17 = vpop.f32.mrf.mxu2 }
 0x252   : > { %v2368_v27 = vadd.f32 %v2367_v17, %v8273_v16  ;;  %v2281_v55 = vpop.f32.mrf.mxu0  ;;  %v6811_v17 = vld [vmem:[#allocation5 + $0x4c] sm:$0xf] }
 0x253   : > { %v2282_v35 = vadd.f32 %v2281_v55, %v8204_v43  ;;  %v5391_v43 = vld [vmem:[#allocation5 + $0x58] sm:$0xf0]  ;;  %v5650_v55 = vor.u32 %v6875_v44, %v5647_v15  ;;  %v6839_v44 = vld [vmem:[#allocation5 + $0x12c] sm:$0xf] }
 0x254   : > { %v2411_v20 = vpop.f32.mrf.mxu3  ;;  %v2325_v62 = vpop.f32.mrf.mxu1  ;;  %v5394_v14 = vor.u32 %v6811_v17, %v5391_v43 }
 0x255   : > { %v8292_v28 = vadd.f32 %v2411_v20, %v2368_v27  ;;  %v2326_v21 = vadd.f32 %v2325_v62, %v2282_v35  ;;  %2754 = vmatpush.bf16.msrb.mxu3 %v5650_v55  ;;  %v6807_v55 = vld [vmem:[#allocation5 + $0x2c] sm:$0xf] }
 0x256   : > { %2666 = vmatpush.bf16.msrb.mxu1 %v5394_v14 }
 0x257   : > { %v2982_v10 = vmax.f32 %v2326_v21, 0.0 }
 0x259   : > { %v8294_v58 = vpack.c.bf16 %v2982_v10, %v2978_v49  ;;  %v2369_v25 = vpop.f32.mrf.mxu2 }
 0x25a   : > { %v2370_v61 = vadd.f32 %v2369_v25, %v8273_v16  ;;  %v2284_v4 = vpop.f32.mrf.mxu0 }
 0x25b   : > { %9351 = vst [vmem:[#allocation35_spill] sm:$0xff] %v8294_v58  ;;  %v2285_v27 = vadd.f32 %v2284_v4, %v8213_v63 }
 0x25c   : > { %v2413_v26 = vpop.f32.mrf.mxu3  ;;  %v2328_v20 = vpop.f32.mrf.mxu1 }
 0x25d   : > { %v8298_v35 = vadd.f32 %v2413_v26, %v2370_v61  ;;  %v2329_v62 = vadd.f32 %v2328_v20, %v2285_v27  ;;  %2464 = vmatmul.bf16.gmra.mxu0 %v7853_v11  ;;  %v5503_v61 = vld [vmem:[#allocation5 + $0x138] sm:$0xf0]  ;;  %v6871_v27 = vld [vmem:[#allocation5 + $0x22c] sm:$0xf] }
 0x25e   : > { %2552 = vmatmul.bf16.gmra.mxu2 %v7990_v42  ;;  %v5506_v4 = vor.u32 %v6839_v44, %v5503_v61  ;;  %v5631_v20 = vld [vmem:[#allocation5 + $0x238] sm:$0xf0]  ;;  %v6835_v44 = vld [vmem:[#allocation5 + $0x10c] sm:$0xf] }
 0x25f   : > { %2508 = vmatmul.bf16.gmra.mxu1 %v7855_v12  ;;  %v2986_v45 = vmax.f32 %v2329_v62, 0.0  ;;  %v5487_v61 = vld [vmem:[#allocation5 + $0x118] sm:$0xf0] }
 0x260   : > { %2711 = vmatpush.bf16.msrb.mxu2 %v5506_v4 }
 0x261   : > { %2596 = vmatmul.bf16.gmra.mxu3 %v9337_v50  ;;  %v2372_v21 = vpop.f32.mrf.mxu2 }
 0x262   : > { %v2373_v63 = vadd.f32 %v2372_v21, %v8273_v16  ;;  %v2286_v10 = vpop.f32.mrf.mxu0 }
 0x263   : > { %v2287_v25 = vadd.f32 %v2286_v10, %v8217_v39  ;;  %v5634_v10 = vor.u32 %v6871_v27, %v5631_v20  ;;  %v6867_v20 = vld [vmem:[#allocation5 + $0x20c] sm:$0xf] }
 0x264   : > { %v2416_v49 = vpop.f32.mrf.mxu3  ;;  %v2330_v6 = vpop.f32.mrf.mxu1 }
 0x265   : > { %v8306_v56 = vadd.f32 %v2416_v49, %v2373_v63  ;;  %v2331_v26 = vadd.f32 %v2330_v6, %v2287_v25  ;;  %v5375_v63 = vld [vmem:[#allocation5 + $0x38] sm:$0xf0]  ;;  %2755 = vmatpush.bf16.msrb.mxu3 %v5634_v10 }
 0x266   : > { %v5378_v25 = vor.u32 %v6807_v55, %v5375_v63  ;;  %v5615_v55 = vld [vmem:[#allocation5 + $0x218] sm:$0xf0] }
 0x267   : > { %v2990_v15 = vmax.f32 %v2331_v26, 0.0  ;;  %v5490_v26 = vor.u32 %v6835_v44, %v5487_v61  ;;  %v5359_v44 = vld [vmem:[#allocation5 + $0x18] sm:$0xf0] }
 0x268   : > { %2667 = vmatpush.bf16.msrb.mxu1 %v5378_v25  ;;  %v6803_v25 = vld [vmem:[#allocation5 + $0xc] sm:$0xf] }
 0x269   : > { %v8308_v17 = vpack.c.bf16 %v2990_v15, %v2986_v45  ;;  %v2374_v43 = vpop.f32.mrf.mxu2  ;;  %2712 = vmatpush.bf16.msrb.mxu2 %v5490_v26 }
 0x26a   : > { %v2375_v14 = vadd.f32 %v2374_v43, %v8273_v16  ;;  %v2289_v39 = vpop.f32.mrf.mxu0 }
 0x26b   : > { %9352 = vst [vmem:[#allocation37_spill] sm:$0xff] %v8308_v17  ;;  %v2290_v49 = vadd.f32 %v2289_v39, %v8226_v9 }
 0x26c   : > { %v2418_v21 = vpop.f32.mrf.mxu3  ;;  %v2333_v58 = vpop.f32.mrf.mxu1 }
 0x26d   : > { %v8312_v6 = vadd.f32 %v2418_v21, %v2375_v14  ;;  %v2334_v62 = vadd.f32 %v2333_v58, %v2290_v49  ;;  %2469 = vmatmul.bf16.gmra.mxu0 %v7873_v36  ;;  %v5618_v21 = vor.u32 %v6867_v20, %v5615_v55  ;;  %v6111_v20 = vld [vmem:[#allocation5 + $0x5f8] sm:$0xf0] }
 0x26e   : > { %2557 = vmatmul.bf16.gmra.mxu2 %v8013_v18 }
 0x26f   : > { %2513 = vmatmul.bf16.gmra.mxu1 %v7875_v37  ;;  %v2994_v39 = vmax.f32 %v2334_v62, 0.0  ;;  %2756 = vmatpush.bf16.msrb.mxu3 %v5618_v21  ;;  %v9354_v62 = vld [vmem:[#allocation41_spill] sm:$0xff] }
 0x270   : > { %v5855_v21 = vld [vmem:[#allocation5 + $0x3f8] sm:$0xf0] }
 0x271   : > { %2601 = vmatmul.bf16.gmra.mxu3 %v9340_v60  ;;  %v2377_v4 = vpop.f32.mrf.mxu2 }
 0x272   : > { %v2378_v9 = vadd.f32 %v2377_v4, %v8273_v16  ;;  %v2291_v15 = vpop.f32.mrf.mxu0 }
 0x273   : > { %v2292_v58 = vadd.f32 %v2291_v15, %v8230_v24  ;;  %v5362_v24 = vor.u32 %v6803_v25, %v5359_v44 }
 0x274   : > { %v2421_v45 = vpop.f32.mrf.mxu3  ;;  %v2335_v43 = vpop.f32.mrf.mxu1 }
 0x275   : > { %v8320_v27 = vadd.f32 %v2421_v45, %v2378_v9  ;;  %v2336_v14 = vadd.f32 %v2335_v43, %v2292_v58  ;;  %2668 = vmatpush.bf16.msrb.mxu1 %v5362_v24  ;;  %v6991_v43 = vld [vmem:[#allocation5 + $0x5ec] sm:$0xf] }
 0x276   : > { %v6114_v55 = vor.u32 %v6991_v43, %v6111_v20  ;;  %v5983_v43 = vld [vmem:[#allocation5 + $0x4f8] sm:$0xf0] }
 0x277   : > { %v2998_v10 = vmax.f32 %v2336_v14, 0.0  ;;  %v6927_v14 = vld [vmem:[#allocation5 + $0x3ec] sm:$0xf] }
 0x278   : > { %2881 = vmatpush.bf16.msra.mxu2 %v6114_v55 }
 0x279   : > { %v8322_v63 = vpack.c.bf16 %v2998_v10, %v2994_v39  ;;  %v2379_v49 = vpop.f32.mrf.mxu2  ;;  %v6995_v39 = vld [vmem:[#allocation5 + $0x60c] sm:$0xf]  ;;  %v5858_v10 = vor.u32 %v6927_v14, %v5855_v21 }
 0x27a   : > { %v2380_v61 = vadd.f32 %v2379_v49, %v8273_v16  ;;  %v2294_v4 = vpop.f32.mrf.mxu0  ;;  %v6127_v49 = vld [vmem:[#allocation5 + $0x618] sm:$0xf0] }
 0x27b   : > { %9353 = vst [vmem:[#allocation39_spill] sm:$0xff] %v8322_v63  ;;  %v2295_v9 = vadd.f32 %v2294_v4, %v8239_v0  ;;  %2793 = vmatpush.bf16.msra.mxu0 %v5858_v10 }
 0x27c   : > { %v2423_v26 = vpop.f32.mrf.mxu3  ;;  %v2338_v45 = vpop.f32.mrf.mxu1 }
 0x27d   : > { %v8326_v15 = vadd.f32 %v2423_v26, %v2380_v61  ;;  %v2339_v58 = vadd.f32 %v2338_v45, %v2295_v9  ;;  %2474 = vmatmul.bf16.gmra.mxu0 %v7893_v1  ;;  %v6130_v26 = vor.u32 %v6995_v39, %v6127_v49  ;;  %v6959_v45 = vld [vmem:[#allocation5 + $0x4ec] sm:$0xf] }
 0x27e   : > { %2562 = vmatmul.bf16.gmra.mxu2 %v9354_v62  ;;  %v5986_v63 = vor.u32 %v6959_v45, %v5983_v43 }
 0x27f   : > { %2518 = vmatmul.bf16.gmra.mxu1 %v7895_v2  ;;  %2932 = vmatpush.bf16.msra.mxu3 %v6130_v26  ;;  %v3002_v17 = vmax.f32 %v2339_v58, 0.0  ;;  %v6095_v26 = vld [vmem:[#allocation5 + $0x5d8] sm:$0xf0] }
 0x280   : > { %2837 = vmatpush.bf16.msra.mxu1 %v5986_v63  ;;  %v6923_v63 = vld [vmem:[#allocation5 + $0x3cc] sm:$0xf]  ;;  %v5839_v58 = vld [vmem:[#allocation5 + $0x3d8] sm:$0xf0] }
 0x281   : > { %2606 = vmatmul.bf16.gmra.mxu3 %v9343_v34  ;;  %v2382_v0 = vpop.f32.mrf.mxu2 }
 0x282   : > { %v2383_v25 = vadd.f32 %v2382_v0, %v8273_v16  ;;  %v2296_v61 = vpop.f32.mrf.mxu0 }
 0x283   : > { %v2297_v4 = vadd.f32 %v2296_v61, %v8243_v8  ;;  %v6987_v61 = vld [vmem:[#allocation5 + $0x5cc] sm:$0xf] }
 0x284   : > { %v2426_v44 = vpop.f32.mrf.mxu3  ;;  %v2340_v24 = vpop.f32.mrf.mxu1 }
 0x285   : > { %v8334_v9 = vadd.f32 %v2426_v44, %v2383_v25  ;;  %v2341_v20 = vadd.f32 %v2340_v24, %v2297_v4  ;;  %v5842_v4 = vor.u32 %v6923_v63, %v5839_v58  ;;  %v5967_v24 = vld [vmem:[#allocation5 + $0x4d8] sm:$0xf0] }
 0x287   : > { %v3006_v14 = vmax.f32 %v2341_v20, 0.0  ;;  %2794 = vmatpush.bf16.msra.mxu0 %v5842_v4 }
 0x289   : > { %v8336_v21 = vpack.c.bf16 %v3006_v14, %v3002_v17  ;;  %v2384_v0 = vpop.f32.mrf.mxu2  ;;  %v6098_v17 = vor.u32 %v6987_v61, %v6095_v26 }
 0x28a   : > { %v2385_v55 = vadd.f32 %v2384_v0, %v8273_v16  ;;  %v2299_v49 = vpop.f32.mrf.mxu0 }
 0x28b   : > { %v2300_v8 = vadd.f32 %v2299_v49, %v8252_v32  ;;  %2882 = vmatpush.bf16.msra.mxu2 %v6098_v17  ;;  %v6955_v32 = vld [vmem:[#allocation5 + $0x4cc] sm:$0xf] }
 0x28c   : > { %v2428_v39 = vpop.f32.mrf.mxu3  ;;  %v2343_v10 = vpop.f32.mrf.mxu1  ;;  %v5970_v43 = vor.u32 %v6955_v32, %v5967_v24 }
 0x28d   : > { %v8340_v25 = vadd.f32 %v2428_v39, %v2385_v55  ;;  %v2344_v44 = vadd.f32 %v2343_v10, %v2300_v8  ;;  %2479 = vmatmul.bf16.gmra.mxu0 %v7913_v33 }
 0x28e   : > { %2567 = vmatmul.bf16.gmra.mxu2 %v8059_v22  ;;  %2838 = vmatpush.bf16.msra.mxu1 %v5970_v43 }
 0x28f   : > { %2523 = vmatmul.bf16.gmra.mxu1 %v7915_v38  ;;  %v3010_v10 = vmax.f32 %v2344_v44, 0.0 }
 0x291   : > { %2611 = vmatmul.bf16.gmra.mxu3 %v9346_v23  ;;  %v2387_v45 = vpop.f32.mrf.mxu2 }
 0x292   : > { %v2388_v20 = vadd.f32 %v2387_v45, %v8273_v16  ;;  %v2301_v0 = vpop.f32.mrf.mxu0 }
 0x293   : > { %v2302_v55 = vadd.f32 %v2301_v0, %v8256_v46  ;;  %v6983_v46 = vld [vmem:[#allocation5 + $0x5ac] sm:$0xf]  ;;  %v6079_v0 = vld [vmem:[#allocation5 + $0x5b8] sm:$0xf0] }
 0x294   : > { %v2431_v14 = vpop.f32.mrf.mxu3  ;;  %v2345_v39 = vpop.f32.mrf.mxu1  ;;  %v6082_v44 = vor.u32 %v6983_v46, %v6079_v0 }
 0x295   : > { %v8348_v49 = vadd.f32 %v2431_v14, %v2388_v20  ;;  %v2346_v8 = vadd.f32 %v2345_v39, %v2302_v55  ;;  %v6919_v20 = vld [vmem:[#allocation5 + $0x3ac] sm:$0xf]  ;;  %v5823_v14 = vld [vmem:[#allocation5 + $0x3b8] sm:$0xf0] }
 0x296   : > { %v5826_v55 = vor.u32 %v6919_v20, %v5823_v14  ;;  %2883 = vmatpush.bf16.msra.mxu2 %v6082_v44  ;;  %v5951_v39 = vld [vmem:[#allocation5 + $0x4b8] sm:$0xf0] }
 0x297   : > { %v3014_v61 = vmax.f32 %v2346_v8, 0.0 }
 0x298   : > { %2795 = vmatpush.bf16.msra.mxu0 %v5826_v55 }
 0x299   : > { %v8350_v26 = vpack.c.bf16 %v3014_v61, %v3010_v10  ;;  %v2389_v17 = vpop.f32.mrf.mxu2 }
 0x29a   : > { %v2390_v63 = vadd.f32 %v2389_v17, %v8273_v16  ;;  %v2304_v32 = vpop.f32.mrf.mxu0 }
 0x29b   : > { %v2305_v24 = vadd.f32 %v2304_v32, %v8264_v19  ;;  %v6951_v19 = vld [vmem:[#allocation5 + $0x4ac] sm:$0xf] }
 0x29c   : > { %v2433_v58 = vpop.f32.mrf.mxu3  ;;  %v2348_v45 = vpop.f32.mrf.mxu1  ;;  %v5954_v8 = vor.u32 %v6951_v19, %v5951_v39 }
 0x29d   : > { %v8354_v4 = vadd.f32 %v2433_v58, %v2390_v63  ;;  %v2349_v43 = vadd.f32 %v2348_v45, %v2305_v24  ;;  %6145 = vmatmul.msk.bf16.vlgmr.msrb.gmra.mxu0 %vm1715_vm0, %v7931_v7  ;;  %v6979_v24 = vld [vmem:[#allocation5 + $0x58c] sm:$0xf]  ;;  %v6063_v45 = vld [vmem:[#allocation5 + $0x598] sm:$0xf0] }
 0x29e   : > { %2713 = vmatmul.bf16.vlgmr.msrb.gmra.mxu2 %v7791_v51  ;;  %2839 = vmatpush.bf16.msra.mxu1 %v5954_v8 }
 0x29f   : > { %2669 = vmatmul.bf16.vlgmr.msrb.gmra.mxu1 %v7789_v47  ;;  %v3018_v46 = vmax.f32 %v2349_v43, 0.0 }
 0x2a1   : > { %2757 = vmatmul.bf16.vlgmr.msrb.gmra.mxu3 %v7793_v52  ;;  %v2392_v10 = vpop.f32.mrf.mxu2  ;;  %v6066_v52 = vor.u32 %v6979_v24, %v6063_v45  ;;  %v9357_v24 = vld [vmem:[#allocation21_spill] sm:$0xff] }
 0x2a2   : > { %v2393_v61 = vadd.f32 %v2392_v10, %v8273_v16  ;;  %v2306_v63 = vpop.f32.mrf.mxu0  ;;  %v6915_v10 = vld [vmem:[#allocation5 + $0x38c] sm:$0xf] }
 0x2a3   : > { %v2307_v58 = vadd.f32 %v2306_v63, %v8267_v31  ;;  %2884 = vmatpush.bf16.msra.mxu2 %v6066_v52  ;;  %v9355_v63 = vld [vmem:[#allocation34_spill] sm:$0xff] }
 0x2a4   : > { %v2436_v17 = vpop.f32.mrf.mxu3  ;;  %v2350_v32 = vpop.f32.mrf.mxu1 }
 0x2a5   : > { %v8363_v47 = vadd.f32 %v2436_v17, %v2393_v61  ;;  %v2351_v51 = vadd.f32 %v2350_v32, %v2307_v58  ;;  %v5807_v61 = vld [vmem:[#allocation5 + $0x398] sm:$0xf0]  ;;  %v6947_v58 = vld [vmem:[#allocation5 + $0x48c] sm:$0xf] }
 0x2a6   : > { %v5810_v43 = vor.u32 %v6915_v10, %v5807_v61  ;;  %v5935_v32 = vld [vmem:[#allocation5 + $0x498] sm:$0xf0] }
 0x2a7   : > { %v3022_v0 = vmax.f32 %v2351_v51, 0.0  ;;  %v9356_v51 = vld [vmem:[#allocation20_spill] sm:$0xff]  ;;  %v5791_v61 = vld [vmem:[#allocation5 + $0x378] sm:$0xf0] }
 0x2a8   : > { %2796 = vmatpush.bf16.msra.mxu0 %v5810_v43 }
 0x2a9   : > { %v8365_v44 = vpack.c.bf16 %v3022_v0, %v3018_v46  ;;  %v2394_v20 = vpop.f32.mrf.mxu2 }
 0x2aa   : > { %v2395_v14 = vadd.f32 %v2394_v20, %v8273_v16  ;;  %v2450_v19 = vpop.f32.mrf.mxu0  ;;  %v5938_v16 = vor.u32 %v6947_v58, %v5935_v32 }
 0x2ab   : > { %v2451_v39 = vadd.f32 %v2450_v19, %v8278_v59  ;;  %v6975_v19 = vld [vmem:[#allocation5 + $0x56c] sm:$0xf] }
 0x2ac   : > { %v2438_v55 = vpop.f32.mrf.mxu3  ;;  %v2494_v31 = vpop.f32.mrf.mxu1  ;;  %2840 = vmatpush.bf16.msra.mxu1 %v5938_v16  ;;  %v6943_v16 = vld [vmem:[#allocation5 + $0x46c] sm:$0xf] }
 0x2ad   : > { %v8369_v8 = vadd.f32 %v2438_v55, %v2395_v14  ;;  %v2495_v17 = vadd.f32 %v2494_v31, %v2451_v39  ;;  %6146 = vmatmul.msk.bf16.gmra.mxu0 %vm1715_vm0, %v9355_v63  ;;  %v6047_v39 = vld [vmem:[#allocation5 + $0x578] sm:$0xf0]  ;;  %v6911_v31 = vld [vmem:[#allocation5 + $0x36c] sm:$0xf] }
 0x2ae   : > { %2718 = vmatmul.bf16.gmra.mxu2 %v9357_v24  ;;  %v6050_v10 = vor.u32 %v6975_v19, %v6047_v39  ;;  %v5794_v58 = vor.u32 %v6911_v31, %v5791_v61 }
 0x2af   : > { %2674 = vmatmul.bf16.gmra.mxu1 %v9356_v51 }
 0x2b0   : > { %2885 = vmatpush.bf16.msra.mxu2 %v6050_v10  ;;  %2797 = vmatpush.bf16.msra.mxu0 %v5794_v58 }
 0x2b1   : > { %2762 = vmatmul.bf16.gmra.mxu3 %v7813_v29  ;;  %v2538_v59 = vpop.f32.mrf.mxu2 }
 0x2b2   : > { %v2539_v45 = vadd.f32 %v2538_v59, %v2495_v17  ;;  %v2452_v46 = vpop.f32.mrf.mxu0  ;;  %v5919_v59 = vld [vmem:[#allocation5 + $0x478] sm:$0xf0] }
 0x2b3   : > { %v2453_v0 = vadd.f32 %v2452_v46, %v8284_v41  ;;  %v5922_v46 = vor.u32 %v6943_v16, %v5919_v59  ;;  %v5903_v16 = vld [vmem:[#allocation5 + $0x458] sm:$0xf0] }
 0x2b4   : > { %v2582_v52 = vpop.f32.mrf.mxu3  ;;  %v2496_v20 = vpop.f32.mrf.mxu1 }
 0x2b5   : > { %v8377_v14 = vadd.f32 %v2582_v52, %v2539_v45  ;;  %v2497_v55 = vadd.f32 %v2496_v20, %v2453_v0  ;;  %v9358_v52 = vld [vmem:[#allocation36_spill] sm:$0xff]  ;;  %v9359_v0 = vld [vmem:[#allocation22_spill] sm:$0xff]  ;;  %v9360_v20 = vld [vmem:[#allocation23_spill] sm:$0xff]  ;;  %2841 = vmatpush.bf16.msra.mxu1 %v5922_v46 }
 0x2b9   : > { %v2540_v29 = vpop.f32.mrf.mxu2 }
 0x2ba   : > { %v2541_v43 = vadd.f32 %v2540_v29, %v2497_v55  ;;  %v2455_v17 = vpop.f32.mrf.mxu0  ;;  %v6971_v29 = vld [vmem:[#allocation5 + $0x54c] sm:$0xf] }
 0x2bb   : > { %v2456_v51 = vadd.f32 %v2455_v17, %v8292_v28 }
 0x2bc   : > { %v2584_v32 = vpop.f32.mrf.mxu3  ;;  %v2499_v24 = vpop.f32.mrf.mxu1 }
 0x2bd   : > { %v8380_v41 = vadd.f32 %v2584_v32, %v2541_v43  ;;  %v2500_v45 = vadd.f32 %v2499_v24, %v2456_v51  ;;  %6147 = vmatmul.msk.bf16.gmra.mxu0 %vm1715_vm0, %v9358_v52  ;;  %v6031_v43 = vld [vmem:[#allocation5 + $0x558] sm:$0xf0]  ;;  %v6907_v32 = vld [vmem:[#allocation5 + $0x34c] sm:$0xf] }
 0x2be   : > { %2723 = vmatmul.bf16.gmra.mxu2 %v9360_v20  ;;  %v6034_v17 = vor.u32 %v6971_v29, %v6031_v43  ;;  %v5775_v51 = vld [vmem:[#allocation5 + $0x358] sm:$0xf0]  ;;  %v6939_v24 = vld [vmem:[#allocation5 + $0x44c] sm:$0xf] }
 0x2bf   : > { %2679 = vmatmul.bf16.gmra.mxu1 %v9359_v0  ;;  %v5778_v59 = vor.u32 %v6907_v32, %v5775_v51 }
 0x2c0   : > { %2886 = vmatpush.bf16.msra.mxu2 %v6034_v17 }
 0x2c1   : > { %2767 = vmatmul.bf16.gmra.mxu3 %v7833_v53  ;;  %v2543_v55 = vpop.f32.mrf.mxu2  ;;  %v5906_v53 = vor.u32 %v6939_v24, %v5903_v16  ;;  %2798 = vmatpush.bf16.msra.mxu0 %v5778_v59  ;;  %v6967_v24 = vld [vmem:[#allocation5 + $0x52c] sm:$0xf]  ;;  %v6015_v16 = vld [vmem:[#allocation5 + $0x538] sm:$0xf0] }
 0x2c2   : > { %v2544_v19 = vadd.f32 %v2543_v55, %v2500_v45  ;;  %v2457_v39 = vpop.f32.mrf.mxu0 }
 0x2c3   : > { %v2458_v31 = vadd.f32 %v2457_v39, %v8298_v35  ;;  %2842 = vmatpush.bf16.msra.mxu1 %v5906_v53  ;;  %v9361_v39 = vld [vmem:[#allocation38_spill] sm:$0xff]  ;;  %v6018_v53 = vor.u32 %v6967_v24, %v6015_v16  ;;  %v6963_v24 = vld [vmem:[#allocation5 + $0x50c] sm:$0xf]  ;;  %v5999_v16 = vld [vmem:[#allocation5 + $0x518] sm:$0xf0] }
 0x2c4   : > { %v2587_v28 = vpop.f32.mrf.mxu3  ;;  %v2501_v10 = vpop.f32.mrf.mxu1 }
 0x2c5   : > { %v8388_v61 = vadd.f32 %v2587_v28, %v2544_v19  ;;  %v2502_v58 = vadd.f32 %v2501_v10, %v2458_v31  ;;  %v9362_v31 = vld [vmem:[#allocation24_spill] sm:$0xff]  ;;  %v9363_v10 = vld [vmem:[#allocation25_spill] sm:$0xff]  ;;  %2887 = vmatpush.bf16.msra.mxu2 %v6018_v53 }
 0x2c9   : > { %v2545_v46 = vpop.f32.mrf.mxu2 }
 0x2ca   : > { %v2546_v45 = vadd.f32 %v2545_v46, %v2502_v58  ;;  %v2460_v35 = vpop.f32.mrf.mxu0  ;;  %v6903_v46 = vld [vmem:[#allocation5 + $0x32c] sm:$0xf] }
 0x2cb   : > { %v2461_v20 = vadd.f32 %v2460_v35, %v8306_v56 }
 0x2cc   : > { %v2589_v0 = vpop.f32.mrf.mxu3  ;;  %v2504_v55 = vpop.f32.mrf.mxu1 }
 0x2cd   : > { %v8391_v19 = vadd.f32 %v2589_v0, %v2546_v45  ;;  %v2505_v28 = vadd.f32 %v2504_v55, %v2461_v20  ;;  %6148 = vmatmul.msk.bf16.gmra.mxu0 %vm1715_vm0, %v9361_v39  ;;  %v5759_v45 = vld [vmem:[#allocation5 + $0x338] sm:$0xf0]  ;;  %v6935_v0 = vld [vmem:[#allocation5 + $0x42c] sm:$0xf] }
 0x2ce   : > { %2728 = vmatmul.bf16.gmra.mxu2 %v9363_v10  ;;  %v5762_v35 = vor.u32 %v6903_v46, %v5759_v45  ;;  %v5887_v20 = vld [vmem:[#allocation5 + $0x438] sm:$0xf0] }
 0x2cf   : > { %2684 = vmatmul.bf16.gmra.mxu1 %v9362_v31 }
 0x2d0   : > { %2799 = vmatpush.bf16.msra.mxu0 %v5762_v35 }
 0x2d1   : > { %2772 = vmatmul.bf16.gmra.mxu3 %v7853_v11  ;;  %v2548_v29 = vpop.f32.mrf.mxu2  ;;  %v5890_v11 = vor.u32 %v6935_v0, %v5887_v20 }
 0x2d2   : > { %v2549_v43 = vadd.f32 %v2548_v29, %v2505_v28  ;;  %v2462_v32 = vpop.f32.mrf.mxu0 }
 0x2d3   : > { %v2463_v17 = vadd.f32 %v2462_v32, %v8312_v6  ;;  %2843 = vmatpush.bf16.msra.mxu1 %v5890_v11  ;;  %v9364_v32 = vld [vmem:[#allocation40_spill] sm:$0xff]  ;;  %v6899_v11 = vld [vmem:[#allocation5 + $0x30c] sm:$0xf] }
 0x2d4   : > { %v2592_v58 = vpop.f32.mrf.mxu3  ;;  %v2506_v56 = vpop.f32.mrf.mxu1 }
 0x2d5   : > { %v8399_v51 = vadd.f32 %v2592_v58, %v2549_v43  ;;  %v2507_v59 = vadd.f32 %v2506_v56, %v2463_v17  ;;  %v9365_v17 = vld [vmem:[#allocation26_spill] sm:$0xff]  ;;  %v9366_v56 = vld [vmem:[#allocation27_spill] sm:$0xff] }
 0x2d9   : > { %v2550_v55 = vpop.f32.mrf.mxu2 }
 0x2da   : > { %v2551_v28 = vadd.f32 %v2550_v55, %v2507_v59  ;;  %v2465_v6 = vpop.f32.mrf.mxu0  ;;  %v6002_v59 = vor.u32 %v6963_v24, %v5999_v16  ;;  %v5743_v55 = vld [vmem:[#allocation5 + $0x318] sm:$0xf0] }
 0x2db   : > { %v2466_v10 = vadd.f32 %v2465_v6, %v8320_v27  ;;  %v6931_v6 = vld [vmem:[#allocation5 + $0x40c] sm:$0xf] }
 0x2dc   : > { %v2594_v31 = vpop.f32.mrf.mxu3  ;;  %v2509_v29 = vpop.f32.mrf.mxu1  ;;  %2888 = vmatpush.bf16.msra.mxu2 %v6002_v59 }
 0x2dd   : > { %v8402_v43 = vadd.f32 %v2594_v31, %v2551_v28  ;;  %v2510_v58 = vadd.f32 %v2509_v29, %v2466_v10  ;;  %6149 = vmatmul.msk.bf16.gmra.mxu0 %vm1715_vm0, %v9364_v32  ;;  %v5746_v31 = vor.u32 %v6899_v11, %v5743_v55  ;;  %v5871_v10 = vld [vmem:[#allocation5 + $0x418] sm:$0xf0] }
 0x2de   : > { %2733 = vmatmul.bf16.gmra.mxu2 %v9366_v56 }
 0x2df   : > { %2689 = vmatmul.bf16.gmra.mxu1 %v9365_v17  ;;  %2800 = vmatpush.bf16.msra.mxu0 %v5746_v31 }
 0x2e1   : > { %2777 = vmatmul.bf16.gmra.mxu3 %v7873_v36  ;;  %v2553_v53 = vpop.f32.mrf.mxu2  ;;  %v5874_v36 = vor.u32 %v6931_v6, %v5871_v10 }
 0x2e2   : > { %v2554_v46 = vadd.f32 %v2553_v53, %v2510_v58  ;;  %v2467_v27 = vpop.f32.mrf.mxu0  ;;  %v9367_v53 = vld [vmem:[#allocation43_spill] sm:$0xff] }
 0x2e3   : > { %v2468_v0 = vadd.f32 %v2467_v27, %v8326_v15  ;;  %2844 = vmatpush.bf16.msra.mxu1 %v5874_v36 }
 0x2e4   : > { %v2597_v45 = vpop.f32.mrf.mxu3  ;;  %v2511_v35 = vpop.f32.mrf.mxu1 }
 0x2e5   : > { %v8410_v20 = vadd.f32 %v2597_v45, %v2554_v46  ;;  %v2512_v28 = vadd.f32 %v2511_v35, %v2468_v0  ;;  %v9368_v46 = vld [vmem:[#allocation28_spill] sm:$0xff]  ;;  %v9369_v45 = vld [vmem:[#allocation29_spill] sm:$0xff] }
 0x2e9   : > { %v2555_v29 = vpop.f32.mrf.mxu2 }
 0x2ea   : > { %v2556_v17 = vadd.f32 %v2555_v29, %v2512_v28  ;;  %v2470_v56 = vpop.f32.mrf.mxu0 }
 0x2eb   : > { %v2471_v24 = vadd.f32 %v2470_v56, %v8334_v9 }
 0x2ec   : > { %v2599_v58 = vpop.f32.mrf.mxu3  ;;  %v2514_v16 = vpop.f32.mrf.mxu1 }
 0x2ed   : > { %v8413_v15 = vadd.f32 %v2599_v58, %v2556_v17  ;;  %v2515_v59 = vadd.f32 %v2514_v16, %v2471_v24  ;;  %6150 = vmatmul.msk.bf16.gmra.mxu0 %vm1715_vm0, %v9367_v53  ;;  %v9370_v24 = vld [vmem:[#allocation45_spill] sm:$0xff]  ;;  %v9371_v16 = vld [vmem:[#allocation30_spill] sm:$0xff] }
 0x2ee   : > { %2738 = vmatmul.bf16.gmra.mxu2 %v9369_v45 }
 0x2ef   : > { %2694 = vmatmul.bf16.gmra.mxu1 %v9368_v46 }
 0x2f1   : > { %2782 = vmatmul.bf16.gmra.mxu3 %v7893_v1  ;;  %v2558_v27 = vpop.f32.mrf.mxu2 }
 0x2f2   : > { %v2559_v0 = vadd.f32 %v2558_v27, %v2515_v59  ;;  %v2472_v11 = vpop.f32.mrf.mxu0 }
 0x2f3   : > { %v2473_v55 = vadd.f32 %v2472_v11, %v8340_v25  ;;  %v9372_v25 = vld [vmem:[#allocation31_spill] sm:$0xff] }
 0x2f4   : > { %v2602_v35 = vpop.f32.mrf.mxu3  ;;  %v2516_v9 = vpop.f32.mrf.mxu1 }
 0x2f5   : > { %v8421_v28 = vadd.f32 %v2602_v35, %v2559_v0  ;;  %v2517_v31 = vadd.f32 %v2516_v9, %v2473_v55 }
 0x2f9   : > { %v2560_v6 = vpop.f32.mrf.mxu2 }
 0x2fa   : > { %v2561_v10 = vadd.f32 %v2560_v6, %v2517_v31  ;;  %v2475_v29 = vpop.f32.mrf.mxu0 }
 0x2fb   : > { %v2476_v17 = vadd.f32 %v2475_v29, %v8348_v49 }
 0x2fc   : > { %v2604_v36 = vpop.f32.mrf.mxu3  ;;  %v2519_v58 = vpop.f32.mrf.mxu1 }
 0x2fd   : > { %v8424_v56 = vadd.f32 %v2604_v36, %v2561_v10  ;;  %v2520_v1 = vadd.f32 %v2519_v58, %v2476_v17  ;;  %6151 = vmatmul.msk.bf16.gmra.mxu0 %vm1715_vm0, %v9370_v24  ;;  %v9373_v17 = vld [vmem:[#allocation32_spill] sm:$0xff]  ;;  %v9374_v58 = vld [vmem:[#allocation33_spill] sm:$0xff] }
 0x2fe   : > { %2743 = vmatmul.bf16.gmra.mxu2 %v9372_v25 }
 0x2ff   : > { %2699 = vmatmul.bf16.gmra.mxu1 %v9371_v16 }
 0x301   : > { %2787 = vmatmul.bf16.gmra.mxu3 %v7913_v33  ;;  %v2563_v59 = vpop.f32.mrf.mxu2 }
 0x302   : > { %v2564_v46 = vadd.f32 %v2563_v59, %v2520_v1  ;;  %v2477_v27 = vpop.f32.mrf.mxu0  ;;  %v7092_v1 = vld [vmem:[#allocation8 + $0x2ec] sm:$0xf0] }
 0x303   : > { %v2478_v0 = vadd.f32 %v2477_v27, %v8354_v4  ;;  %v6529_v4 = vld [vmem:[#allocation8 + $0x2e0] sm:$0xf] }
 0x304   : > { %v2607_v45 = vpop.f32.mrf.mxu3  ;;  %v2521_v49 = vpop.f32.mrf.mxu1  ;;  %v6530_v16 = vor.u32 %v7092_v1, %v6529_v4 }
 0x305   : > { %v8432_v35 = vadd.f32 %v2607_v45, %v2564_v46  ;;  %v2522_v11 = vadd.f32 %v2521_v49, %v2478_v0  ;;  %v7028_v49 = vld [vmem:[#allocation8 + $0xec] sm:$0xf0] }
 0x306   : > { %3919 = vmatpush.bf16.msrb.mxu2 %v6530_v16 }
 0x309   : > { %v2565_v55 = vpop.f32.mrf.mxu2 }
 0x30a   : > { %v2566_v9 = vadd.f32 %v2565_v55, %v2522_v11  ;;  %v2480_v6 = vpop.f32.mrf.mxu0  ;;  %v6657_v11 = vld [vmem:[#allocation8 + $0x3e0] sm:$0xf] }
 0x30b   : > { %v2481_v10 = vadd.f32 %v2480_v6, %v8363_v47  ;;  %v6401_v6 = vld [vmem:[#allocation8 + $0x1e0] sm:$0xf] }
 0x30c   : > { %v2609_v31 = vpop.f32.mrf.mxu3  ;;  %v2524_v36 = vpop.f32.mrf.mxu1 }
 0x30d   : > { %v8435_v29 = vadd.f32 %v2609_v31, %v2566_v9  ;;  %v2525_v33 = vadd.f32 %v2524_v36, %v2481_v10  ;;  %2801 = vmatmul.bf16.vlgmr.msra.gmra.mxu0 %v9349_v3  ;;  %v6273_v3 = vld [vmem:[#allocation8 + $0xe0] sm:$0xf]  ;;  %v7124_v31 = vld [vmem:[#allocation8 + $0x3ec] sm:$0xf0] }
 0x30e   : > { %2889 = vmatmul.bf16.vlgmr.msra.gmra.mxu2 %v9374_v58  ;;  %v6274_v9 = vor.u32 %v7028_v49, %v6273_v3  ;;  %v7060_v10 = vld [vmem:[#allocation8 + $0x1ec] sm:$0xf0] }
 0x30f   : > { %2845 = vmatmul.bf16.vlgmr.msra.gmra.mxu1 %v9373_v17  ;;  %v6402_v36 = vor.u32 %v7060_v10, %v6401_v6  ;;  %v7024_v49 = vld [vmem:[#allocation8 + $0xcc] sm:$0xf0]  ;;  %v6385_v10 = vld [vmem:[#allocation8 + $0x1c0] sm:$0xf] }
 0x310   : > { %3831 = vmatpush.bf16.msrb.mxu0 %v6274_v9 }
 0x311   : > { %6152 = vmatmul.msk.bf16.vlgmr.msra.gmra.mxu3 %vm1715_vm0, %v7931_v7  ;;  %v2568_v25 = vpop.f32.mrf.mxu2  ;;  %v6658_v7 = vor.u32 %v7124_v31, %v6657_v11  ;;  %3875 = vmatpush.bf16.msrb.mxu1 %v6402_v36  ;;  %v7120_v11 = vld [vmem:[#allocation8 + $0x3cc] sm:$0xf0] }
 0x312   : > { %v2569_v59 = vadd.f32 %v2568_v25, %v2525_v33  ;;  %v2482_v47 = vpop.f32.mrf.mxu0  ;;  %v7056_v36 = vld [vmem:[#allocation8 + $0x1cc] sm:$0xf0] }
 0x313   : > { %v2483_v45 = vadd.f32 %v2482_v47, %v8369_v8  ;;  %3963 = vmatpush.bf16.msrb.mxu3 %v6658_v7  ;;  %v7327_v8 = vld [vmem:[#allocation7] sm:$0xf]  ;;  %v6513_v47 = vld [vmem:[#allocation8 + $0x2c0] sm:$0xf] }
 0x314   : > { %v2612_v46 = vpop.f32.mrf.mxu3  ;;  %v2526_v27 = vpop.f32.mrf.mxu1  ;;  %v8445_v1 = vperm.slane %v7327_v8, 3 }
 0x315   : > { %v8443_v0 = vadd.f32 %v2612_v46, %v2569_v59  ;;  %v2527_v55 = vadd.f32 %v2526_v27, %v2483_v45  ;;  %v7088_v45 = vld [vmem:[#allocation8 + $0x2cc] sm:$0xf0]  ;;  %v6257_v27 = vld [vmem:[#allocation8 + $0xc0] sm:$0xf] }
 0x316   : > { %v6514_v3 = vor.u32 %v7088_v45, %v6513_v47  ;;  %v6258_v9 = vor.u32 %v7024_v49, %v6257_v27  ;;  %v6497_v49 = vld [vmem:[#allocation8 + $0x2a0] sm:$0xf] }
 0x318   : > { %3920 = vmatpush.bf16.msrb.mxu2 %v6514_v3  ;;  %3832 = vmatpush.bf16.msrb.mxu0 %v6258_v9  ;;  %v7020_v9 = vld [vmem:[#allocation8 + $0xac] sm:$0xf0] }
 0x319   : > { %v2570_v33 = vpop.f32.mrf.mxu2 }
 0x31a   : > { %v2571_v17 = vadd.f32 %v2570_v33, %v2527_v55  ;;  %v2626_v4 = vpop.f32.mrf.mxu0 }
 0x31b   : > { %v2627_v16 = vadd.f32 %v2626_v4, %v8377_v14  ;;  %v6641_v14 = vld [vmem:[#allocation8 + $0x3c0] sm:$0xf] }
 0x31c   : > { %v2614_v58 = vpop.f32.mrf.mxu3  ;;  %v2670_v25 = vpop.f32.mrf.mxu1  ;;  %v6642_v31 = vor.u32 %v7120_v11, %v6641_v14 }
 0x31d   : > { %v8448_v59 = vadd.f32 %v2614_v58, %v2571_v17  ;;  %2806 = vmatmul.bf16.gmra.mxu0 %v7815_v30  ;;  %v2671_v46 = vadd.f32 %v2670_v25, %v8445_v1  ;;  %v2971_v33 = vmax.f32 %v2627_v16, 0.0  ;;  %v6386_v58 = vor.u32 %v7056_v36, %v6385_v10  ;;  %v7084_v16 = vld [vmem:[#allocation8 + $0x2ac] sm:$0xf0] }
 0x31e   : > { %2894 = vmatmul.bf16.gmra.mxu2 %v7948_v57  ;;  %3964 = vmatpush.bf16.msrb.mxu3 %v6642_v31  ;;  %v6498_v11 = vor.u32 %v7084_v16, %v6497_v49 }
 0x31f   : > { %2850 = vmatmul.bf16.gmra.mxu1 %v7946_v48 }
 0x320   : > { %3876 = vmatpush.bf16.msrb.mxu1 %v6386_v58  ;;  %3921 = vmatpush.bf16.msrb.mxu2 %v6498_v11  ;;  %v7080_v11 = vld [vmem:[#allocation8 + $0x28c] sm:$0xf0] }
 0x321   : > { %6153 = vmatmul.msk.bf16.gmra.mxu3 %vm1715_vm0, %v9355_v63  ;;  %v2714_v55 = vpop.f32.mrf.mxu2 }
 0x322   : > { %v2715_v30 = vadd.f32 %v2714_v55, %v2671_v46  ;;  %v2628_v6 = vpop.f32.mrf.mxu0  ;;  %v6241_v55 = vld [vmem:[#allocation8 + $0xa0] sm:$0xf] }
 0x323   : > { %v2629_v48 = vadd.f32 %v2628_v6, %v8380_v41  ;;  %v6242_v31 = vor.u32 %v7020_v9, %v6241_v55  ;;  %v7016_v9 = vld [vmem:[#allocation8 + $0x8c] sm:$0xf0] }
 0x324   : > { %v2758_v7 = vpop.f32.mrf.mxu3  ;;  %v2672_v57 = vpop.f32.mrf.mxu1 }
 0x325   : > { %v8457_v63 = vadd.f32 %v2758_v7, %v2715_v30  ;;  %v2975_v17 = vmax.f32 %v2629_v48, 0.0  ;;  %v2673_v8 = vadd.f32 %v2672_v57, %v8445_v1  ;;  %v7116_v30 = vld [vmem:[#allocation8 + $0x3ac] sm:$0xf0]  ;;  %v6369_v7 = vld [vmem:[#allocation8 + $0x1a0] sm:$0xf]  ;;  %3833 = vmatpush.bf16.msrb.mxu0 %v6242_v31 }
 0x327   : > { %v8459_v4 = vpack.c.bf16 %v2975_v17, %v2971_v33 }
 0x329   : > { %v2716_v25 = vpop.f32.mrf.mxu2 }
 0x32a   : > { %v2717_v46 = vadd.f32 %v2716_v25, %v2673_v8  ;;  %v2631_v45 = vpop.f32.mrf.mxu0 }
 0x32b   : > { %v2632_v41 = vadd.f32 %v2631_v45, %v8388_v61  ;;  %v6625_v61 = vld [vmem:[#allocation8 + $0x3a0] sm:$0xf] }
 0x32c   : > { %v2760_v47 = vpop.f32.mrf.mxu3  ;;  %v2675_v27 = vpop.f32.mrf.mxu1  ;;  %v6626_v48 = vor.u32 %v7116_v30, %v6625_v61  ;;  %v6609_v30 = vld [vmem:[#allocation8 + $0x380] sm:$0xf] }
 0x32d   : > { %v8463_v3 = vadd.f32 %v2760_v47, %v2717_v46  ;;  %2811 = vmatmul.bf16.gmra.mxu0 %v7835_v54  ;;  %v2676_v14 = vadd.f32 %v2675_v27, %v8445_v1  ;;  %v7052_v54 = vld [vmem:[#allocation8 + $0x1ac] sm:$0xf0]  ;;  %v2979_v17 = vmax.f32 %v2632_v41, 0.0  ;;  %v6225_v41 = vld [vmem:[#allocation8 + $0x80] sm:$0xf] }
 0x32e   : > { %2899 = vmatmul.bf16.gmra.mxu2 %v9334_v40  ;;  %v6370_v57 = vor.u32 %v7052_v54, %v6369_v7  ;;  %3965 = vmatpush.bf16.msrb.mxu3 %v6626_v48  ;;  %v6226_v31 = vor.u32 %v7016_v9, %v6225_v41  ;;  %v7112_v7 = vld [vmem:[#allocation8 + $0x38c] sm:$0xf0]  ;;  %v6353_v54 = vld [vmem:[#allocation8 + $0x180] sm:$0xf] }
 0x32f   : > { %2855 = vmatmul.bf16.gmra.mxu1 %v7967_v13  ;;  %v7108_v9 = vld [vmem:[#allocation8 + $0x36c] sm:$0xf0] }
 0x330   : > { %3877 = vmatpush.bf16.msrb.mxu1 %v6370_v57  ;;  %3834 = vmatpush.bf16.msrb.mxu0 %v6226_v31 }
 0x331   : > { %6154 = vmatmul.msk.bf16.gmra.mxu3 %vm1715_vm0, %v9358_v52  ;;  %v2719_v6 = vpop.f32.mrf.mxu2 }
 0x332   : > { %v2720_v10 = vadd.f32 %v2719_v6, %v2676_v14  ;;  %v2633_v13 = vpop.f32.mrf.mxu0  ;;  %v7048_v6 = vld [vmem:[#allocation8 + $0x18c] sm:$0xf0] }
 0x333   : > { %v2634_v40 = vadd.f32 %v2633_v13, %v8391_v19  ;;  %v6481_v19 = vld [vmem:[#allocation8 + $0x280] sm:$0xf] }
 0x334   : > { %v2763_v36 = vpop.f32.mrf.mxu3  ;;  %v2677_v33 = vpop.f32.mrf.mxu1  ;;  %v6482_v55 = vor.u32 %v7080_v11, %v6481_v19  ;;  %v6209_v11 = vld [vmem:[#allocation8 + $0x60] sm:$0xf] }
 0x335   : > { %v8472_v52 = vadd.f32 %v2763_v36, %v2720_v10  ;;  %v2983_v58 = vmax.f32 %v2634_v40, 0.0  ;;  %v2678_v25 = vadd.f32 %v2677_v33, %v8445_v1 }
 0x336   : > { %3922 = vmatpush.bf16.msrb.mxu2 %v6482_v55  ;;  %v6593_v55 = vld [vmem:[#allocation8 + $0x360] sm:$0xf] }
 0x337   : > { %v8474_v8 = vpack.c.bf16 %v2983_v58, %v2979_v17  ;;  %v6465_v17 = vld [vmem:[#allocation8 + $0x260] sm:$0xf]  ;;  %v7076_v58 = vld [vmem:[#allocation8 + $0x26c] sm:$0xf0] }
 0x339   : > { %v2721_v46 = vpop.f32.mrf.mxu2 }
 0x33a   : > { %v2722_v47 = vadd.f32 %v2721_v46, %v2678_v25  ;;  %v2636_v27 = vpop.f32.mrf.mxu0  ;;  %v6466_v46 = vor.u32 %v7076_v58, %v6465_v17 }
 0x33b   : > { %v2637_v49 = vadd.f32 %v2636_v27, %v8399_v51  ;;  %v6610_v51 = vor.u32 %v7112_v7, %v6609_v30  ;;  %v6594_v30 = vor.u32 %v7108_v9, %v6593_v55  ;;  %v7044_v7 = vld [vmem:[#allocation8 + $0x16c] sm:$0xf0] }
 0x33c   : > { %v2765_v45 = vpop.f32.mrf.mxu3  ;;  %v2680_v16 = vpop.f32.mrf.mxu1  ;;  %3923 = vmatpush.bf16.msrb.mxu2 %v6466_v46  ;;  %v7004_v46 = vld [vmem:[#allocation8 + $0x2c] sm:$0xf0] }
 0x33d   : > { %v8478_v14 = vadd.f32 %v2765_v45, %v2722_v47  ;;  %2816 = vmatmul.bf16.gmra.mxu0 %v7855_v12  ;;  %v2681_v61 = vadd.f32 %v2680_v16, %v8445_v1  ;;  %v6354_v12 = vor.u32 %v7048_v6, %v6353_v54  ;;  %3966 = vmatpush.bf16.msrb.mxu3 %v6610_v51  ;;  %v2987_v40 = vmax.f32 %v2637_v49, 0.0  ;;  %v7012_v49 = vld [vmem:[#allocation8 + $0x6c] sm:$0xf0]  ;;  %v6321_v6 = vld [vmem:[#allocation8 + $0x140] sm:$0xf] }
 0x33e   : > { %2904 = vmatmul.bf16.gmra.mxu2 %v9337_v50  ;;  %v6210_v41 = vor.u32 %v7012_v49, %v6209_v11  ;;  %v7008_v54 = vld [vmem:[#allocation8 + $0x4c] sm:$0xf0]  ;;  %v6433_v11 = vld [vmem:[#allocation8 + $0x220] sm:$0xf] }
 0x33f   : > { %2860 = vmatmul.bf16.gmra.mxu1 %v7990_v42  ;;  %v7104_v9 = vld [vmem:[#allocation8 + $0x34c] sm:$0xf0] }
 0x340   : > { %3878 = vmatpush.bf16.msrb.mxu1 %v6354_v12  ;;  %3835 = vmatpush.bf16.msrb.mxu0 %v6210_v41  ;;  %v6577_v41 = vld [vmem:[#allocation8 + $0x340] sm:$0xf] }
 0x341   : > { %6155 = vmatmul.msk.bf16.gmra.mxu3 %vm1715_vm0, %v9361_v39  ;;  %v2724_v48 = vpop.f32.mrf.mxu2 }
 0x342   : > { %v2725_v57 = vadd.f32 %v2724_v48, %v2681_v61  ;;  %v2638_v36 = vpop.f32.mrf.mxu0  ;;  %v6337_v61 = vld [vmem:[#allocation8 + $0x160] sm:$0xf]  ;;  %3967 = vmatpush.bf16.msrb.mxu3 %v6594_v30 }
 0x343   : > { %v2639_v42 = vadd.f32 %v2638_v36, %v8402_v43  ;;  %v6449_v36 = vld [vmem:[#allocation8 + $0x240] sm:$0xf] }
 0x344   : > { %v2768_v10 = vpop.f32.mrf.mxu3  ;;  %v2682_v50 = vpop.f32.mrf.mxu1 }
 0x345   : > { %v8487_v13 = vadd.f32 %v2768_v10, %v2725_v57  ;;  %v2991_v33 = vmax.f32 %v2639_v42, 0.0  ;;  %v2683_v25 = vadd.f32 %v2682_v50, %v8445_v1 }
 0x347   : > { %v8489_v39 = vpack.c.bf16 %v2991_v33, %v2987_v40 }
 0x349   : > { %v2726_v47 = vpop.f32.mrf.mxu2 }
 0x34a   : > { %v8492_v45 = vadd.f32 %v2726_v47, %v2683_v25  ;;  %v2641_v16 = vpop.f32.mrf.mxu0  ;;  %v6177_v25 = vld [vmem:[#allocation8 + $0x20] sm:$0xf] }
 0x34b   : > { %v2642_v43 = vadd.f32 %v2641_v16, %v8410_v20  ;;  %v6338_v20 = vor.u32 %v7044_v7, %v6337_v61  ;;  %v6178_v47 = vor.u32 %v7004_v46, %v6177_v25  ;;  %v6305_v16 = vld [vmem:[#allocation8 + $0x120] sm:$0xf] }
 0x34c   : > { %v8494_v27 = vpop.f32.mrf.mxu3  ;;  %v2685_v19 = vpop.f32.mrf.mxu1  ;;  %v6161_v7 = vld [vmem:[#allocation8] sm:$0xf] }
 0x34d   : > { %2821 = vmatmul.bf16.gmra.mxu0 %v7875_v37  ;;  %v2686_v31 = vadd.f32 %v2685_v19, %v8445_v1  ;;  %3879 = vmatpush.bf16.msrb.mxu1 %v6338_v20  ;;  %v6193_v37 = vld [vmem:[#allocation8 + $0x40] sm:$0xf]  ;;  %v2995_v17 = vmax.f32 %v2642_v43, 0.0  ;;  %v7036_v19 = vld [vmem:[#allocation8 + $0x12c] sm:$0xf0]  ;;  %v6578_v43 = vor.u32 %v7104_v9, %v6577_v41 }
 0x34e   : > { %2909 = vmatmul.bf16.gmra.mxu2 %v9340_v60  ;;  %v6194_v10 = vor.u32 %v7008_v54, %v6193_v37  ;;  %v7072_v60 = vld [vmem:[#allocation8 + $0x24c] sm:$0xf0]  ;;  %v6306_v55 = vor.u32 %v7036_v19, %v6305_v16 }
 0x34f   : > { %2865 = vmatmul.bf16.gmra.mxu1 %v8013_v18  ;;  %v7040_v18 = vld [vmem:[#allocation8 + $0x14c] sm:$0xf0]  ;;  %3968 = vmatpush.bf16.msrb.mxu3 %v6578_v43 }
 0x350   : > { %v6322_v40 = vor.u32 %v7040_v18, %v6321_v6  ;;  %3836 = vmatpush.bf16.msrb.mxu0 %v6194_v10  ;;  %v7000_v20 = vld [vmem:[#allocation8 + $0xc] sm:$0xf0] }
 0x351   : > { %6156 = vmatmul.msk.bf16.gmra.mxu3 %vm1715_vm0, %v9364_v32  ;;  %v2729_v51 = vpop.f32.mrf.mxu2  ;;  %v6450_v32 = vor.u32 %v7072_v60, %v6449_v36  ;;  %v7064_v10 = vld [vmem:[#allocation8 + $0x20c] sm:$0xf0] }
 0x352   : > { %v2730_v12 = vadd.f32 %v2729_v51, %v2686_v31  ;;  %v2643_v57 = vpop.f32.mrf.mxu0  ;;  %3880 = vmatpush.bf16.msrb.mxu1 %v6322_v40  ;;  %v6289_v51 = vld [vmem:[#allocation8 + $0x100] sm:$0xf]  ;;  %v7100_v19 = vld [vmem:[#allocation8 + $0x32c] sm:$0xf0] }
 0x353   : > { %v2644_v42 = vadd.f32 %v2643_v57, %v8413_v15  ;;  %3924 = vmatpush.bf16.msrb.mxu2 %v6450_v32  ;;  %v7068_v15 = vld [vmem:[#allocation8 + $0x22c] sm:$0xf0]  ;;  %v6417_v57 = vld [vmem:[#allocation8 + $0x200] sm:$0xf] }
 0x354   : > { %v2773_v48 = vpop.f32.mrf.mxu3  ;;  %v2687_v50 = vpop.f32.mrf.mxu1  ;;  %3837 = vmatpush.bf16.msrb.mxu0 %v6178_v47  ;;  %v6434_v31 = vor.u32 %v7068_v15, %v6433_v11 }
 0x355   : > { %v8504_v33 = vadd.f32 %v2773_v48, %v2730_v12  ;;  %v2999_v58 = vmax.f32 %v2644_v42, 0.0  ;;  %v2688_v61 = vadd.f32 %v2687_v50, %v8445_v1  ;;  %v6162_v12 = vor.u32 %v7000_v20, %v6161_v7  ;;  %v7032_v48 = vld [vmem:[#allocation8 + $0x10c] sm:$0xf0] }
 0x356   : > { %3881 = vmatpush.bf16.msrb.mxu1 %v6306_v55  ;;  %v6290_v60 = vor.u32 %v7032_v48, %v6289_v51  ;;  %v6418_v42 = vor.u32 %v7064_v10, %v6417_v57  ;;  %v7096_v48 = vld [vmem:[#allocation8 + $0x30c] sm:$0xf0] }
 0x357   : > { %v8506_v49 = vpack.c.bf16 %v2999_v58, %v2995_v17  ;;  %3925 = vmatpush.bf16.msrb.mxu2 %v6434_v31 }
 0x358   : > { %3838 = vmatpush.bf16.msrb.mxu0 %v6162_v12  ;;  %v6545_v12 = vld [vmem:[#allocation8 + $0x300] sm:$0xf] }
 0x359   : > { %v2731_v30 = vpop.f32.mrf.mxu2 }
 0x35a   : > { %v8509_v37 = vadd.f32 %v2731_v30, %v2688_v61  ;;  %v2646_v6 = vpop.f32.mrf.mxu0  ;;  %3882 = vmatpush.bf16.msrb.mxu1 %v6290_v60 }
 0x35b   : > { %v2647_v18 = vadd.f32 %v2646_v6, %v8421_v28  ;;  %3926 = vmatpush.bf16.msrb.mxu2 %v6418_v42  ;;  %v9375_v42 = vld [vmem:[#allocation46_spill] sm:$0xff] }
 0x35c   : > { %v8511_v54 = vpop.f32.mrf.mxu3  ;;  %v2690_v36 = vpop.f32.mrf.mxu1 }
 0x35d   : > { %2826 = vmatmul.bf16.gmra.mxu0 %v7895_v2  ;;  %v2691_v50 = vadd.f32 %v2690_v36, %v8445_v1  ;;  %v3003_v2 = vmax.f32 %v2647_v18, 0.0 }
 0x35e   : > { %2914 = vmatmul.bf16.gmra.mxu2 %v9343_v34 }
 0x35f   : > { %2870 = vmatmul.bf16.gmra.mxu1 %v9354_v62  ;;  %v6561_v62 = vld [vmem:[#allocation8 + $0x320] sm:$0xf] }
 0x360   : > { %v6562_v11 = vor.u32 %v7100_v19, %v6561_v62 }
 0x361   : > { %6157 = vmatmul.msk.bf16.gmra.mxu3 %vm1715_vm0, %v9367_v53  ;;  %v2734_v40 = vpop.f32.mrf.mxu2 }
 0x362   : > { %v2735_v32 = vadd.f32 %v2734_v40, %v2691_v50  ;;  %v2648_v17 = vpop.f32.mrf.mxu0  ;;  %3969 = vmatpush.bf16.msrb.mxu3 %v6562_v11  ;;  %v7090_v40 = vld [vmem:[#allocation8 + $0x2e4] sm:$0xf] }
 0x363   : > { %v2649_v58 = vadd.f32 %v2648_v17, %v8424_v56  ;;  %v7026_v11 = vld [vmem:[#allocation8 + $0xe4] sm:$0xf] }
 0x364   : > { %v2778_v28 = vpop.f32.mrf.mxu3  ;;  %v2692_v25 = vpop.f32.mrf.mxu1 }
 0x365   : > { %v8521_v46 = vadd.f32 %v2778_v28, %v2735_v32  ;;  %v3007_v47 = vmax.f32 %v2649_v58, 0.0  ;;  %v2693_v34 = vadd.f32 %v2692_v25, %v8445_v1  ;;  %v6531_v32 = vld [vmem:[#allocation8 + $0x2f0] sm:$0xf0] }
 0x366   : > { %v6534_v17 = vor.u32 %v7090_v40, %v6531_v32  ;;  %v7118_v40 = vld [vmem:[#allocation8 + $0x3c4] sm:$0xf]  ;;  %v6643_v32 = vld [vmem:[#allocation8 + $0x3d0] sm:$0xf0] }
 0x367   : > { %v8523_v16 = vpack.c.bf16 %v3007_v47, %v3003_v2 }
 0x368   : > { %4095 = vmatpush.bf16.msra.mxu2 %v6534_v17 }
 0x369   : > { %v2736_v53 = vpop.f32.mrf.mxu2 }
 0x36a   : > { %v8526_v55 = vadd.f32 %v2736_v53, %v2693_v34  ;;  %v2651_v41 = vpop.f32.mrf.mxu0  ;;  %v6275_v53 = vld [vmem:[#allocation8 + $0xf0] sm:$0xf0] }
 0x36b   : > { %v2652_v56 = vadd.f32 %v2651_v41, %v8432_v35  ;;  %v7122_v41 = vld [vmem:[#allocation8 + $0x3e4] sm:$0xf] }
 0x36c   : > { %v8528_v15 = vpop.f32.mrf.mxu3  ;;  %v2695_v9 = vpop.f32.mrf.mxu1 }
 0x36d   : > { %2831 = vmatmul.bf16.gmra.mxu0 %v7915_v38  ;;  %v2696_v61 = vadd.f32 %v2695_v9, %v8445_v1  ;;  %v3011_v6 = vmax.f32 %v2652_v56, 0.0  ;;  %v6278_v9 = vor.u32 %v7026_v11, %v6275_v53 }
 0x36e   : > { %2919 = vmatmul.bf16.gmra.mxu2 %v9346_v23 }
 0x36f   : > { %2875 = vmatmul.bf16.gmra.mxu1 %v8059_v22  ;;  %v6546_v22 = vor.u32 %v7096_v48, %v6545_v12  ;;  %4007 = vmatpush.bf16.msra.mxu0 %v6278_v9  ;;  %v9376_v48 = vld [vmem:[#allocation47_spill] sm:$0xff] }
 0x371   : > { %6158 = vmatmul.msk.bf16.gmra.mxu3 %vm1715_vm0, %v9370_v24  ;;  %v2739_v31 = vpop.f32.mrf.mxu2 }
 0x372   : > { %v2740_v43 = vadd.f32 %v2739_v31, %v2696_v61  ;;  %v2653_v7 = vpop.f32.mrf.mxu0  ;;  %3970 = vmatpush.bf16.msrb.mxu3 %v6546_v22  ;;  %v6659_v61 = vld [vmem:[#allocation8 + $0x3f0] sm:$0xf0]  ;;  %v7058_v31 = vld [vmem:[#allocation8 + $0x1e4] sm:$0xf] }
 0x373   : > { %v2654_v20 = vadd.f32 %v2653_v7, %v8435_v29  ;;  %v6662_v7 = vor.u32 %v7122_v41, %v6659_v61  ;;  %v9377_v22 = vld [vmem:[#allocation35_spill] sm:$0xff] }
 0x374   : > { %v2783_v30 = vpop.f32.mrf.mxu3  ;;  %v2697_v51 = vpop.f32.mrf.mxu1 }
 0x375   : > { %v8538_v35 = vadd.f32 %v2783_v30, %v2740_v43  ;;  %v3015_v38 = vmax.f32 %v2654_v20, 0.0  ;;  %v2698_v23 = vadd.f32 %v2697_v51, %v8445_v1  ;;  %v6403_v43 = vld [vmem:[#allocation8 + $0x1f0] sm:$0xf0] }
 0x376   : > { %v6406_v20 = vor.u32 %v7058_v31, %v6403_v43  ;;  %4139 = vmatpush.bf16.msra.mxu3 %v6662_v7 }
 0x377   : > { %v8540_v57 = vpack.c.bf16 %v3015_v38, %v3011_v6 }
 0x378   : > { %4051 = vmatpush.bf16.msra.mxu1 %v6406_v20  ;;  %v9378_v20 = vld [vmem:[#allocation48_spill] sm:$0xff] }
 0x379   : > { %v2741_v10 = vpop.f32.mrf.mxu2 }
 0x37a   : > { %v8543_v24 = vadd.f32 %v2741_v10, %v2698_v23  ;;  %v2656_v36 = vpop.f32.mrf.mxu0  ;;  %v7086_v23 = vld [vmem:[#allocation8 + $0x2c4] sm:$0xf]  ;;  %v6515_v10 = vld [vmem:[#allocation8 + $0x2d0] sm:$0xf0] }
 0x37b   : > { %v2657_v29 = vadd.f32 %v2656_v36, %v8443_v0  ;;  %v7022_v36 = vld [vmem:[#allocation8 + $0xc4] sm:$0xf] }
 0x37c   : > { %v8545_v18 = vpop.f32.mrf.mxu3  ;;  %v2700_v60 = vpop.f32.mrf.mxu1 }
 0x37d   : > { %3839 = vmatmul.bf16.vlgmr.msrb.gmra.mxu0 %v9375_v42  ;;  %v2701_v50 = vadd.f32 %v2700_v60, %v8445_v1  ;;  %v3019_v19 = vmax.f32 %v2657_v29, 0.0  ;;  %v6518_v60 = vor.u32 %v7086_v23, %v6515_v10  ;;  %v7082_v23 = vld [vmem:[#allocation8 + $0x2a4] sm:$0xf]  ;;  %v6499_v10 = vld [vmem:[#allocation8 + $0x2b0] sm:$0xf0] }
 0x37e   : > { %3927 = vmatmul.bf16.vlgmr.msrb.gmra.mxu2 %v8459_v4 }
 0x37f   : > { %3883 = vmatmul.bf16.vlgmr.msrb.gmra.mxu1 %v8280_v5  ;;  %4096 = vmatpush.bf16.msra.mxu2 %v6518_v60  ;;  %v6502_v60 = vor.u32 %v7082_v23, %v6499_v10  ;;  %v9381_v10 = vld [vmem:[#allocation39_spill] sm:$0xff] }
 0x381   : > { %v2744_v28 = vpop.f32.mrf.mxu2 }
 0x382   : > { %v2745_v58 = vadd.f32 %v2744_v28, %v2701_v50  ;;  %v2658_v2 = vpop.f32.mrf.mxu0  ;;  %v6259_v50 = vld [vmem:[#allocation8 + $0xd0] sm:$0xf0] }
 0x383   : > { %v2659_v47 = vadd.f32 %v2658_v2, %v8448_v59  ;;  %4097 = vmatpush.bf16.msra.mxu2 %v6502_v60 }
 0x384   : > { %v2788_v25 = vpop.f32.mrf.mxu3  ;;  %v2702_v62 = vpop.f32.mrf.mxu1 }
 0x385   : > { %v8553_v0 = vadd.f32 %v2788_v25, %v2745_v58  ;;  %v3023_v34 = vmax.f32 %v2659_v47, 0.0  ;;  %v2703_v30 = vadd.f32 %v2702_v62, %v8445_v1  ;;  %v6262_v58 = vor.u32 %v7022_v36, %v6259_v50  ;;  %v7018_v36 = vld [vmem:[#allocation8 + $0xa4] sm:$0xf]  ;;  %v6243_v50 = vld [vmem:[#allocation8 + $0xb0] sm:$0xf0] }
 0x386   : > { %v6646_v25 = vor.u32 %v7118_v40, %v6643_v32  ;;  %v7114_v40 = vld [vmem:[#allocation8 + $0x3a4] sm:$0xf]  ;;  %v6627_v32 = vld [vmem:[#allocation8 + $0x3b0] sm:$0xf0] }
 0x387   : > { %v8555_v56 = vpack.c.bf16 %v3023_v34, %v3019_v19  ;;  %4008 = vmatpush.bf16.msra.mxu0 %v6262_v58  ;;  %v7054_v19 = vld [vmem:[#allocation8 + $0x1c4] sm:$0xf]  ;;  %v6387_v34 = vld [vmem:[#allocation8 + $0x1d0] sm:$0xf0]  ;;  %v6246_v58 = vor.u32 %v7018_v36, %v6243_v50 }
 0x388   : > { %4140 = vmatpush.bf16.msra.mxu3 %v6646_v25  ;;  %v6390_v11 = vor.u32 %v7054_v19, %v6387_v34  ;;  %v6630_v25 = vor.u32 %v7114_v40, %v6627_v32  ;;  %v6483_v36 = vld [vmem:[#allocation8 + $0x290] sm:$0xf0]  ;;  %v7110_v32 = vld [vmem:[#allocation8 + $0x384] sm:$0xf] }
 0x389   : > { %v2746_v59 = vpop.f32.mrf.mxu2  ;;  %v6227_v40 = vld [vmem:[#allocation8 + $0x90] sm:$0xf0] }
 0x38a   : > { %v8558_v51 = vadd.f32 %v2746_v59, %v2703_v30  ;;  %v2802_v38 = vpop.f32.mrf.mxu0  ;;  %4052 = vmatpush.bf16.msra.mxu1 %v6390_v11 }
 0x38b   : > { %v2803_v1 = vadd.f32 %v2802_v38, %v8457_v63  ;;  %4009 = vmatpush.bf16.msra.mxu0 %v6246_v58 }
 0x38c   : > { %v8560_v6 = vpop.f32.mrf.mxu3  ;;  %v2846_v12 = vpop.f32.mrf.mxu1  ;;  %4141 = vmatpush.bf16.msra.mxu3 %v6630_v25 }
 0x38d   : > { %3844 = vmatmul.bf16.gmra.mxu0 %v9376_v48  ;;  %v2847_v47 = vadd.f32 %v2846_v12, %v2803_v1 }
 0x38e   : > { %3932 = vmatmul.bf16.gmra.mxu2 %v8474_v8 }
 0x38f   : > { %3888 = vmatmul.bf16.gmra.mxu1 %v9377_v22 }
 0x391   : > { %v2890_v29 = vpop.f32.mrf.mxu2 }
 0x392   : > { %v2804_v17 = vpop.f32.mrf.mxu0  ;;  %v2891_v63 = vadd.f32 %v2890_v29, %v2847_v47  ;;  %v6371_v47 = vld [vmem:[#allocation8 + $0x1b0] sm:$0xf0] }
 0x393   : > { %v2805_v62 = vadd.f32 %v2804_v17, %v8463_v3  ;;  %v9379_v3 = vld [vmem:[#allocation37_spill] sm:$0xff] }
 0x394   : > { %v2934_v28 = vpop.f32.mrf.mxu3  ;;  %v2848_v2 = vpop.f32.mrf.mxu1 }
 0x395   : > { %v2849_v53 = vadd.f32 %v2848_v2, %v2805_v62  ;;  %v2935_v9 = vadd.f32 %v2934_v28, %v2891_v63  ;;  %v7050_v2 = vld [vmem:[#allocation8 + $0x1a4] sm:$0xf] }
 0x396   : > { %v6374_v63 = vor.u32 %v7050_v2, %v6371_v47 }
 0x397   : > { %v2972_v59 = vmax.f32 %v2935_v9, 0.0 }
 0x398   : > { %4053 = vmatpush.bf16.msra.mxu1 %v6374_v63  ;;  %v6355_v63 = vld [vmem:[#allocation8 + $0x190] sm:$0xf0] }
 0x399   : > { %v2892_v41 = vpop.f32.mrf.mxu2 }
 0x39a   : > { %v2893_v61 = vadd.f32 %v2892_v41, %v2849_v53  ;;  %v2807_v43 = vpop.f32.mrf.mxu0 }
 0x39b   : > { %v2808_v1 = vadd.f32 %v2807_v43, %v8472_v52 }
 0x39c   : > { %v2936_v31 = vpop.f32.mrf.mxu3  ;;  %v2851_v30 = vpop.f32.mrf.mxu1 }
 0x39d   : > { %v2937_v7 = vadd.f32 %v2936_v31, %v2893_v61  ;;  %3849 = vmatmul.bf16.gmra.mxu0 %v9378_v20  ;;  %v2852_v52 = vadd.f32 %v2851_v30, %v2808_v1  ;;  %v7078_v1 = vld [vmem:[#allocation8 + $0x284] sm:$0xf] }
 0x39e   : > { %3937 = vmatmul.bf16.gmra.mxu2 %v8489_v39  ;;  %v6486_v50 = vor.u32 %v7078_v1, %v6483_v36  ;;  %v9382_v36 = vld [vmem:[#allocation50_spill] sm:$0xff] }
 0x39f   : > { %v2976_v38 = vmax.f32 %v2937_v7, 0.0  ;;  %3893 = vmatmul.bf16.gmra.mxu1 %v9379_v3 }
 0x3a0   : > { %4098 = vmatpush.bf16.msra.mxu2 %v6486_v50 }
 0x3a1   : > { %v8570_v12 = vpack.c.bf16 %v2976_v38, %v2972_v59  ;;  %v2895_v29 = vpop.f32.mrf.mxu2  ;;  %v9380_v59 = vld [vmem:[#allocation49_spill] sm:$0xff] }
 0x3a2   : > { %v2809_v17 = vpop.f32.mrf.mxu0  ;;  %v2896_v34 = vadd.f32 %v2895_v29, %v2852_v52  ;;  %v7014_v29 = vld [vmem:[#allocation8 + $0x84] sm:$0xf] }
 0x3a3   : > { %3971 = vmatmul.bf16.vlgmr.msrb.gmra.mxu3 %v8570_v12  ;;  %v2810_v19 = vadd.f32 %v2809_v17, %v8478_v14  ;;  %v2771_v17 = vadd.f32 %v8494_v27, %v8492_v45  ;;  %v6230_v2 = vor.u32 %v7014_v29, %v6227_v40  ;;  %v7042_v29 = vld [vmem:[#allocation8 + $0x164] sm:$0xf] }
 0x3a4   : > { %v2939_v28 = vpop.f32.mrf.mxu3  ;;  %v2853_v62 = vpop.f32.mrf.mxu1 }
 0x3a5   : > { %v2854_v11 = vadd.f32 %v2853_v62, %v2810_v19  ;;  %v2940_v41 = vadd.f32 %v2939_v28, %v2896_v34  ;;  %v6611_v28 = vld [vmem:[#allocation8 + $0x390] sm:$0xf0]  ;;  %v7046_v62 = vld [vmem:[#allocation8 + $0x184] sm:$0xf]  ;;  %4010 = vmatpush.bf16.msra.mxu0 %v6230_v2 }
 0x3a6   : > { %v6614_v47 = vor.u32 %v7110_v32, %v6611_v28  ;;  %v6358_v52 = vor.u32 %v7046_v62, %v6355_v63  ;;  %v6339_v32 = vld [vmem:[#allocation8 + $0x170] sm:$0xf0]  ;;  %v7006_v63 = vld [vmem:[#allocation8 + $0x44] sm:$0xf] }
 0x3a7   : > { %v2980_v38 = vmax.f32 %v2940_v41, 0.0  ;;  %v6467_v41 = vld [vmem:[#allocation8 + $0x270] sm:$0xf0]  ;;  %v6342_v28 = vor.u32 %v7042_v29, %v6339_v32  ;;  %v7066_v29 = vld [vmem:[#allocation8 + $0x224] sm:$0xf] }
 0x3a8   : > { %4142 = vmatpush.bf16.msra.mxu3 %v6614_v47  ;;  %4054 = vmatpush.bf16.msra.mxu1 %v6358_v52  ;;  %v6595_v2 = vld [vmem:[#allocation8 + $0x370] sm:$0xf0]  ;;  %v7038_v52 = vld [vmem:[#allocation8 + $0x144] sm:$0xf] }
 0x3a9   : > { %v2897_v53 = vpop.f32.mrf.mxu2  ;;  %v6579_v32 = vld [vmem:[#allocation8 + $0x350] sm:$0xf0] }
 0x3aa   : > { %v2898_v9 = vadd.f32 %v2897_v53, %v2854_v11  ;;  %v2812_v31 = vpop.f32.mrf.mxu0  ;;  %v7074_v53 = vld [vmem:[#allocation8 + $0x264] sm:$0xf] }
 0x3ab   : > { %v2813_v30 = vadd.f32 %v2812_v31, %v8487_v13  ;;  %v6470_v45 = vor.u32 %v7074_v53, %v6467_v41  ;;  %v6323_v41 = vld [vmem:[#allocation8 + $0x150] sm:$0xf0] }
 0x3ac   : > { %v2941_v61 = vpop.f32.mrf.mxu3  ;;  %v2856_v43 = vpop.f32.mrf.mxu1  ;;  %4055 = vmatpush.bf16.msra.mxu1 %v6342_v28 }
 0x3ad   : > { %v2942_v7 = vadd.f32 %v2941_v61, %v2898_v9  ;;  %3854 = vmatmul.bf16.gmra.mxu0 %v9380_v59  ;;  %v2857_v19 = vadd.f32 %v2856_v43, %v2813_v30  ;;  %4099 = vmatpush.bf16.msra.mxu2 %v6470_v45  ;;  %v7010_v43 = vld [vmem:[#allocation8 + $0x64] sm:$0xf]  ;;  %v6211_v30 = vld [vmem:[#allocation8 + $0x70] sm:$0xf0] }
 0x3ae   : > { %3942 = vmatmul.bf16.gmra.mxu2 %v8506_v49  ;;  %v7070_v45 = vld [vmem:[#allocation8 + $0x244] sm:$0xf] }
 0x3af   : > { %v2984_v23 = vmax.f32 %v2942_v7, 0.0  ;;  %3898 = vmatmul.bf16.gmra.mxu1 %v9381_v10 }
 0x3b1   : > { %v8578_v14 = vpack.c.bf16 %v2984_v23, %v2980_v38  ;;  %v2900_v60 = vpop.f32.mrf.mxu2 }
 0x3b2   : > { %v2814_v25 = vpop.f32.mrf.mxu0  ;;  %v2901_v11 = vadd.f32 %v2900_v60, %v2857_v19  ;;  %v6214_v60 = vor.u32 %v7010_v43, %v6211_v30  ;;  %v2776_v19 = vadd.f32 %v8511_v54, %v8509_v37  ;;  %v7034_v37 = vld [vmem:[#allocation8 + $0x124] sm:$0xf]  ;;  %v6307_v30 = vld [vmem:[#allocation8 + $0x130] sm:$0xf0] }
 0x3b3   : > { %3976 = vmatmul.bf16.gmra.mxu3 %v8578_v14  ;;  %v2815_v34 = vadd.f32 %v2814_v25, %v2771_v17  ;;  %v7106_v25 = vld [vmem:[#allocation8 + $0x364] sm:$0xf] }
 0x3b4   : > { %v2944_v58 = vpop.f32.mrf.mxu3  ;;  %v2858_v13 = vpop.f32.mrf.mxu1  ;;  %4011 = vmatpush.bf16.msra.mxu0 %v6214_v60  ;;  %v6598_v62 = vor.u32 %v7106_v25, %v6595_v2  ;;  %v7102_v60 = vld [vmem:[#allocation8 + $0x344] sm:$0xf] }
 0x3b5   : > { %v2859_v27 = vadd.f32 %v2858_v13, %v2815_v34  ;;  %v2945_v61 = vadd.f32 %v2944_v58, %v2901_v11  ;;  %v6195_v13 = vld [vmem:[#allocation8 + $0x50] sm:$0xf0]  ;;  %v6582_v2 = vor.u32 %v7102_v60, %v6579_v32  ;;  %v7098_v32 = vld [vmem:[#allocation8 + $0x324] sm:$0xf] }
 0x3b6   : > { %v6198_v53 = vor.u32 %v7006_v63, %v6195_v13  ;;  %4143 = vmatpush.bf16.msra.mxu3 %v6598_v62  ;;  %v6163_v62 = vld [vmem:[#allocation8 + $0x10] sm:$0xf0]  ;;  %v7030_v63 = vld [vmem:[#allocation8 + $0x104] sm:$0xf] }
 0x3b7   : > { %v2988_v50 = vmax.f32 %v2945_v61, 0.0 }
 0x3b8   : > { %4012 = vmatpush.bf16.msra.mxu0 %v6198_v53  ;;  %v6291_v53 = vld [vmem:[#allocation8 + $0x110] sm:$0xf0] }
 0x3b9   : > { %v2902_v9 = vpop.f32.mrf.mxu2 }
 0x3ba   : > { %v2903_v31 = vadd.f32 %v2902_v9, %v2859_v27  ;;  %v2817_v38 = vpop.f32.mrf.mxu0  ;;  %v6326_v9 = vor.u32 %v7038_v52, %v6323_v41  ;;  %4144 = vmatpush.bf16.msra.mxu3 %v6582_v2  ;;  %v7062_v41 = vld [vmem:[#allocation8 + $0x204] sm:$0xf] }
 0x3bb   : > { %v2818_v58 = vadd.f32 %v2817_v38, %v8504_v33  ;;  %v6451_v33 = vld [vmem:[#allocation8 + $0x250] sm:$0xf0]  ;;  %v7002_v38 = vld [vmem:[#allocation8 + $0x24] sm:$0xf] }
 0x3bc   : > { %v2946_v7 = vpop.f32.mrf.mxu3  ;;  %v2861_v23 = vpop.f32.mrf.mxu1  ;;  %v6454_v61 = vor.u32 %v7070_v45, %v6451_v33  ;;  %4056 = vmatpush.bf16.msra.mxu1 %v6326_v9  ;;  %v6419_v45 = vld [vmem:[#allocation8 + $0x210] sm:$0xf0] }
 0x3bd   : > { %v2947_v1 = vadd.f32 %v2946_v7, %v2903_v31  ;;  %3859 = vmatmul.bf16.gmra.mxu0 %v9382_v36  ;;  %v2862_v31 = vadd.f32 %v2861_v23, %v2818_v58  ;;  %v6998_v58 = vld [vmem:[#allocation8 + $0x4] sm:$0xf]  ;;  %v6422_v9 = vor.u32 %v7062_v41, %v6419_v45  ;;  %v2786_v41 = vadd.f32 %v8545_v18, %v8543_v24 }
 0x3be   : > { %3947 = vmatmul.bf16.gmra.mxu2 %v8523_v16 }
 0x3bf   : > { %v2992_v40 = vmax.f32 %v2947_v1, 0.0  ;;  %3903 = vmatmul.bf16.gmra.mxu1 %v8336_v21  ;;  %4100 = vmatpush.bf16.msra.mxu2 %v6454_v61  ;;  %v6179_v1 = vld [vmem:[#allocation8 + $0x30] sm:$0xf0] }
 0x3c0   : > { %v6182_v43 = vor.u32 %v7002_v38, %v6179_v1 }
 0x3c1   : > { %v8587_v17 = vpack.c.bf16 %v2992_v40, %v2988_v50  ;;  %v2905_v47 = vpop.f32.mrf.mxu2  ;;  %v6310_v50 = vor.u32 %v7034_v37, %v6307_v30  ;;  %v6435_v40 = vld [vmem:[#allocation8 + $0x230] sm:$0xf0] }
 0x3c2   : > { %v2819_v11 = vpop.f32.mrf.mxu0  ;;  %v2906_v54 = vadd.f32 %v2905_v47, %v2862_v31  ;;  %4013 = vmatpush.bf16.msra.mxu0 %v6182_v43  ;;  %v6438_v25 = vor.u32 %v7066_v29, %v6435_v40  ;;  %v9383_v31 = vld [vmem:[#allocation51_spill] sm:$0xff] }
 0x3c3   : > { %3981 = vmatmul.bf16.gmra.mxu3 %v8587_v17  ;;  %v2820_v7 = vadd.f32 %v2819_v11, %v2776_v19  ;;  %4057 = vmatpush.bf16.msra.mxu1 %v6310_v50  ;;  %v6166_v11 = vor.u32 %v6998_v58, %v6163_v62 }
 0x3c4   : > { %v2949_v34 = vpop.f32.mrf.mxu3  ;;  %v2863_v27 = vpop.f32.mrf.mxu1  ;;  %4101 = vmatpush.bf16.msra.mxu2 %v6438_v25 }
 0x3c5   : > { %v2864_v28 = vadd.f32 %v2863_v27, %v2820_v7  ;;  %v2950_v13 = vadd.f32 %v2949_v34, %v2906_v54  ;;  %v6294_v27 = vor.u32 %v7030_v63, %v6291_v53  ;;  %v2781_v54 = vadd.f32 %v8528_v15, %v8526_v55  ;;  %v9384_v15 = vld [vmem:[#allocation52_spill] sm:$0xff] }
 0x3c6   : > { %4014 = vmatpush.bf16.msra.mxu0 %v6166_v11 }
 0x3c7   : > { %4058 = vmatpush.bf16.msra.mxu1 %v6294_v27  ;;  %v2996_v7 = vmax.f32 %v2950_v13, 0.0 }
 0x3c8   : > { %4102 = vmatpush.bf16.msra.mxu2 %v6422_v9 }
 0x3c9   : > { %v2907_v23 = vpop.f32.mrf.mxu2 }
 0x3ca   : > { %v2908_v52 = vadd.f32 %v2907_v23, %v2864_v28  ;;  %v2822_v47 = vpop.f32.mrf.mxu0  ;;  %v6563_v28 = vld [vmem:[#allocation8 + $0x330] sm:$0xf0] }
 0x3cb   : > { %v2823_v1 = vadd.f32 %v2822_v47, %v8521_v46  ;;  %v6566_v25 = vor.u32 %v7098_v32, %v6563_v28  ;;  %v6537_v32 = vld [vmem:[#allocation8 + $0x2e8] sm:$0xf]  ;;  %v7093_v28 = vld [vmem:[#allocation8 + $0x2f4] sm:$0xf0] }
 0x3cc   : > { %v2951_v19 = vpop.f32.mrf.mxu3  ;;  %v2866_v33 = vpop.f32.mrf.mxu1 }
 0x3cd   : > { %v2952_v61 = vadd.f32 %v2951_v19, %v2908_v52  ;;  %3864 = vmatmul.bf16.gmra.mxu0 %v9383_v31  ;;  %v2867_v50 = vadd.f32 %v2866_v33, %v2823_v1  ;;  %4145 = vmatpush.bf16.msra.mxu3 %v6566_v25  ;;  %v6538_v25 = vor.u32 %v7093_v28, %v6537_v32  ;;  %v6265_v28 = vld [vmem:[#allocation8 + $0xc8] sm:$0xf] }
 0x3ce   : > { %3952 = vmatmul.bf16.gmra.mxu2 %v8540_v57 }
 0x3cf   : > { %v3000_v38 = vmax.f32 %v2952_v61, 0.0  ;;  %3908 = vmatmul.bf16.gmra.mxu1 %v8350_v26  ;;  %4271 = vmatpush.bf16.msrb.mxu2 %v6538_v25  ;;  %v7025_v25 = vld [vmem:[#allocation8 + $0xd4] sm:$0xf0] }
 0x3d1   : > { %v8596_v34 = vpack.c.bf16 %v3000_v38, %v2996_v7  ;;  %v2910_v37 = vpop.f32.mrf.mxu2  ;;  %v7094_v7 = vld [vmem:[#allocation8 + $0x304] sm:$0xf]  ;;  %v6547_v38 = vld [vmem:[#allocation8 + $0x310] sm:$0xf0] }
 0x3d2   : > { %v2824_v30 = vpop.f32.mrf.mxu0  ;;  %v2911_v60 = vadd.f32 %v2910_v37, %v2867_v50  ;;  %v6550_v37 = vor.u32 %v7094_v7, %v6547_v38 }
 0x3d3   : > { %3986 = vmatmul.bf16.gmra.mxu3 %v8596_v34  ;;  %v2825_v40 = vadd.f32 %v2824_v30, %v2781_v54 }
 0x3d4   : > { %v2954_v43 = vpop.f32.mrf.mxu3  ;;  %v2868_v29 = vpop.f32.mrf.mxu1  ;;  %4146 = vmatpush.bf16.msra.mxu3 %v6550_v37 }
 0x3d5   : > { %v2869_v2 = vadd.f32 %v2868_v29, %v2825_v40  ;;  %v2955_v58 = vadd.f32 %v2954_v43, %v2911_v60 }
 0x3d7   : > { %v3004_v52 = vmax.f32 %v2955_v58, 0.0 }
 0x3d9   : > { %v2912_v23 = vpop.f32.mrf.mxu2 }
 0x3da   : > { %v2913_v46 = vadd.f32 %v2912_v23, %v2869_v2  ;;  %v2827_v63 = vpop.f32.mrf.mxu0 }
 0x3db   : > { %v2828_v11 = vadd.f32 %v2827_v63, %v8538_v35 }
 0x3dc   : > { %v2956_v62 = vpop.f32.mrf.mxu3  ;;  %v2871_v13 = vpop.f32.mrf.mxu1 }
 0x3dd   : > { %v2957_v55 = vadd.f32 %v2956_v62, %v2913_v46  ;;  %3869 = vmatmul.bf16.gmra.mxu0 %v9384_v15  ;;  %v2872_v9 = vadd.f32 %v2871_v13, %v2828_v11  ;;  %v2791_v46 = vadd.f32 %v8560_v6, %v8558_v51  ;;  %v6281_v13 = vld [vmem:[#allocation8 + $0xe8] sm:$0xf] }
 0x3de   : > { %3957 = vmatmul.bf16.gmra.mxu2 %v8555_v56 }
 0x3df   : > { %v3008_v19 = vmax.f32 %v2957_v55, 0.0  ;;  %3913 = vmatmul.bf16.gmra.mxu1 %v8365_v44  ;;  %v7029_v55 = vld [vmem:[#allocation8 + $0xf4] sm:$0xf0] }
 0x3e0   : > { %v6282_v11 = vor.u32 %v7029_v55, %v6281_v13 }
 0x3e1   : > { %v8605_v47 = vpack.c.bf16 %v3008_v19, %v3004_v52  ;;  %v2915_v53 = vpop.f32.mrf.mxu2  ;;  %v6665_v52 = vld [vmem:[#allocation8 + $0x3e8] sm:$0xf] }
 0x3e2   : > { %v2829_v33 = vpop.f32.mrf.mxu0  ;;  %v2916_v1 = vadd.f32 %v2915_v53, %v2872_v9  ;;  %v7125_v53 = vld [vmem:[#allocation8 + $0x3f4] sm:$0xf0]  ;;  %4183 = vmatpush.bf16.msrb.mxu0 %v6282_v11 }
 0x3e3   : > { %3991 = vmatmul.bf16.gmra.mxu3 %v8605_v47  ;;  %v2830_v61 = vadd.f32 %v2829_v33, %v2786_v41  ;;  %v8620_v33 = vld [vmem:[#allocation10] sm:$0xf]  ;;  %v7061_v9 = vld [vmem:[#allocation8 + $0x1f4] sm:$0xf0] }
 0x3e4   : > { %v2959_v45 = vpop.f32.mrf.mxu3  ;;  %v2873_v27 = vpop.f32.mrf.mxu1  ;;  %v8623_v6 = vperm.slane %v8620_v33, 0  ;;  %v7057_v11 = vld [vmem:[#allocation8 + $0x1d4] sm:$0xf0] }
 0x3e5   : > { %v2874_v54 = vadd.f32 %v2873_v27, %v2830_v61  ;;  %v2960_v30 = vadd.f32 %v2959_v45, %v2916_v1  ;;  %v6409_v27 = vld [vmem:[#allocation8 + $0x1e8] sm:$0xf] }
 0x3e6   : > { %v6410_v51 = vor.u32 %v7061_v9, %v6409_v27 }
 0x3e7   : > { %v3012_v18 = vmax.f32 %v2960_v30, 0.0 }
 0x3e8   : > { %4227 = vmatpush.bf16.msrb.mxu1 %v6410_v51 }
 0x3e9   : > { %v2917_v43 = vpop.f32.mrf.mxu2 }
 0x3ea   : > { %v2918_v35 = vadd.f32 %v2917_v43, %v2874_v54  ;;  %v2832_v50 = vpop.f32.mrf.mxu0 }
 0x3eb   : > { %v2833_v23 = vadd.f32 %v2832_v50, %v8553_v0  ;;  %v6666_v0 = vor.u32 %v7125_v53, %v6665_v52 }
 0x3ec   : > { %v2961_v29 = vpop.f32.mrf.mxu3  ;;  %v2876_v40 = vpop.f32.mrf.mxu1 }
 0x3ed   : > { %v2962_v24 = vadd.f32 %v2961_v29, %v2918_v35  ;;  %4015 = vmatmul.bf16.vlgmr.msra.gmra.mxu0 %v9375_v42  ;;  %v2877_v41 = vadd.f32 %v2876_v40, %v2833_v23  ;;  %4315 = vmatpush.bf16.msrb.mxu3 %v6666_v0  ;;  %v6649_v23 = vld [vmem:[#allocation8 + $0x3c8] sm:$0xf] }
 0x3ee   : > { %4103 = vmatmul.bf16.vlgmr.msra.gmra.mxu2 %v8459_v4 }
 0x3ef   : > { %v3016_v60 = vmax.f32 %v2962_v24, 0.0  ;;  %4059 = vmatmul.bf16.vlgmr.msra.gmra.mxu1 %v8280_v5 }
 0x3f1   : > { %v8614_v2 = vpack.c.bf16 %v3016_v60, %v3012_v18  ;;  %v2920_v58 = vpop.f32.mrf.mxu2  ;;  %v6521_v18 = vld [vmem:[#allocation8 + $0x2c8] sm:$0xf]  ;;  %v7089_v60 = vld [vmem:[#allocation8 + $0x2d4] sm:$0xf0] }
 0x3f2   : > { %v2834_v63 = vpop.f32.mrf.mxu0  ;;  %v2921_v61 = vadd.f32 %v2920_v58, %v2877_v41  ;;  %v6522_v32 = vor.u32 %v7089_v60, %v6521_v18 }
 0x3f3   : > { %3996 = vmatmul.bf16.gmra.mxu3 %v8614_v2  ;;  %v2835_v45 = vadd.f32 %v2834_v63, %v2791_v46  ;;  %v6266_v46 = vor.u32 %v7025_v25, %v6265_v28  ;;  %v6377_v28 = vld [vmem:[#allocation8 + $0x1a8] sm:$0xf]  ;;  %v7053_v25 = vld [vmem:[#allocation8 + $0x1b4] sm:$0xf0] }
 0x3f4   : > { %v2964_v62 = vpop.f32.mrf.mxu3  ;;  %v2878_v19 = vpop.f32.mrf.mxu1  ;;  %4272 = vmatpush.bf16.msrb.mxu2 %v6522_v32  ;;  %v7117_v32 = vld [vmem:[#allocation8 + $0x3b4] sm:$0xf0] }
 0x3f5   : > { %v2879_v7 = vadd.f32 %v2878_v19, %v2835_v45  ;;  %v2965_v1 = vadd.f32 %v2964_v62, %v2921_v61  ;;  %v7121_v62 = vld [vmem:[#allocation8 + $0x3d4] sm:$0xf0]  ;;  %4184 = vmatpush.bf16.msrb.mxu0 %v6266_v46  ;;  %v6393_v19 = vld [vmem:[#allocation8 + $0x1c8] sm:$0xf]  ;;  %v6378_v46 = vor.u32 %v7053_v25, %v6377_v28 }
 0x3f6   : > { %v6650_v13 = vor.u32 %v7121_v62, %v6649_v23  ;;  %v6394_v45 = vor.u32 %v7057_v11, %v6393_v19  ;;  %v6489_v19 = vld [vmem:[#allocation8 + $0x288] sm:$0xf]  ;;  %v7081_v11 = vld [vmem:[#allocation8 + $0x294] sm:$0xf0] }
 0x3f7   : > { %v3020_v40 = vmax.f32 %v2965_v1, 0.0  ;;  %v6505_v1 = vld [vmem:[#allocation8 + $0x2a8] sm:$0xf]  ;;  %v7077_v25 = vld [vmem:[#allocation8 + $0x274] sm:$0xf0] }
 0x3f8   : > { %4316 = vmatpush.bf16.msrb.mxu3 %v6650_v13  ;;  %4228 = vmatpush.bf16.msrb.mxu1 %v6394_v45  ;;  %v6490_v45 = vor.u32 %v7081_v11, %v6489_v19  ;;  %v6473_v28 = vld [vmem:[#allocation8 + $0x268] sm:$0xf]  ;;  %v7013_v19 = vld [vmem:[#allocation8 + $0x74] sm:$0xf0] }
 0x3f9   : > { %v2922_v38 = vpop.f32.mrf.mxu2  ;;  %v6601_v11 = vld [vmem:[#allocation8 + $0x368] sm:$0xf] }
 0x3fa   : > { %v2923_v37 = vadd.f32 %v2922_v38, %v2879_v7  ;;  %v3840_v54 = vpop.f32.mrf.mxu0 }
 0x3fb   : > { %v3841_v30 = vadd.f32 %v3840_v54, %v8623_v6 }
 0x3fc   : > { %v2966_v43 = vpop.f32.mrf.mxu3  ;;  %v3884_v35 = vpop.f32.mrf.mxu1  ;;  %4229 = vmatpush.bf16.msrb.mxu1 %v6378_v46  ;;  %v6474_v46 = vor.u32 %v7077_v25, %v6473_v28  ;;  %v7041_v28 = vld [vmem:[#allocation8 + $0x154] sm:$0xf0]  ;;  %v6457_v25 = vld [vmem:[#allocation8 + $0x248] sm:$0xf] }
 0x3fd   : > { %v2967_v29 = vadd.f32 %v2966_v43, %v2923_v37  ;;  %v3885_v50 = vadd.f32 %v3884_v35, %v3841_v30  ;;  %4020 = vmatmul.bf16.gmra.mxu0 %v9376_v48  ;;  %v7085_v37 = vld [vmem:[#allocation8 + $0x2b4] sm:$0xf0] }
 0x3fe   : > { %4108 = vmatmul.bf16.gmra.mxu2 %v8474_v8  ;;  %v6506_v54 = vor.u32 %v7085_v37, %v6505_v1  ;;  %v6361_v37 = vld [vmem:[#allocation8 + $0x188] sm:$0xf] }
 0x3ff   : > { %v3024_v24 = vmax.f32 %v2967_v29, 0.0  ;;  %4064 = vmatmul.bf16.gmra.mxu1 %v9377_v22  ;;  %v6249_v29 = vld [vmem:[#allocation8 + $0xa8] sm:$0xf] }
 0x400   : > { %4273 = vmatpush.bf16.msrb.mxu2 %v6506_v54  ;;  %v7049_v54 = vld [vmem:[#allocation8 + $0x194] sm:$0xf0] }
 0x401   : > { %v8629_v58 = vpack.c.bf16 %v3024_v24, %v3020_v40  ;;  %v3928_v63 = vpop.f32.mrf.mxu2  ;;  %v6633_v40 = vld [vmem:[#allocation8 + $0x3a8] sm:$0xf] }
 0x402   : > { %v8631_v55 = vadd.f32 %v3928_v63, %v3885_v50  ;;  %v3842_v52 = vpop.f32.mrf.mxu0  ;;  %v7021_v50 = vld [vmem:[#allocation8 + $0xb4] sm:$0xf0]  ;;  %v6634_v23 = vor.u32 %v7117_v32, %v6633_v40 }
 0x403   : > { %4001 = vmatmul.bf16.gmra.mxu3 %v8629_v58  ;;  %v3843_v53 = vadd.f32 %v3842_v52, %v8623_v6  ;;  %v6250_v60 = vor.u32 %v7021_v50, %v6249_v29 }
 0x404   : > { %v3886_v41 = vpop.f32.mrf.mxu1  ;;  %4317 = vmatpush.bf16.msrb.mxu3 %v6634_v23  ;;  %4274 = vmatpush.bf16.msrb.mxu2 %v6490_v45 }
 0x405   : > { %v3887_v0 = vadd.f32 %v3886_v41, %v3843_v53  ;;  %4185 = vmatpush.bf16.msrb.mxu0 %v6250_v60 }
 0x408   : > { %4275 = vmatpush.bf16.msrb.mxu2 %v6474_v46 }
 0x409   : > { %v3930_v27 = vpop.f32.mrf.mxu2 }
 0x40a   : > { %v8635_v9 = vadd.f32 %v3930_v27, %v3887_v0  ;;  %v3845_v61 = vpop.f32.mrf.mxu0  ;;  %v6233_v27 = vld [vmem:[#allocation8 + $0x88] sm:$0xf] }
 0x40b   : > { %v3846_v51 = vadd.f32 %v3845_v61, %v8623_v6  ;;  %v7017_v61 = vld [vmem:[#allocation8 + $0x94] sm:$0xf0] }
 0x40c   : > { %v3889_v7 = vpop.f32.mrf.mxu1 }
 0x40d   : > { %v3890_v38 = vadd.f32 %v3889_v7, %v3846_v51  ;;  %4025 = vmatmul.bf16.gmra.mxu0 %v9378_v20  ;;  %v6617_v51 = vld [vmem:[#allocation8 + $0x388] sm:$0xf]  ;;  %v6234_v7 = vor.u32 %v7017_v61, %v6233_v27 }
 0x40e   : > { %4113 = vmatmul.bf16.gmra.mxu2 %v8489_v39 }
 0x40f   : > { %4069 = vmatmul.bf16.gmra.mxu1 %v9379_v3  ;;  %4186 = vmatpush.bf16.msrb.mxu0 %v6234_v7  ;;  %v7045_v7 = vld [vmem:[#allocation8 + $0x174] sm:$0xf0] }
 0x411   : > { %v3933_v43 = vpop.f32.mrf.mxu2 }
 0x412   : > { %v8641_v30 = vadd.f32 %v3933_v43, %v3890_v38  ;;  %v3847_v35 = vpop.f32.mrf.mxu0  ;;  %v7113_v38 = vld [vmem:[#allocation8 + $0x394] sm:$0xf0] }
 0x413   : > { %4147 = vmatmul.bf16.vlgmr.msra.gmra.mxu3 %v8570_v12  ;;  %v3848_v24 = vadd.f32 %v3847_v35, %v8623_v6  ;;  %v6618_v1 = vor.u32 %v7113_v38, %v6617_v51  ;;  %v6362_v35 = vor.u32 %v7049_v54, %v6361_v37 }
 0x414   : > { %v3891_v18 = vpop.f32.mrf.mxu1 }
 0x415   : > { %v3892_v62 = vadd.f32 %v3891_v18, %v3848_v24  ;;  %4318 = vmatpush.bf16.msrb.mxu3 %v6618_v1  ;;  %4230 = vmatpush.bf16.msrb.mxu1 %v6362_v35  ;;  %v6201_v35 = vld [vmem:[#allocation8 + $0x48] sm:$0xf] }
 0x419   : > { %v3935_v63 = vpop.f32.mrf.mxu2 }
 0x41a   : > { %v8645_v13 = vadd.f32 %v3935_v63, %v3892_v62  ;;  %v3850_v52 = vpop.f32.mrf.mxu0 }
 0x41b   : > { %v3851_v53 = vadd.f32 %v3850_v52, %v8623_v6  ;;  %v6217_v52 = vld [vmem:[#allocation8 + $0x68] sm:$0xf] }
 0x41c   : > { %v3894_v41 = vpop.f32.mrf.mxu1  ;;  %v6218_v45 = vor.u32 %v7013_v19, %v6217_v52 }
 0x41d   : > { %v3895_v0 = vadd.f32 %v3894_v41, %v3851_v53  ;;  %4030 = vmatmul.bf16.gmra.mxu0 %v9380_v59 }
 0x41e   : > { %4118 = vmatmul.bf16.gmra.mxu2 %v8506_v49  ;;  %4187 = vmatpush.bf16.msrb.mxu0 %v6218_v45  ;;  %v6313_v45 = vld [vmem:[#allocation8 + $0x128] sm:$0xf] }
 0x41f   : > { %4074 = vmatmul.bf16.gmra.mxu1 %v9381_v10 }
 0x421   : > { %v3938_v43 = vpop.f32.mrf.mxu2 }
 0x422   : > { %v8651_v29 = vadd.f32 %v3938_v43, %v3895_v0  ;;  %v3852_v50 = vpop.f32.mrf.mxu0  ;;  %v7109_v0 = vld [vmem:[#allocation8 + $0x374] sm:$0xf0] }
 0x423   : > { %4152 = vmatmul.bf16.gmra.mxu3 %v8578_v14  ;;  %v3853_v40 = vadd.f32 %v3852_v50, %v8623_v6  ;;  %v6602_v27 = vor.u32 %v7109_v0, %v6601_v11  ;;  %v7009_v50 = vld [vmem:[#allocation8 + $0x54] sm:$0xf0] }
 0x424   : > { %v3896_v24 = vpop.f32.mrf.mxu1 }
 0x425   : > { %v3897_v18 = vadd.f32 %v3896_v24, %v3853_v40  ;;  %4319 = vmatpush.bf16.msrb.mxu3 %v6602_v27  ;;  %v6329_v40 = vld [vmem:[#allocation8 + $0x148] sm:$0xf] }
 0x426   : > { %v3972_v60 = vpop.f32.mrf.mxu3 }
 0x427   : > { %v3973_v32 = vadd.f32 %v3972_v60, %v8631_v55  ;;  %v6345_v55 = vld [vmem:[#allocation8 + $0x168] sm:$0xf]  ;;  %v6202_v60 = vor.u32 %v7009_v50, %v6201_v35  ;;  %v7001_v50 = vld [vmem:[#allocation8 + $0x14] sm:$0xf0] }
 0x428   : > { %v6346_v1 = vor.u32 %v7045_v7, %v6345_v55  ;;  %v7069_v55 = vld [vmem:[#allocation8 + $0x234] sm:$0xf0]  ;;  %v6169_v35 = vld [vmem:[#allocation8 + $0x8] sm:$0xf] }
 0x429   : > { %v3940_v23 = vpop.f32.mrf.mxu2  ;;  %v4535_v37 = vmax.f32 %v3973_v32, 0.0  ;;  %4188 = vmatpush.bf16.msrb.mxu0 %v6202_v60 }
 0x42a   : > { %v8656_v62 = vadd.f32 %v3940_v23, %v3897_v18  ;;  %v3855_v63 = vpop.f32.mrf.mxu0  ;;  %4231 = vmatpush.bf16.msrb.mxu1 %v6346_v1  ;;  %v7073_v23 = vld [vmem:[#allocation8 + $0x254] sm:$0xf0]  ;;  %v6585_v1 = vld [vmem:[#allocation8 + $0x348] sm:$0xf] }
 0x42b   : > { %v3856_v53 = vadd.f32 %v3855_v63, %v8623_v6  ;;  %v6330_v63 = vor.u32 %v7041_v28, %v6329_v40  ;;  %v6458_v52 = vor.u32 %v7073_v23, %v6457_v25  ;;  %v6297_v40 = vld [vmem:[#allocation8 + $0x108] sm:$0xf]  ;;  %v7033_v28 = vld [vmem:[#allocation8 + $0x114] sm:$0xf0] }
 0x42c   : > { %v3899_v41 = vpop.f32.mrf.mxu1  ;;  %v6425_v25 = vld [vmem:[#allocation8 + $0x208] sm:$0xf]  ;;  %v7065_v23 = vld [vmem:[#allocation8 + $0x214] sm:$0xf0] }
 0x42d   : > { %v3900_v61 = vadd.f32 %v3899_v41, %v3856_v53  ;;  %4035 = vmatmul.bf16.gmra.mxu0 %v9382_v36  ;;  %4276 = vmatpush.bf16.msrb.mxu2 %v6458_v52  ;;  %v6185_v53 = vld [vmem:[#allocation8 + $0x28] sm:$0xf]  ;;  %v7005_v41 = vld [vmem:[#allocation8 + $0x34] sm:$0xf0]  ;;  %v6426_v52 = vor.u32 %v7065_v23, %v6425_v25 }
 0x42e   : > { %v3974_v51 = vpop.f32.mrf.mxu3  ;;  %4123 = vmatmul.bf16.gmra.mxu2 %v8523_v16  ;;  %4232 = vmatpush.bf16.msrb.mxu1 %v6330_v63  ;;  %v6186_v27 = vor.u32 %v7005_v41, %v6185_v53  ;;  %v6298_v63 = vor.u32 %v7033_v28, %v6297_v40 }
 0x42f   : > { %v3975_v38 = vadd.f32 %v3974_v51, %v8635_v9  ;;  %4079 = vmatmul.bf16.gmra.mxu1 %v8336_v21  ;;  %v6441_v51 = vld [vmem:[#allocation8 + $0x228] sm:$0xf] }
 0x430   : > { %4189 = vmatpush.bf16.msrb.mxu0 %v6186_v27 }
 0x431   : > { %v4539_v54 = vmax.f32 %v3975_v38, 0.0  ;;  %v3943_v43 = vpop.f32.mrf.mxu2  ;;  %v6442_v38 = vor.u32 %v7069_v55, %v6441_v51 }
 0x432   : > { %v8665_v18 = vadd.f32 %v3943_v43, %v3900_v61  ;;  %v3857_v9 = vpop.f32.mrf.mxu0  ;;  %v7037_v61 = vld [vmem:[#allocation8 + $0x134] sm:$0xf0] }
 0x433   : > { %v8663_v24 = vpack.c.bf16 %v4539_v54, %v4535_v37  ;;  %4157 = vmatmul.bf16.gmra.mxu3 %v8587_v17  ;;  %v3858_v46 = vadd.f32 %v3857_v9, %v8623_v6  ;;  %v6314_v7 = vor.u32 %v7037_v61, %v6313_v45  ;;  %v7105_v37 = vld [vmem:[#allocation8 + $0x354] sm:$0xf0]  ;;  %4277 = vmatpush.bf16.msrb.mxu2 %v6442_v38 }
 0x434   : > { %v3901_v32 = vpop.f32.mrf.mxu1  ;;  %v6586_v43 = vor.u32 %v7105_v37, %v6585_v1 }
 0x435   : > { %v3902_v19 = vadd.f32 %v3901_v32, %v3858_v46  ;;  %4233 = vmatpush.bf16.msrb.mxu1 %v6314_v7 }
 0x436   : > { %v3977_v11 = vpop.f32.mrf.mxu3  ;;  %4320 = vmatpush.bf16.msrb.mxu3 %v6586_v43  ;;  %v7101_v43 = vld [vmem:[#allocation8 + $0x334] sm:$0xf0] }
 0x437   : > { %v3978_v0 = vadd.f32 %v3977_v11, %v8641_v30  ;;  %v6170_v30 = vor.u32 %v7001_v50, %v6169_v35  ;;  %4278 = vmatpush.bf16.msrb.mxu2 %v6426_v52 }
 0x439   : > { %v3945_v54 = vpop.f32.mrf.mxu2  ;;  %4190 = vmatpush.bf16.msrb.mxu0 %v6170_v30  ;;  %4234 = vmatpush.bf16.msrb.mxu1 %v6298_v63  ;;  %v4543_v41 = vmax.f32 %v3978_v0, 0.0 }
 0x43a   : > { %v8670_v9 = vadd.f32 %v3945_v54, %v3902_v19  ;;  %v3860_v60 = vpop.f32.mrf.mxu0  ;;  %v6569_v54 = vld [vmem:[#allocation8 + $0x328] sm:$0xf] }
 0x43b   : > { %v3861_v46 = vadd.f32 %v3860_v60, %v8623_v6  ;;  %v6570_v0 = vor.u32 %v7101_v43, %v6569_v54 }
 0x43c   : > { %v3904_v32 = vpop.f32.mrf.mxu1 }
 0x43d   : > { %v3905_v11 = vadd.f32 %v3904_v32, %v3861_v46  ;;  %4040 = vmatmul.bf16.gmra.mxu0 %v9383_v31  ;;  %4321 = vmatpush.bf16.msrb.mxu3 %v6570_v0 }
 0x43e   : > { %v3979_v53 = vpop.f32.mrf.mxu3  ;;  %4128 = vmatmul.bf16.gmra.mxu2 %v8540_v57 }
 0x43f   : > { %v3980_v19 = vadd.f32 %v3979_v53, %v8645_v13  ;;  %4084 = vmatmul.bf16.gmra.mxu1 %v8350_v26 }
 0x441   : > { %v4547_v45 = vmax.f32 %v3980_v19, 0.0  ;;  %v3948_v27 = vpop.f32.mrf.mxu2 }
 0x442   : > { %v8677_v61 = vadd.f32 %v3948_v27, %v3905_v11  ;;  %v3862_v51 = vpop.f32.mrf.mxu0  ;;  %v7097_v27 = vld [vmem:[#allocation8 + $0x314] sm:$0xf0] }
 0x443   : > { %4162 = vmatmul.bf16.gmra.mxu3 %v8596_v34  ;;  %v8680_v55 = vpack.c.bf16 %v4547_v45, %v4543_v41  ;;  %v3863_v7 = vadd.f32 %v3862_v51, %v8623_v6 }
 0x444   : > { %v3906_v38 = vpop.f32.mrf.mxu1 }
 0x445   : > { %v3907_v1 = vadd.f32 %v3906_v38, %v3863_v7 }
 0x446   : > { %v3982_v13 = vpop.f32.mrf.mxu3 }
 0x447   : > { %v3983_v37 = vadd.f32 %v3982_v13, %v8651_v29 }
 0x449   : > { %v3950_v35 = vpop.f32.mrf.mxu2  ;;  %v4551_v29 = vmax.f32 %v3983_v37, 0.0 }
 0x44a   : > { %v8684_v50 = vadd.f32 %v3950_v35, %v3907_v1  ;;  %v3865_v40 = vpop.f32.mrf.mxu0 }
 0x44b   : > { %v3866_v60 = vadd.f32 %v3865_v40, %v8623_v6 }
 0x44c   : > { %v3909_v30 = vpop.f32.mrf.mxu1 }
 0x44d   : > { %v3910_v28 = vadd.f32 %v3909_v30, %v3866_v60  ;;  %4045 = vmatmul.bf16.gmra.mxu0 %v9384_v15  ;;  %v7091_v60 = vld [vmem:[#allocation8 + $0x2ec] sm:$0xf]  ;;  %v6539_v30 = vld [vmem:[#allocation8 + $0x2f8] sm:$0xf0] }
 0x44e   : > { %v3984_v25 = vpop.f32.mrf.mxu3  ;;  %4133 = vmatmul.bf16.gmra.mxu2 %v8555_v56 }
 0x44f   : > { %v3985_v23 = vadd.f32 %v3984_v25, %v8656_v62  ;;  %4089 = vmatmul.bf16.gmra.mxu1 %v8365_v44  ;;  %v6553_v62 = vld [vmem:[#allocation8 + $0x308] sm:$0xf]  ;;  %v6542_v25 = vor.u32 %v7091_v60, %v6539_v30 }
 0x450   : > { %v6554_v7 = vor.u32 %v7097_v27, %v6553_v62 }
 0x451   : > { %v4555_v46 = vmax.f32 %v3985_v23, 0.0  ;;  %v3953_v32 = vpop.f32.mrf.mxu2  ;;  %4447 = vmatpush.bf16.msra.mxu2 %v6542_v25  ;;  %v6523_v25 = vld [vmem:[#allocation8 + $0x2d8] sm:$0xf0] }
 0x452   : > { %v8691_v63 = vadd.f32 %v3953_v32, %v3910_v28  ;;  %v3867_v52 = vpop.f32.mrf.mxu0  ;;  %4322 = vmatpush.bf16.msrb.mxu3 %v6554_v7  ;;  %v6283_v32 = vld [vmem:[#allocation8 + $0xf8] sm:$0xf0]  ;;  %v7059_v7 = vld [vmem:[#allocation8 + $0x1ec] sm:$0xf] }
 0x453   : > { %4167 = vmatmul.bf16.gmra.mxu3 %v8605_v47  ;;  %v8694_v11 = vpack.c.bf16 %v4555_v46, %v4551_v29  ;;  %v3868_v53 = vadd.f32 %v3867_v52, %v8623_v6  ;;  %v7027_v46 = vld [vmem:[#allocation8 + $0xec] sm:$0xf] }
 0x454   : > { %v3911_v19 = vpop.f32.mrf.mxu1  ;;  %v7123_v52 = vld [vmem:[#allocation8 + $0x3ec] sm:$0xf] }
 0x455   : > { %v3912_v41 = vadd.f32 %v3911_v19, %v3868_v53 }
 0x456   : > { %v3987_v45 = vpop.f32.mrf.mxu3 }
 0x457   : > { %v3988_v51 = vadd.f32 %v3987_v45, %v8665_v18  ;;  %v6667_v45 = vld [vmem:[#allocation8 + $0x3f8] sm:$0xf0] }
 0x458   : > { %v6670_v62 = vor.u32 %v7123_v52, %v6667_v45  ;;  %v6267_v52 = vld [vmem:[#allocation8 + $0xd8] sm:$0xf0] }
 0x459   : > { %v3955_v38 = vpop.f32.mrf.mxu2  ;;  %v4559_v18 = vmax.f32 %v3988_v51, 0.0 }
 0x45a   : > { %v8698_v1 = vadd.f32 %v3955_v38, %v3912_v41  ;;  %v3870_v13 = vpop.f32.mrf.mxu0  ;;  %v6286_v41 = vor.u32 %v7027_v46, %v6283_v32  ;;  %v6411_v38 = vld [vmem:[#allocation8 + $0x1f8] sm:$0xf0]  ;;  %4491 = vmatpush.bf16.msra.mxu3 %v6670_v62  ;;  %v7023_v32 = vld [vmem:[#allocation8 + $0xcc] sm:$0xf] }
 0x45b   : > { %v3871_v37 = vadd.f32 %v3870_v13, %v8623_v6  ;;  %v6270_v45 = vor.u32 %v7023_v32, %v6267_v52  ;;  %v7055_v62 = vld [vmem:[#allocation8 + $0x1cc] sm:$0xf] }
 0x45c   : > { %v3914_v54 = vpop.f32.mrf.mxu1  ;;  %4359 = vmatpush.bf16.msra.mxu0 %v6286_v41 }
 0x45d   : > { %v3915_v43 = vadd.f32 %v3914_v54, %v3871_v37  ;;  %4191 = vmatmul.bf16.vlgmr.msrb.gmra.mxu0 %v9375_v42  ;;  %v6414_v37 = vor.u32 %v7059_v7, %v6411_v38  ;;  %v8713_v54 = vperm.slane %v8620_v33, 1 }
 0x45e   : > { %v3989_v35 = vpop.f32.mrf.mxu3  ;;  %4279 = vmatmul.bf16.vlgmr.msrb.gmra.mxu2 %v8459_v4 }
 0x45f   : > { %v3990_v0 = vadd.f32 %v3989_v35, %v8670_v9  ;;  %4235 = vmatmul.bf16.vlgmr.msrb.gmra.mxu1 %v8280_v5 }
 0x460   : > { %4403 = vmatpush.bf16.msra.mxu1 %v6414_v37  ;;  %4360 = vmatpush.bf16.msra.mxu0 %v6270_v45 }
 0x461   : > { %v4563_v40 = vmax.f32 %v3990_v0, 0.0  ;;  %v3958_v28 = vpop.f32.mrf.mxu2 }
 0x462   : > { %v8705_v23 = vadd.f32 %v3958_v28, %v3915_v43  ;;  %v3872_v29 = vpop.f32.mrf.mxu0  ;;  %v7087_v28 = vld [vmem:[#allocation8 + $0x2cc] sm:$0xf] }
 0x463   : > { %4172 = vmatmul.bf16.gmra.mxu3 %v8614_v2  ;;  %v8708_v53 = vpack.c.bf16 %v4563_v40, %v4559_v18  ;;  %v3873_v9 = vadd.f32 %v3872_v29, %v8623_v6  ;;  %v6526_v46 = vor.u32 %v7087_v28, %v6523_v25  ;;  %v7083_v25 = vld [vmem:[#allocation8 + $0x2ac] sm:$0xf] }
 0x464   : > { %v3916_v19 = vpop.f32.mrf.mxu1 }
 0x465   : > { %v3917_v27 = vadd.f32 %v3916_v19, %v3873_v9  ;;  %v7119_v9 = vld [vmem:[#allocation8 + $0x3cc] sm:$0xf]  ;;  %4448 = vmatpush.bf16.msra.mxu2 %v6526_v46 }
 0x466   : > { %v3992_v51 = vpop.f32.mrf.mxu3 }
 0x467   : > { %v3993_v13 = vadd.f32 %v3992_v51, %v8677_v61 }
 0x469   : > { %v3960_v43 = vpop.f32.mrf.mxu2  ;;  %v4567_v33 = vmax.f32 %v3993_v13, 0.0 }
 0x46a   : > { %v8715_v6 = vadd.f32 %v3960_v43, %v3917_v27  ;;  %v4016_v35 = vpop.f32.mrf.mxu0  ;;  %v6395_v27 = vld [vmem:[#allocation8 + $0x1d8] sm:$0xf0] }
 0x46b   : > { %v4017_v0 = vadd.f32 %v4016_v35, %v8713_v54  ;;  %v6398_v37 = vor.u32 %v7055_v62, %v6395_v27  ;;  %v6251_v62 = vld [vmem:[#allocation8 + $0xb8] sm:$0xf0]  ;;  %v7115_v27 = vld [vmem:[#allocation8 + $0x3ac] sm:$0xf] }
 0x46c   : > { %v4060_v18 = vpop.f32.mrf.mxu1 }
 0x46d   : > { %v4061_v40 = vadd.f32 %v4060_v18, %v4017_v0  ;;  %4196 = vmatmul.bf16.gmra.mxu0 %v9376_v48  ;;  %4404 = vmatpush.bf16.msra.mxu1 %v6398_v37  ;;  %v6635_v37 = vld [vmem:[#allocation8 + $0x3b8] sm:$0xf0] }
 0x46e   : > { %v3994_v60 = vpop.f32.mrf.mxu3  ;;  %4284 = vmatmul.bf16.gmra.mxu2 %v8474_v8 }
 0x46f   : > { %v3995_v30 = vadd.f32 %v3994_v60, %v8684_v50  ;;  %4240 = vmatmul.bf16.gmra.mxu1 %v9377_v22  ;;  %v6651_v50 = vld [vmem:[#allocation8 + $0x3d8] sm:$0xf0] }
 0x470   : > { %v6654_v13 = vor.u32 %v7119_v9, %v6651_v50  ;;  %v7019_v50 = vld [vmem:[#allocation8 + $0xac] sm:$0xf] }
 0x471   : > { %v4571_v61 = vmax.f32 %v3995_v30, 0.0  ;;  %v4104_v29 = vpop.f32.mrf.mxu2 }
 0x472   : > { %v8722_v19 = vadd.f32 %v4104_v29, %v4061_v40  ;;  %v4018_v41 = vpop.f32.mrf.mxu0  ;;  %4492 = vmatpush.bf16.msra.mxu3 %v6654_v13  ;;  %v6507_v29 = vld [vmem:[#allocation8 + $0x2b8] sm:$0xf0]  ;;  %v6254_v13 = vor.u32 %v7019_v50, %v6251_v62  ;;  %v7015_v50 = vld [vmem:[#allocation8 + $0x8c] sm:$0xf] }
 0x473   : > { %4177 = vmatmul.bf16.gmra.mxu3 %v8629_v58  ;;  %v8725_v51 = vpack.c.bf16 %v4571_v61, %v4567_v33  ;;  %v4019_v7 = vadd.f32 %v4018_v41, %v8713_v54  ;;  %v6235_v62 = vld [vmem:[#allocation8 + $0x98] sm:$0xf0] }
 0x474   : > { %v4062_v38 = vpop.f32.mrf.mxu1  ;;  %4361 = vmatpush.bf16.msra.mxu0 %v6254_v13 }
 0x475   : > { %v4063_v43 = vadd.f32 %v4062_v38, %v4019_v7 }
 0x476   : > { %v3997_v35 = vpop.f32.mrf.mxu3 }
 0x477   : > { %v3998_v0 = vadd.f32 %v3997_v35, %v8691_v63  ;;  %v6510_v63 = vor.u32 %v7083_v25, %v6507_v29  ;;  %v6379_v35 = vld [vmem:[#allocation8 + $0x1b8] sm:$0xf0]  ;;  %v7079_v29 = vld [vmem:[#allocation8 + $0x28c] sm:$0xf] }
 0x479   : > { %v4106_v18 = vpop.f32.mrf.mxu2  ;;  %v4575_v32 = vmax.f32 %v3998_v0, 0.0  ;;  %4449 = vmatpush.bf16.msra.mxu2 %v6510_v63  ;;  %v6638_v0 = vor.u32 %v7115_v27, %v6635_v37 }
 0x47a   : > { %v8729_v40 = vadd.f32 %v4106_v18, %v4063_v43  ;;  %v4021_v60 = vpop.f32.mrf.mxu0  ;;  %v7051_v43 = vld [vmem:[#allocation8 + $0x1ac] sm:$0xf] }
 0x47b   : > { %v4022_v30 = vadd.f32 %v4021_v60, %v8713_v54  ;;  %v6382_v18 = vor.u32 %v7051_v43, %v6379_v35  ;;  %4493 = vmatpush.bf16.msra.mxu3 %v6638_v0  ;;  %v7047_v35 = vld [vmem:[#allocation8 + $0x18c] sm:$0xf]  ;;  %v6363_v0 = vld [vmem:[#allocation8 + $0x198] sm:$0xf0] }
 0x47c   : > { %v4065_v33 = vpop.f32.mrf.mxu1 }
 0x47d   : > { %v4066_v61 = vadd.f32 %v4065_v33, %v4022_v30  ;;  %4201 = vmatmul.bf16.gmra.mxu0 %v9378_v20  ;;  %4405 = vmatpush.bf16.msra.mxu1 %v6382_v18 }
 0x47e   : > { %v3999_v28 = vpop.f32.mrf.mxu3  ;;  %4289 = vmatmul.bf16.gmra.mxu2 %v8489_v39 }
 0x47f   : > { %v4000_v46 = vadd.f32 %v3999_v28, %v8698_v1  ;;  %4245 = vmatmul.bf16.gmra.mxu1 %v9379_v3 }
 0x481   : > { %v4579_v52 = vmax.f32 %v4000_v46, 0.0  ;;  %v4109_v9 = vpop.f32.mrf.mxu2  ;;  %v6491_v46 = vld [vmem:[#allocation8 + $0x298] sm:$0xf0] }
 0x482   : > { %v8736_v41 = vadd.f32 %v4109_v9, %v4066_v61  ;;  %v4023_v45 = vpop.f32.mrf.mxu0 }
 0x483   : > { %4323 = vmatmul.bf16.vlgmr.msrb.gmra.mxu3 %v8570_v12  ;;  %v8739_v7 = vpack.c.bf16 %v4579_v52, %v4575_v32  ;;  %v4024_v1 = vadd.f32 %v4023_v45, %v8713_v54  ;;  %v6494_v52 = vor.u32 %v7079_v29, %v6491_v46 }
 0x484   : > { %v4067_v38 = vpop.f32.mrf.mxu1 }
 0x485   : > { %v4068_v60 = vadd.f32 %v4067_v38, %v4024_v1  ;;  %4450 = vmatpush.bf16.msra.mxu2 %v6494_v52  ;;  %v6238_v1 = vor.u32 %v7015_v50, %v6235_v62  ;;  %v6619_v38 = vld [vmem:[#allocation8 + $0x398] sm:$0xf0] }
 0x486   : > { %v4002_v30 = vpop.f32.mrf.mxu3  ;;  %v6475_v52 = vld [vmem:[#allocation8 + $0x278] sm:$0xf0] }
 0x487   : > { %v4003_v33 = vadd.f32 %v4002_v30, %v8705_v23  ;;  %v7111_v23 = vld [vmem:[#allocation8 + $0x38c] sm:$0xf]  ;;  %4362 = vmatpush.bf16.msra.mxu0 %v6238_v1 }
 0x488   : > { %v6622_v13 = vor.u32 %v7111_v23, %v6619_v38  ;;  %v7011_v23 = vld [vmem:[#allocation8 + $0x6c] sm:$0xf] }
 0x489   : > { %v4111_v61 = vpop.f32.mrf.mxu2  ;;  %v4583_v37 = vmax.f32 %v4003_v33, 0.0  ;;  %v7107_v1 = vld [vmem:[#allocation8 + $0x36c] sm:$0xf] }
 0x48a   : > { %v8743_v28 = vadd.f32 %v4111_v61, %v4068_v60  ;;  %v4026_v25 = vpop.f32.mrf.mxu0  ;;  %4494 = vmatpush.bf16.msra.mxu3 %v6622_v13  ;;  %v6366_v60 = vor.u32 %v7047_v35, %v6363_v0 }
 0x48b   : > { %v4027_v63 = vadd.f32 %v4026_v25, %v8713_v54 }
 0x48c   : > { %v4070_v32 = vpop.f32.mrf.mxu1  ;;  %4406 = vmatpush.bf16.msra.mxu1 %v6366_v60  ;;  %v6347_v60 = vld [vmem:[#allocation8 + $0x178] sm:$0xf0] }
 0x48d   : > { %v4071_v9 = vadd.f32 %v4070_v32, %v4027_v63  ;;  %4206 = vmatmul.bf16.gmra.mxu0 %v9380_v59  ;;  %v7075_v32 = vld [vmem:[#allocation8 + $0x26c] sm:$0xf] }
 0x48e   : > { %v4004_v45 = vpop.f32.mrf.mxu3  ;;  %4294 = vmatmul.bf16.gmra.mxu2 %v8506_v49  ;;  %v6478_v50 = vor.u32 %v7075_v32, %v6475_v52  ;;  %v7007_v32 = vld [vmem:[#allocation8 + $0x4c] sm:$0xf]  ;;  %v6203_v52 = vld [vmem:[#allocation8 + $0x58] sm:$0xf0] }
 0x48f   : > { %v4005_v27 = vadd.f32 %v4004_v45, %v8715_v6  ;;  %4250 = vmatmul.bf16.gmra.mxu1 %v9381_v10 }
 0x490   : > { %4451 = vmatpush.bf16.msra.mxu2 %v6478_v50 }
 0x491   : > { %v4587_v43 = vmax.f32 %v4005_v27, 0.0  ;;  %v4114_v18 = vpop.f32.mrf.mxu2  ;;  %v6219_v27 = vld [vmem:[#allocation8 + $0x78] sm:$0xf0] }
 0x492   : > { %v8750_v30 = vadd.f32 %v4114_v18, %v4071_v9  ;;  %v4028_v6 = vpop.f32.mrf.mxu0 }
 0x493   : > { %4328 = vmatmul.bf16.gmra.mxu3 %v8578_v14  ;;  %v8753_v61 = vpack.c.bf16 %v4587_v43, %v4583_v37  ;;  %v4029_v25 = vadd.f32 %v4028_v6, %v8713_v54  ;;  %v6222_v37 = vor.u32 %v7011_v23, %v6219_v27  ;;  %v6603_v43 = vld [vmem:[#allocation8 + $0x378] sm:$0xf0]  ;;  %v6206_v23 = vor.u32 %v7007_v32, %v6203_v52 }
 0x494   : > { %v4072_v29 = vpop.f32.mrf.mxu1  ;;  %v6606_v35 = vor.u32 %v7107_v1, %v6603_v43  ;;  %v6331_v27 = vld [vmem:[#allocation8 + $0x158] sm:$0xf0]  ;;  %v7071_v1 = vld [vmem:[#allocation8 + $0x24c] sm:$0xf] }
 0x495   : > { %9385 = vst [vmem:[#allocation42_spill] sm:$0xff] %v8753_v61  ;;  %v4073_v46 = vadd.f32 %v4072_v29, %v4029_v25  ;;  %4363 = vmatpush.bf16.msra.mxu0 %v6222_v37 }
 0x496   : > { %v4148_v33 = vpop.f32.mrf.mxu3  ;;  %4495 = vmatpush.bf16.msra.mxu3 %v6606_v35 }
 0x497   : > { %v4149_v63 = vadd.f32 %v4148_v33, %v8722_v19  ;;  %v7043_v19 = vld [vmem:[#allocation8 + $0x16c] sm:$0xf] }
 0x498   : > { %v6350_v25 = vor.u32 %v7043_v19, %v6347_v60  ;;  %v7003_v19 = vld [vmem:[#allocation8 + $0x2c] sm:$0xf] }
 0x499   : > { %v4116_v45 = vpop.f32.mrf.mxu2  ;;  %v4536_v29 = vmax.f32 %v4149_v63, 0.0  ;;  %4364 = vmatpush.bf16.msra.mxu0 %v6206_v23  ;;  %v7035_v60 = vld [vmem:[#allocation8 + $0x12c] sm:$0xf] }
 0x49a   : > { %v8757_v62 = vadd.f32 %v4116_v45, %v4073_v46  ;;  %v4031_v9 = vpop.f32.mrf.mxu0  ;;  %4407 = vmatpush.bf16.msra.mxu1 %v6350_v25  ;;  %v7039_v45 = vld [vmem:[#allocation8 + $0x14c] sm:$0xf] }
 0x49b   : > { %v4032_v38 = vadd.f32 %v4031_v9, %v8713_v54  ;;  %v6334_v37 = vor.u32 %v7039_v45, %v6331_v27  ;;  %v6587_v45 = vld [vmem:[#allocation8 + $0x358] sm:$0xf0] }
 0x49c   : > { %v4075_v13 = vpop.f32.mrf.mxu1 }
 0x49d   : > { %v4076_v0 = vadd.f32 %v4075_v13, %v4032_v38  ;;  %4211 = vmatmul.bf16.gmra.mxu0 %v9382_v36  ;;  %v6459_v38 = vld [vmem:[#allocation8 + $0x258] sm:$0xf0] }
 0x49e   : > { %v4150_v18 = vpop.f32.mrf.mxu3  ;;  %4299 = vmatmul.bf16.gmra.mxu2 %v8523_v16  ;;  %v6462_v43 = vor.u32 %v7071_v1, %v6459_v38  ;;  %4408 = vmatpush.bf16.msra.mxu1 %v6334_v37  ;;  %v6999_v1 = vld [vmem:[#allocation8 + $0xc] sm:$0xf]  ;;  %v6171_v38 = vld [vmem:[#allocation8 + $0x18] sm:$0xf0] }
 0x49f   : > { %v4151_v6 = vadd.f32 %v4150_v18, %v8729_v40  ;;  %4255 = vmatmul.bf16.gmra.mxu1 %v8336_v21 }
 0x4a0   : > { %4452 = vmatpush.bf16.msra.mxu2 %v6462_v43  ;;  %v6299_v43 = vld [vmem:[#allocation8 + $0x118] sm:$0xf0] }
 0x4a1   : > { %v4540_v46 = vmax.f32 %v4151_v6, 0.0  ;;  %v4119_v33 = vpop.f32.mrf.mxu2 }
 0x4a2   : > { %v8766_v9 = vadd.f32 %v4119_v33, %v4076_v0  ;;  %v4033_v40 = vpop.f32.mrf.mxu0  ;;  %v6187_v0 = vld [vmem:[#allocation8 + $0x38] sm:$0xf0] }
 0x4a3   : > { %v8764_v50 = vpack.c.bf16 %v4540_v46, %v4536_v29  ;;  %4333 = vmatmul.bf16.gmra.mxu3 %v8587_v17  ;;  %v4034_v13 = vadd.f32 %v4033_v40, %v8713_v54  ;;  %v6190_v25 = vor.u32 %v7003_v19, %v6187_v0  ;;  %v6315_v29 = vld [vmem:[#allocation8 + $0x138] sm:$0xf0]  ;;  %v7067_v46 = vld [vmem:[#allocation8 + $0x22c] sm:$0xf] }
 0x4a4   : > { %v4077_v63 = vpop.f32.mrf.mxu1  ;;  %v6443_v33 = vld [vmem:[#allocation8 + $0x238] sm:$0xf0]  ;;  %v6318_v32 = vor.u32 %v7035_v60, %v6315_v29  ;;  %v7103_v40 = vld [vmem:[#allocation8 + $0x34c] sm:$0xf] }
 0x4a5   : > { %v4078_v35 = vadd.f32 %v4077_v63, %v4034_v13  ;;  %v6446_v52 = vor.u32 %v7067_v46, %v6443_v33  ;;  %4365 = vmatpush.bf16.msra.mxu0 %v6190_v25  ;;  %v6590_v23 = vor.u32 %v7103_v40, %v6587_v45  ;;  %v7031_v13 = vld [vmem:[#allocation8 + $0x10c] sm:$0xf]  ;;  %v6427_v19 = vld [vmem:[#allocation8 + $0x218] sm:$0xf0] }
 0x4a6   : > { %v4153_v18 = vpop.f32.mrf.mxu3  ;;  %4409 = vmatpush.bf16.msra.mxu1 %v6318_v32  ;;  %v6302_v25 = vor.u32 %v7031_v13, %v6299_v43  ;;  %v6571_v43 = vld [vmem:[#allocation8 + $0x338] sm:$0xf0] }
 0x4a7   : > { %v4154_v6 = vadd.f32 %v4153_v18, %v8736_v41  ;;  %4453 = vmatpush.bf16.msra.mxu2 %v6446_v52  ;;  %v6174_v41 = vor.u32 %v6999_v1, %v6171_v38  ;;  %v7063_v18 = vld [vmem:[#allocation8 + $0x20c] sm:$0xf]  ;;  %4496 = vmatpush.bf16.msra.mxu3 %v6590_v23 }
 0x4a8   : > { %v6430_v29 = vor.u32 %v7063_v18, %v6427_v19 }
 0x4a9   : > { %v4121_v27 = vpop.f32.mrf.mxu2  ;;  %4366 = vmatpush.bf16.msra.mxu0 %v6174_v41  ;;  %v4544_v32 = vmax.f32 %v4154_v6, 0.0  ;;  %v7099_v41 = vld [vmem:[#allocation8 + $0x32c] sm:$0xf] }
 0x4aa   : > { %v8771_v63 = vadd.f32 %v4121_v27, %v4078_v35  ;;  %v4036_v37 = vpop.f32.mrf.mxu0  ;;  %4410 = vmatpush.bf16.msra.mxu1 %v6302_v25  ;;  %v6574_v19 = vor.u32 %v7099_v41, %v6571_v43  ;;  %v7095_v41 = vld [vmem:[#allocation8 + $0x30c] sm:$0xf] }
 0x4ab   : > { %v4037_v0 = vadd.f32 %v4036_v37, %v8713_v54  ;;  %4454 = vmatpush.bf16.msra.mxu2 %v6430_v29 }
 0x4ac   : > { %v4080_v60 = vpop.f32.mrf.mxu1  ;;  %4497 = vmatpush.bf16.msra.mxu3 %v6574_v19 }
 0x4ad   : > { %v4081_v46 = vadd.f32 %v4080_v60, %v4037_v0  ;;  %4216 = vmatmul.bf16.gmra.mxu0 %v9383_v31 }
 0x4ae   : > { %v4155_v33 = vpop.f32.mrf.mxu3  ;;  %4304 = vmatmul.bf16.gmra.mxu2 %v8540_v57 }
 0x4af   : > { %v4156_v35 = vadd.f32 %v4155_v33, %v8743_v28  ;;  %4260 = vmatmul.bf16.gmra.mxu1 %v8350_v26 }
 0x4b1   : > { %v4548_v52 = vmax.f32 %v4156_v35, 0.0  ;;  %v4124_v40 = vpop.f32.mrf.mxu2 }
 0x4b2   : > { %v4125_v45 = vadd.f32 %v4124_v40, %v4081_v46  ;;  %v4038_v27 = vpop.f32.mrf.mxu0 }
 0x4b3   : > { %4338 = vmatmul.bf16.gmra.mxu3 %v8596_v34  ;;  %v8779_v23 = vpack.c.bf16 %v4548_v52, %v4544_v32  ;;  %v4039_v1 = vadd.f32 %v4038_v27, %v8713_v54 }
 0x4b4   : > { %v4082_v38 = vpop.f32.mrf.mxu1 }
 0x4b5   : > { %v4083_v13 = vadd.f32 %v4082_v38, %v4039_v1 }
 0x4b6   : > { %v4158_v37 = vpop.f32.mrf.mxu3 }
 0x4b7   : > { %v4159_v28 = vadd.f32 %v4158_v37, %v8750_v30 }
 0x4b9   : > { %v4126_v18 = vpop.f32.mrf.mxu2  ;;  %v4552_v30 = vmax.f32 %v4159_v28, 0.0 }
 0x4ba   : > { %v4127_v6 = vadd.f32 %v4126_v18, %v4083_v13  ;;  %v4041_v0 = vpop.f32.mrf.mxu0 }
 0x4bb   : > { %v4042_v60 = vadd.f32 %v4041_v0, %v8713_v54 }
 0x4bc   : > { %v4085_v25 = vpop.f32.mrf.mxu1 }
 0x4bd   : > { %v4086_v29 = vadd.f32 %v4085_v25, %v4042_v60  ;;  %4221 = vmatmul.bf16.gmra.mxu0 %v9384_v15 }
 0x4be   : > { %v4160_v46 = vpop.f32.mrf.mxu3  ;;  %4309 = vmatmul.bf16.gmra.mxu2 %v8555_v56 }
 0x4bf   : > { %v4161_v33 = vadd.f32 %v4160_v46, %v8757_v62  ;;  %4265 = vmatmul.bf16.gmra.mxu1 %v8365_v44  ;;  %v6555_v62 = vld [vmem:[#allocation8 + $0x318] sm:$0xf0] }
 0x4c0   : > { %v6558_v18 = vor.u32 %v7095_v41, %v6555_v62 }
 0x4c1   : > { %v4556_v35 = vmax.f32 %v4161_v33, 0.0  ;;  %v4129_v32 = vpop.f32.mrf.mxu2 }
 0x4c2   : > { %v4130_v52 = vadd.f32 %v4129_v32, %v4086_v29  ;;  %v4043_v40 = vpop.f32.mrf.mxu0  ;;  %4498 = vmatpush.bf16.msra.mxu3 %v6558_v18 }
 0x4c3   : > { %4343 = vmatmul.bf16.gmra.mxu3 %v8605_v47  ;;  %v8789_v27 = vpack.c.bf16 %v4556_v35, %v4552_v30  ;;  %v4044_v1 = vadd.f32 %v4043_v40, %v8713_v54 }
 0x4c4   : > { %v4087_v38 = vpop.f32.mrf.mxu1 }
 0x4c5   : > { %v4088_v13 = vadd.f32 %v4087_v38, %v4044_v1 }
 0x4c6   : > { %v4163_v37 = vpop.f32.mrf.mxu3 }
 0x4c7   : > { %v4164_v43 = vadd.f32 %v4163_v37, %v8766_v9 }
 0x4c9   : > { %v4131_v28 = vpop.f32.mrf.mxu2  ;;  %v4560_v30 = vmax.f32 %v4164_v43, 0.0 }
 0x4ca   : > { %v4132_v19 = vadd.f32 %v4131_v28, %v4088_v13  ;;  %v4046_v0 = vpop.f32.mrf.mxu0 }
 0x4cb   : > { %v4047_v60 = vadd.f32 %v4046_v0, %v8713_v54 }
 0x4cc   : > { %v4090_v25 = vpop.f32.mrf.mxu1 }
 0x4cd   : > { %v4091_v29 = vadd.f32 %v4090_v25, %v4047_v60  ;;  %4367 = vmatmul.bf16.vlgmr.msra.gmra.mxu0 %v9375_v42 }
 0x4ce   : > { %v4165_v46 = vpop.f32.mrf.mxu3  ;;  %4455 = vmatmul.bf16.vlgmr.msra.gmra.mxu2 %v8459_v4 }
 0x4cf   : > { %v4166_v33 = vadd.f32 %v4165_v46, %v8771_v63  ;;  %4411 = vmatmul.bf16.vlgmr.msra.gmra.mxu1 %v8280_v5 }
 0x4d1   : > { %v4564_v9 = vmax.f32 %v4166_v33, 0.0  ;;  %v4134_v35 = vpop.f32.mrf.mxu2 }
 0x4d2   : > { %v4135_v32 = vadd.f32 %v4134_v35, %v4091_v29  ;;  %v4048_v40 = vpop.f32.mrf.mxu0 }
 0x4d3   : > { %4348 = vmatmul.bf16.gmra.mxu3 %v8614_v2  ;;  %v8799_v1 = vpack.c.bf16 %v4564_v9, %v4560_v30  ;;  %v4049_v38 = vadd.f32 %v4048_v40, %v8713_v54  ;;  %v7149_v40 = vld [vmem:[#allocation11 + $0xb8] sm:$0xff] }
 0x4d4   : > { %v4092_v13 = vpop.f32.mrf.mxu1  ;;  %4967 = vmatpush.bf16.msrb.mxu2 %v7149_v40 }
 0x4d5   : > { %v4093_v37 = vadd.f32 %v4092_v13, %v4049_v38 }
 0x4d6   : > { %v4168_v42 = vpop.f32.mrf.mxu3 }
 0x4d7   : > { %v4169_v41 = vadd.f32 %v4168_v42, %v4125_v45 }
 0x4d9   : > { %v4136_v63 = vpop.f32.mrf.mxu2  ;;  %v4568_v28 = vmax.f32 %v4169_v41, 0.0 }
 0x4da   : > { %v4137_v62 = vadd.f32 %v4136_v63, %v4093_v37  ;;  %v8802_v5 = vpop.f32.mrf.mxu0  ;;  %v7157_v37 = vld [vmem:[#allocation11 + $0xf8] sm:$0xff] }
 0x4db   : > { %5011 = vmatpush.bf16.msrb.mxu3 %v7157_v37  ;;  %v7146_v37 = vld [vmem:[#allocation11 + $0xa0] sm:$0xff] }
 0x4dc   : > { %v8804_v4 = vpop.f32.mrf.mxu1 }
 0x4dd   : > { %4372 = vmatmul.bf16.gmra.mxu0 %v9376_v48 }
 0x4de   : > { %v4170_v43 = vpop.f32.mrf.mxu3  ;;  %4460 = vmatmul.bf16.gmra.mxu2 %v8474_v8 }
 0x4df   : > { %v4171_v18 = vadd.f32 %v4170_v43, %v4127_v6  ;;  %4416 = vmatmul.bf16.gmra.mxu1 %v9377_v22 }
 0x4e1   : > { %v4572_v54 = vmax.f32 %v4171_v18, 0.0  ;;  %v8809_v0 = vpop.f32.mrf.mxu2 }
 0x4e2   : > { %v8812_v45 = vpop.f32.mrf.mxu0 }
 0x4e3   : > { %4353 = vmatmul.bf16.gmra.mxu3 %v8629_v58  ;;  %v8814_v60 = vpack.c.bf16 %v4572_v54, %v4568_v28  ;;  %v7148_v28 = vld [vmem:[#allocation11 + $0xb0] sm:$0xff] }
 0x4e4   : > { %v8816_v25 = vpop.f32.mrf.mxu1  ;;  %4968 = vmatpush.bf16.msrb.mxu2 %v7148_v28 }
 0x4e6   : > { %v4173_v29 = vpop.f32.mrf.mxu3 }
 0x4e7   : > { %v4174_v46 = vadd.f32 %v4173_v29, %v4130_v52 }
 0x4e9   : > { %v8818_v48 = vpop.f32.mrf.mxu2  ;;  %v4576_v30 = vmax.f32 %v4174_v46, 0.0  ;;  %v7132_v46 = vld [vmem:[#allocation11 + $0x30] sm:$0xff] }
 0x4ea   : > { %v8820_v6 = vpop.f32.mrf.mxu0 }
 0x4ec   : > { %v8822_v22 = vpop.f32.mrf.mxu1 }
 0x4ed   : > { %4377 = vmatmul.bf16.gmra.mxu0 %v9378_v20 }
 0x4ee   : > { %v4175_v8 = vpop.f32.mrf.mxu3  ;;  %4465 = vmatmul.bf16.gmra.mxu2 %v8489_v39  ;;  %v7141_v39 = vld [vmem:[#allocation11 + $0x78] sm:$0xff] }
 0x4ef   : > { %v4176_v33 = vadd.f32 %v4175_v8, %v4132_v19  ;;  %4421 = vmatmul.bf16.gmra.mxu1 %v9379_v3  ;;  %v7133_v19 = vld [vmem:[#allocation11 + $0x38] sm:$0xff]  ;;  %v7156_v8 = vld [vmem:[#allocation11 + $0xf0] sm:$0xff] }
 0x4f0   : > { %4879 = vmatpush.bf16.msrb.mxu0 %v7133_v19  ;;  %4923 = vmatpush.bf16.msrb.mxu1 %v7141_v39  ;;  %v7138_v19 = vld [vmem:[#allocation11 + $0x60] sm:$0xff] }
 0x4f1   : > { %v4580_v9 = vmax.f32 %v4176_v33, 0.0  ;;  %v8827_v35 = vpop.f32.mrf.mxu2  ;;  %v7140_v33 = vld [vmem:[#allocation11 + $0x70] sm:$0xff]  ;;  %5012 = vmatpush.bf16.msrb.mxu3 %v7156_v8 }
 0x4f2   : > { %v8830_v52 = vpop.f32.mrf.mxu0  ;;  %v7128_v8 = vld [vmem:[#allocation11 + $0x10] sm:$0xff] }
 0x4f3   : > { %4499 = vmatmul.bf16.vlgmr.msra.gmra.mxu3 %v8570_v12  ;;  %v8832_v38 = vpack.c.bf16 %v4580_v9, %v4576_v30  ;;  %v7147_v9 = vld [vmem:[#allocation11 + $0xa8] sm:$0xff] }
 0x4f4   : > { %v8834_v13 = vpop.f32.mrf.mxu1  ;;  %4880 = vmatpush.bf16.msrb.mxu0 %v7132_v46  ;;  %4924 = vmatpush.bf16.msrb.mxu1 %v7140_v33  ;;  %v7144_v33 = vld [vmem:[#allocation11 + $0x90] sm:$0xff] }
 0x4f5   : > { %9386 = vst [vmem:[#allocation44_spill] sm:$0xff] %v8832_v38  ;;  %4969 = vmatpush.bf16.msrb.mxu2 %v7147_v9  ;;  %v7143_v9 = vld [vmem:[#allocation11 + $0x88] sm:$0xff] }
 0x4f6   : > { %v4178_v20 = vpop.f32.mrf.mxu3 }
 0x4f7   : > { %v4179_v3 = vadd.f32 %v4178_v20, %v4135_v32  ;;  %v7130_v20 = vld [vmem:[#allocation11 + $0x20] sm:$0xff] }
 0x4f9   : > { %v8836_v42 = vpop.f32.mrf.mxu2  ;;  %v4584_v18 = vmax.f32 %v4179_v3, 0.0  ;;  %4970 = vmatpush.bf16.msrb.mxu2 %v7146_v37  ;;  %v7134_v37 = vld [vmem:[#allocation11 + $0x40] sm:$0xff] }
 0x4fa   : > { %v8838_v41 = vpop.f32.mrf.mxu0 }
 0x4fc   : > { %v8840_v12 = vpop.f32.mrf.mxu1 }
 0x4fd   : > { %4382 = vmatmul.bf16.gmra.mxu0 %v9380_v59 }
 0x4fe   : > { %v4180_v63 = vpop.f32.mrf.mxu3  ;;  %4470 = vmatmul.bf16.gmra.mxu2 %v8506_v49 }
 0x4ff   : > { %v4181_v43 = vadd.f32 %v4180_v63, %v4137_v62  ;;  %4426 = vmatmul.bf16.gmra.mxu1 %v9381_v10  ;;  %v7131_v10 = vld [vmem:[#allocation11 + $0x28] sm:$0xff]  ;;  %v7129_v63 = vld [vmem:[#allocation11 + $0x18] sm:$0xff] }
 0x500   : > { %v7139_v62 = vld [vmem:[#allocation11 + $0x68] sm:$0xff]  ;;  %4881 = vmatpush.bf16.msrb.mxu0 %v7131_v10 }
 0x501   : > { %v4588_v32 = vmax.f32 %v4181_v43, 0.0  ;;  %v8845_v54 = vpop.f32.mrf.mxu2  ;;  %4925 = vmatpush.bf16.msrb.mxu1 %v7139_v62  ;;  %v7137_v43 = vld [vmem:[#allocation11 + $0x58] sm:$0xff]  ;;  %v7135_v62 = vld [vmem:[#allocation11 + $0x48] sm:$0xff] }
 0x502   : > { %v8848_v29 = vpop.f32.mrf.mxu0 }
 0x503   : > { %4504 = vmatmul.bf16.gmra.mxu3 %v8578_v14  ;;  %v8850_v30 = vpack.c.bf16 %v4588_v32, %v4584_v18  ;;  %v7145_v18 = vld [vmem:[#allocation11 + $0x98] sm:$0xff]  ;;  %v7155_v32 = vld [vmem:[#allocation11 + $0xe8] sm:$0xff] }
 0x504   : > { %v8852_v59 = vpop.f32.mrf.mxu1  ;;  %4882 = vmatpush.bf16.msrb.mxu0 %v7130_v20  ;;  %4971 = vmatpush.bf16.msrb.mxu2 %v7145_v18 }
 0x505   : > { %9387 = vst [vmem:[#allocation19_spill] sm:$0xff] %v8850_v30  ;;  %4926 = vmatpush.bf16.msrb.mxu1 %v7138_v19  ;;  %5013 = vmatpush.bf16.msrb.mxu3 %v7155_v32  ;;  %v7126_v19 = vld [vmem:[#allocation11] sm:$0xff] }
 0x506   : > { %v8854_v49 = vpop.f32.mrf.mxu3  ;;  %v7154_v32 = vld [vmem:[#allocation11 + $0xe0] sm:$0xff] }
 0x508   : > { %4883 = vmatpush.bf16.msrb.mxu0 %v7129_v63  ;;  %4972 = vmatpush.bf16.msrb.mxu2 %v7144_v33  ;;  %v7142_v63 = vld [vmem:[#allocation11 + $0x80] sm:$0xff] }
 0x509   : > { %v8856_v14 = vpop.f32.mrf.mxu2  ;;  %4927 = vmatpush.bf16.msrb.mxu1 %v7137_v43  ;;  %5014 = vmatpush.bf16.msrb.mxu3 %v7154_v32 }
 0x50a   : > { %v8858_v40 = vpop.f32.mrf.mxu0 }
 0x50c   : > { %v8860_v3 = vpop.f32.mrf.mxu1  ;;  %4884 = vmatpush.bf16.msrb.mxu0 %v7128_v8  ;;  %4973 = vmatpush.bf16.msrb.mxu2 %v7143_v9 }
 0x50d   : > { %4387 = vmatmul.bf16.gmra.mxu0 %v9382_v36  ;;  %v7136_v36 = vld [vmem:[#allocation11 + $0x50] sm:$0xff] }
 0x50e   : > { %v8862_v39 = vpop.f32.mrf.mxu3  ;;  %4475 = vmatmul.bf16.gmra.mxu2 %v8523_v16  ;;  %4928 = vmatpush.bf16.msrb.mxu1 %v7136_v36  ;;  %v7127_v16 = vld [vmem:[#allocation11 + $0x8] sm:$0xff] }
 0x50f   : > { %4431 = vmatmul.bf16.gmra.mxu1 %v8336_v21 }
 0x510   : > { %4885 = vmatpush.bf16.msrb.mxu0 %v7127_v16  ;;  %4974 = vmatpush.bf16.msrb.mxu2 %v7142_v63 }
 0x511   : > { %v8867_v28 = vpop.f32.mrf.mxu2 }
 0x512   : > { %v8870_v46 = vpop.f32.mrf.mxu0  ;;  %4929 = vmatpush.bf16.msrb.mxu1 %v7135_v62 }
 0x513   : > { %4509 = vmatmul.bf16.gmra.mxu3 %v8587_v17 }
 0x514   : > { %v8872_v10 = vpop.f32.mrf.mxu1  ;;  %4886 = vmatpush.bf16.msrb.mxu0 %v7126_v19  ;;  %v7153_v19 = vld [vmem:[#allocation11 + $0xd8] sm:$0xff] }
 0x515   : > { %5015 = vmatpush.bf16.msrb.mxu3 %v7153_v19 }
 0x516   : > { %v8874_v21 = vpop.f32.mrf.mxu3  ;;  %4930 = vmatpush.bf16.msrb.mxu1 %v7134_v37 }
 0x519   : > { %v8876_v20 = vpop.f32.mrf.mxu2 }
 0x51a   : > { %v8878_v17 = vpop.f32.mrf.mxu0 }
 0x51c   : > { %v8880_v43 = vpop.f32.mrf.mxu1 }
 0x51d   : > { %4392 = vmatmul.bf16.gmra.mxu0 %v9383_v31  ;;  %v8896_v31 = vld [vmem:[#allocation10] sm:$0xf] }
 0x51e   : > { %v4331_v18 = vpop.f32.mrf.mxu3  ;;  %4480 = vmatmul.bf16.gmra.mxu2 %v8540_v57 }
 0x51f   : > { %4436 = vmatmul.bf16.gmra.mxu1 %v8350_v26  ;;  %v8899_v26 = vperm.slane %v8896_v31, 2 }
 0x521   : > { %v8885_v8 = vpop.f32.mrf.mxu2  ;;  %v4195_v9 = vadd.f32 %v8812_v45, %v8899_v26  ;;  %v4193_v37 = vadd.f32 %v8802_v5, %v8899_v26 }
 0x522   : > { %v8888_v36 = vpop.f32.mrf.mxu0 }
 0x523   : > { %4514 = vmatmul.bf16.gmra.mxu3 %v8596_v34  ;;  %v4239_v32 = vadd.f32 %v8816_v25, %v4195_v9  ;;  %v4237_v45 = vadd.f32 %v8804_v4, %v4193_v37  ;;  %v7152_v37 = vld [vmem:[#allocation11 + $0xd0] sm:$0xff] }
 0x524   : > { %v8890_v33 = vpop.f32.mrf.mxu1  ;;  %5016 = vmatpush.bf16.msrb.mxu3 %v7152_v37 }
 0x525   : > { %v4283_v61 = vadd.f32 %v8818_v48, %v4239_v32  ;;  %v4281_v5 = vadd.f32 %v8809_v0, %v4237_v45 }
 0x526   : > { %v8892_v16 = vpop.f32.mrf.mxu3 }
 0x527   : > { %v4327_v38 = vadd.f32 %v8862_v39, %v4283_v61  ;;  %v4198_v61 = vadd.f32 %v8820_v6, %v8899_v26 }
 0x529   : > { %v8894_v62 = vpop.f32.mrf.mxu2  ;;  %v4541_v19 = vmax.f32 %v4327_v38, 0.0 }
 0x52a   : > { %v8901_v57 = vpop.f32.mrf.mxu0 }
 0x52c   : > { %v8908_v63 = vpop.f32.mrf.mxu1 }
 0x52d   : > { %4397 = vmatmul.bf16.gmra.mxu0 %v9384_v15 }
 0x52e   : > { %v4336_v34 = vpop.f32.mrf.mxu3  ;;  %4485 = vmatmul.bf16.gmra.mxu2 %v8555_v56  ;;  %v4325_v56 = vadd.f32 %v8854_v49, %v4281_v5  ;;  %v4242_v49 = vadd.f32 %v8822_v22, %v4198_v61 }
 0x52f   : > { %4441 = vmatmul.bf16.gmra.mxu1 %v8365_v44 }
 0x530   : > { %v4537_v4 = vmax.f32 %v4325_v56, 0.0 }
 0x531   : > { %v8913_v30 = vpop.f32.mrf.mxu2 }
 0x532   : > { %v8918_v15 = vpop.f32.mrf.mxu0  ;;  %v4593_v48 = vpack.c.bf16 %v4541_v19, %v4537_v4  ;;  %v7151_v19 = vld [vmem:[#allocation11 + $0xc8] sm:$0xff] }
 0x533   : > { %4519 = vmatmul.bf16.gmra.mxu3 %v8605_v47  ;;  %v4200_v47 = vadd.f32 %v8830_v52, %v8899_v26 }
 0x534   : > { %v8925_v25 = vpop.f32.mrf.mxu1  ;;  %5017 = vmatpush.bf16.msrb.mxu3 %v7151_v19 }
 0x535   : > { %v4244_v38 = vadd.f32 %v8834_v13, %v4200_v47 }
 0x536   : > { %v8922_v44 = vpop.f32.mrf.mxu3 }
 0x537   : > { %v4288_v39 = vadd.f32 %v8836_v42, %v4244_v38  ;;  %v4205_v42 = vadd.f32 %v8848_v29, %v8899_v26 }
 0x539   : > { %v8927_v9 = vpop.f32.mrf.mxu2  ;;  %v4332_v5 = vadd.f32 %v4331_v18, %v4288_v39  ;;  %v4249_v18 = vadd.f32 %v8852_v59, %v4205_v42 }
 0x53a   : > { %v8931_v32 = vpop.f32.mrf.mxu0 }
 0x53b   : > { %v4549_v13 = vmax.f32 %v4332_v5, 0.0  ;;  %v4293_v29 = vadd.f32 %v8856_v14, %v4249_v18 }
 0x53c   : > { %v8940_v52 = vpop.f32.mrf.mxu1 }
 0x53d   : > { %4887 = vmatmul.bf16.vlgmr.msrb.gmra.mxu0 %v8663_v24  ;;  %v4286_v24 = vadd.f32 %v8827_v35, %v4242_v49  ;;  %v4337_v38 = vadd.f32 %v4336_v34, %v4293_v29 }
 0x53e   : > { %v4341_v0 = vpop.f32.mrf.mxu3  ;;  %4975 = vmatmul.bf16.vlgmr.msrb.gmra.mxu2 %v4593_v48 }
 0x53f   : > { %4931 = vmatmul.bf16.vlgmr.msrb.gmra.mxu1 %v8764_v50  ;;  %v4330_v50 = vadd.f32 %v8874_v21, %v4286_v24  ;;  %v4203_v21 = vadd.f32 %v8838_v41, %v8899_v26  ;;  %v7150_v24 = vld [vmem:[#allocation11 + $0xc0] sm:$0xff] }
 0x540   : > { %5018 = vmatpush.bf16.msrb.mxu3 %v7150_v24 }
 0x541   : > { %v8943_v45 = vpop.f32.mrf.mxu2  ;;  %v4545_v22 = vmax.f32 %v4330_v50, 0.0  ;;  %v4247_v48 = vadd.f32 %v8840_v12, %v4203_v21  ;;  %v4210_v12 = vadd.f32 %v8870_v46, %v8899_v26 }
 0x542   : > { %v8949_v6 = vpop.f32.mrf.mxu0 }
 0x543   : > { %4524 = vmatmul.bf16.gmra.mxu3 %v8614_v2  ;;  %v4597_v2 = vpack.c.bf16 %v4549_v13, %v4545_v22  ;;  %v4291_v61 = vadd.f32 %v8845_v54, %v4247_v48  ;;  %v4254_v54 = vadd.f32 %v8872_v10, %v4210_v12  ;;  %v4215_v10 = vadd.f32 %v8888_v36, %v8899_v26 }
 0x544   : > { %v8953_v4 = vpop.f32.mrf.mxu1 }
 0x545   : > { %v4298_v19 = vadd.f32 %v8876_v20, %v4254_v54  ;;  %v4259_v20 = vadd.f32 %v8890_v33, %v4215_v10 }
 0x546   : > { %v8946_v56 = vpop.f32.mrf.mxu3 }
 0x547   : > { %v4342_v22 = vadd.f32 %v4341_v0, %v4298_v19  ;;  %v4303_v36 = vadd.f32 %v8894_v62, %v4259_v20  ;;  %v4220_v62 = vadd.f32 %v8918_v15, %v8899_v26 }
 0x549   : > { %v8955_v37 = vpop.f32.mrf.mxu2 }
 0x54a   : > { %v4368_v47 = vpop.f32.mrf.mxu0 }
 0x54c   : > { %v4412_v41 = vpop.f32.mrf.mxu1 }
 0x54d   : > { %4892 = vmatmul.bf16.gmra.mxu0 %v8680_v55  ;;  %v4335_v55 = vadd.f32 %v8892_v16, %v4291_v61 }
 0x54e   : > { %v4346_v35 = vpop.f32.mrf.mxu3  ;;  %4980 = vmatmul.bf16.gmra.mxu2 %v4597_v2 }
 0x54f   : > { %4936 = vmatmul.bf16.gmra.mxu1 %v8779_v23  ;;  %v4557_v23 = vmax.f32 %v4337_v38, 0.0  ;;  %v4553_v5 = vmax.f32 %v4335_v55, 0.0  ;;  %v4347_v38 = vadd.f32 %v4346_v35, %v4303_v36 }
 0x551   : > { %v4456_v39 = vpop.f32.mrf.mxu2  ;;  %v4601_v14 = vpack.c.bf16 %v4557_v23, %v4553_v5  ;;  %v4573_v5 = vmax.f32 %v4347_v38, 0.0 }
 0x552   : > { %v4370_v59 = vpop.f32.mrf.mxu0 }
 0x553   : > { %4529 = vmatmul.bf16.gmra.mxu3 %v8629_v58  ;;  %v4208_v58 = vadd.f32 %v8858_v40, %v8899_v26  ;;  %v4565_v40 = vmax.f32 %v4342_v22, 0.0 }
 0x554   : > { %v4414_v16 = vpop.f32.mrf.mxu1 }
 0x555   : > { %v4252_v13 = vadd.f32 %v8860_v3, %v4208_v58  ;;  %v4213_v3 = vadd.f32 %v8878_v17, %v8899_v26 }
 0x556   : > { %v8966_v49 = vpop.f32.mrf.mxu3 }
 0x557   : > { %v4296_v46 = vadd.f32 %v8867_v28, %v4252_v13  ;;  %v4257_v0 = vadd.f32 %v8880_v43, %v4213_v3 }
 0x559   : > { %v4458_v34 = vpop.f32.mrf.mxu2  ;;  %v4301_v61 = vadd.f32 %v8885_v8, %v4257_v0 }
 0x55a   : > { %v4373_v42 = vpop.f32.mrf.mxu0 }
 0x55d   : > { %4897 = vmatmul.bf16.gmra.mxu0 %v8694_v11  ;;  %v4340_v11 = vadd.f32 %v8922_v44, %v4296_v46  ;;  %v8994_v44 = vperm.slane %v8896_v31, 3 }
 0x55e   : > { %v8971_v50 = vpop.f32.mrf.mxu3  ;;  %4985 = vmatmul.bf16.gmra.mxu2 %v4601_v14 }
 0x55f   : > { %4941 = vmatmul.bf16.gmra.mxu1 %v8789_v27  ;;  %v4561_v21 = vmax.f32 %v4340_v11, 0.0  ;;  %v4417_v27 = vpop.f32.mrf.mxu1  ;;  %v4371_v24 = vadd.f32 %v4370_v59, %v8994_v44 }
 0x561   : > { %v4461_v18 = vpop.f32.mrf.mxu2  ;;  %v4605_v48 = vpack.c.bf16 %v4565_v40, %v4561_v21  ;;  %v4415_v43 = vadd.f32 %v4414_v16, %v4371_v24 }
 0x562   : > { %v4375_v28 = vpop.f32.mrf.mxu0 }
 0x563   : > { %v4459_v8 = vadd.f32 %v4458_v34, %v4415_v43 }
 0x566   : > { %v8981_v2 = vpop.f32.mrf.mxu3 }
 0x567   : > { %v4419_v55 = vpop.f32.mrf.mxu1 }
 0x569   : > { %v4463_v17 = vpop.f32.mrf.mxu2 }
 0x56a   : > { %v4378_v31 = vpop.f32.mrf.mxu0 }
 0x56d   : > { %4902 = vmatmul.bf16.gmra.mxu0 %v8708_v53  ;;  %v4369_v53 = vadd.f32 %v4368_v47, %v8994_v44 }
 0x56e   : > { %v8986_v29 = vpop.f32.mrf.mxu3  ;;  %4990 = vmatmul.bf16.gmra.mxu2 %v4605_v48 }
 0x56f   : > { %4946 = vmatmul.bf16.gmra.mxu1 %v8799_v1  ;;  %v4345_v1 = vadd.f32 %v8946_v56, %v4301_v61  ;;  %v4413_v33 = vadd.f32 %v4412_v41, %v4369_v53  ;;  %v4218_v56 = vadd.f32 %v8901_v57, %v8899_v26  ;;  %v4422_v54 = vpop.f32.mrf.mxu1  ;;  %v4374_v57 = vadd.f32 %v4373_v42, %v8994_v44 }
 0x571   : > { %v4569_v12 = vmax.f32 %v4345_v1, 0.0  ;;  %v4457_v14 = vadd.f32 %v4456_v39, %v4413_v33  ;;  %v4466_v41 = vpop.f32.mrf.mxu2  ;;  %v4264_v39 = vadd.f32 %v8925_v25, %v4220_v62  ;;  %v4262_v15 = vadd.f32 %v8908_v63, %v4218_v56 }
 0x572   : > { %v4380_v46 = vpop.f32.mrf.mxu0  ;;  %v4376_v25 = vadd.f32 %v4375_v28, %v8994_v44  ;;  %v4418_v40 = vadd.f32 %v4417_v27, %v4374_v57  ;;  %v9388_v28 = vld [vmem:[#allocation44_spill] sm:$0xff]  ;;  %v4379_v1 = vadd.f32 %v4378_v31, %v8994_v44 }
 0x573   : > { %v4609_v47 = vpack.c.bf16 %v4573_v5, %v4569_v12  ;;  %v4308_v34 = vadd.f32 %v8927_v9, %v4264_v39 }
 0x574   : > { %v4462_v9 = vadd.f32 %v4461_v18, %v4418_v40  ;;  %v4420_v3 = vadd.f32 %v4419_v55, %v4376_v25  ;;  %v4423_v5 = vadd.f32 %v4422_v54, %v4379_v1 }
 0x575   : > { %v4352_v22 = vadd.f32 %v8971_v50, %v4308_v34 }
 0x576   : > { %v4500_v23 = vpop.f32.mrf.mxu3  ;;  %v4464_v20 = vadd.f32 %v4463_v17, %v4420_v3 }
 0x577   : > { %v4501_v58 = vadd.f32 %v4500_v23, %v4457_v14  ;;  %v4581_v21 = vmax.f32 %v4352_v22, 0.0  ;;  %v4424_v10 = vpop.f32.mrf.mxu1 }
 0x579   : > { %v4538_v16 = vmax.f32 %v4501_v58, 0.0  ;;  %v4468_v63 = vpop.f32.mrf.mxu2 }
 0x57a   : > { %v4383_v50 = vpop.f32.mrf.mxu0 }
 0x57b   : > { %v4384_v39 = vadd.f32 %v4383_v50, %v8994_v44 }
 0x57d   : > { %4907 = vmatmul.bf16.gmra.mxu0 %v8725_v51  ;;  %v4306_v51 = vadd.f32 %v8913_v30, %v4262_v15  ;;  %v4225_v30 = vadd.f32 %v8949_v6, %v8899_v26 }
 0x57e   : > { %v4502_v35 = vpop.f32.mrf.mxu3  ;;  %4995 = vmatmul.bf16.gmra.mxu2 %v4609_v47  ;;  %v9389_v47 = vld [vmem:[#allocation42_spill] sm:$0xff] }
 0x57f   : > { %v4503_v59 = vadd.f32 %v4502_v35, %v4459_v8  ;;  %4951 = vmatmul.bf16.gmra.mxu1 %v8814_v60  ;;  %v4350_v11 = vadd.f32 %v8966_v49, %v4306_v51  ;;  %v4223_v49 = vadd.f32 %v8931_v32, %v8899_v26  ;;  %v4269_v18 = vadd.f32 %v8953_v4, %v4225_v30  ;;  %v4427_v55 = vpop.f32.mrf.mxu1  ;;  %v9390_v35 = vld [vmem:[#allocation19_spill] sm:$0xff] }
 0x580   : > { %v4381_v4 = vadd.f32 %v4380_v46, %v8994_v44  ;;  %v4428_v34 = vadd.f32 %v4427_v55, %v4384_v39 }
 0x581   : > { %v4542_v13 = vmax.f32 %v4503_v59, 0.0  ;;  %v4577_v48 = vmax.f32 %v4350_v11, 0.0  ;;  %v4267_v6 = vadd.f32 %v8940_v52, %v4223_v49  ;;  %v4313_v38 = vadd.f32 %v8955_v37, %v4269_v18  ;;  %v4471_v23 = vpop.f32.mrf.mxu2 }
 0x582   : > { %v4385_v33 = vpop.f32.mrf.mxu0  ;;  %v4467_v37 = vadd.f32 %v4466_v41, %v4423_v5  ;;  %v4425_v14 = vadd.f32 %v4424_v10, %v4381_v4 }
 0x583   : > { %v4594_v19 = vpack.c.bf16 %v4542_v13, %v4538_v16  ;;  %v4613_v0 = vpack.c.bf16 %v4581_v21, %v4577_v48  ;;  %v4357_v26 = vadd.f32 %v8986_v29, %v4313_v38  ;;  %v4386_v16 = vadd.f32 %v4385_v33, %v8994_v44 }
 0x584   : > { %v4469_v43 = vadd.f32 %v4468_v63, %v4425_v14 }
 0x585   : > { %5019 = vmatmul.bf16.vlgmr.msrb.gmra.mxu3 %v4594_v19  ;;  %v4589_v52 = vmax.f32 %v4357_v26, 0.0  ;;  %v4472_v19 = vadd.f32 %v4471_v23, %v4428_v34 }
 0x586   : > { %v4505_v60 = vpop.f32.mrf.mxu3 }
 0x587   : > { %v4506_v42 = vadd.f32 %v4505_v60, %v4462_v9  ;;  %v4429_v62 = vpop.f32.mrf.mxu1 }
 0x588   : > { %v4430_v46 = vadd.f32 %v4429_v62, %v4386_v16 }
 0x589   : > { %v4546_v61 = vmax.f32 %v4506_v42, 0.0  ;;  %v4473_v58 = vpop.f32.mrf.mxu2 }
 0x58a   : > { %v4388_v59 = vpop.f32.mrf.mxu0  ;;  %v4474_v57 = vadd.f32 %v4473_v58, %v4430_v46 }
 0x58b   : > { %v4389_v48 = vadd.f32 %v4388_v59, %v8994_v44 }
 0x58d   : > { %4912 = vmatmul.bf16.gmra.mxu0 %v8739_v7  ;;  %v4311_v7 = vadd.f32 %v8943_v45, %v4267_v6 }
 0x58e   : > { %v4507_v36 = vpop.f32.mrf.mxu3  ;;  %5000 = vmatmul.bf16.gmra.mxu2 %v4613_v0 }
 0x58f   : > { %v4508_v27 = vadd.f32 %v4507_v36, %v4464_v20  ;;  %4956 = vmatmul.bf16.gmra.mxu1 %v9388_v28  ;;  %v4355_v24 = vadd.f32 %v8981_v2, %v4311_v7  ;;  %v4432_v13 = vpop.f32.mrf.mxu1 }
 0x590   : > { %v4433_v20 = vadd.f32 %v4432_v13, %v4389_v48 }
 0x591   : > { %v4550_v53 = vmax.f32 %v4508_v27, 0.0  ;;  %v4585_v12 = vmax.f32 %v4355_v24, 0.0  ;;  %v4476_v15 = vpop.f32.mrf.mxu2 }
 0x592   : > { %v4390_v51 = vpop.f32.mrf.mxu0  ;;  %v4477_v42 = vadd.f32 %v4476_v15, %v4433_v20 }
 0x593   : > { %v4598_v17 = vpack.c.bf16 %v4550_v53, %v4546_v61  ;;  %v4617_v45 = vpack.c.bf16 %v4589_v52, %v4585_v12  ;;  %v4391_v30 = vadd.f32 %v4390_v51, %v8994_v44 }
 0x595   : > { %5024 = vmatmul.bf16.gmra.mxu3 %v4598_v17 }
 0x596   : > { %v4510_v32 = vpop.f32.mrf.mxu3 }
 0x597   : > { %v4511_v8 = vadd.f32 %v4510_v32, %v4467_v37  ;;  %v4434_v25 = vpop.f32.mrf.mxu1 }
 0x598   : > { %v4435_v0 = vadd.f32 %v4434_v25, %v4391_v30 }
 0x599   : > { %v4554_v2 = vmax.f32 %v4511_v8, 0.0  ;;  %v4478_v10 = vpop.f32.mrf.mxu2 }
 0x59a   : > { %v4393_v9 = vpop.f32.mrf.mxu0  ;;  %v4479_v49 = vadd.f32 %v4478_v10, %v4435_v0 }
 0x59b   : > { %v4394_v55 = vadd.f32 %v4393_v9, %v8994_v44 }
 0x59d   : > { %4917 = vmatmul.bf16.gmra.mxu0 %v9389_v47 }
 0x59e   : > { %v4512_v31 = vpop.f32.mrf.mxu3  ;;  %5005 = vmatmul.bf16.gmra.mxu2 %v4617_v45 }
 0x59f   : > { %v4513_v29 = vadd.f32 %v4512_v31, %v4469_v43  ;;  %4961 = vmatmul.bf16.gmra.mxu1 %v9390_v35  ;;  %v4437_v50 = vpop.f32.mrf.mxu1 }
 0x5a0   : > { %v4438_v26 = vadd.f32 %v4437_v50, %v4394_v55 }
 0x5a1   : > { %v4558_v56 = vmax.f32 %v4513_v29, 0.0  ;;  %v4481_v36 = vpop.f32.mrf.mxu2 }
 0x5a2   : > { %v4395_v61 = vpop.f32.mrf.mxu0  ;;  %v4482_v24 = vadd.f32 %v4481_v36, %v4438_v26 }
 0x5a3   : > { %v4602_v54 = vpack.c.bf16 %v4558_v56, %v4554_v2  ;;  %v4396_v1 = vadd.f32 %v4395_v61, %v8994_v44 }
 0x5a5   : > { %5029 = vmatmul.bf16.gmra.mxu3 %v4602_v54 }
 0x5a6   : > { %v4515_v41 = vpop.f32.mrf.mxu3 }
 0x5a7   : > { %v4516_v22 = vadd.f32 %v4515_v41, %v4472_v19  ;;  %v4439_v17 = vpop.f32.mrf.mxu1 }
 0x5a8   : > { %v4440_v4 = vadd.f32 %v4439_v17, %v4396_v1 }
 0x5a9   : > { %v4562_v40 = vmax.f32 %v4516_v22, 0.0  ;;  %v4483_v23 = vpop.f32.mrf.mxu2 }
 0x5aa   : > { %v4398_v32 = vpop.f32.mrf.mxu0  ;;  %v4484_v33 = vadd.f32 %v4483_v23, %v4440_v4 }
 0x5ab   : > { %v4399_v58 = vadd.f32 %v4398_v32, %v8994_v44 }
 0x5ae   : > { %v4517_v60 = vpop.f32.mrf.mxu3 }
 0x5af   : > { %v4518_v11 = vadd.f32 %v4517_v60, %v4474_v57  ;;  %v4442_v37 = vpop.f32.mrf.mxu1 }
 0x5b0   : > { %v4443_v29 = vadd.f32 %v4442_v37, %v4399_v58 }
 0x5b1   : > { %v4566_v21 = vmax.f32 %v4518_v11, 0.0  ;;  %v4486_v14 = vpop.f32.mrf.mxu2  ;;  %v9043_v11 = vld [vmem:[%s9228_s6] ss:$0 sm:$0xff] }
 0x5b2   : > { %v4400_v45 = vpop.f32.mrf.mxu0  ;;  %v4487_v56 = vadd.f32 %v4486_v14, %v4443_v29 }
 0x5b3   : > { %v4606_v63 = vpack.c.bf16 %v4566_v21, %v4562_v40  ;;  %v4401_v47 = vadd.f32 %v4400_v45, %v8994_v44 }
 0x5b5   : > { %5034 = vmatmul.bf16.gmra.mxu3 %v4606_v63 }
 0x5b6   : > { %v4520_v3 = vpop.f32.mrf.mxu3 }
 0x5b7   : > { %v4521_v27 = vadd.f32 %v4520_v3, %v4477_v42  ;;  %v4444_v35 = vpop.f32.mrf.mxu1 }
 0x5b8   : > { %v4445_v59 = vadd.f32 %v4444_v35, %v4401_v47 }
 0x5b9   : > { %v4570_v53 = vmax.f32 %v4521_v27, 0.0  ;;  %v4488_v2 = vpop.f32.mrf.mxu2 }
 0x5ba   : > { %v4489_v54 = vadd.f32 %v4488_v2, %v4445_v59  ;;  %v4888_v19 = vpop.f32.mrf.mxu0 }
 0x5bb   : > { %v4889_v21 = vadd.f32 %v9043_v11, %v4888_v19 }
 0x5be   : > { %v4522_v28 = vpop.f32.mrf.mxu3 }
 0x5bf   : > { %v4523_v18 = vadd.f32 %v4522_v28, %v4479_v49  ;;  %v4932_v46 = vpop.f32.mrf.mxu1 }
 0x5c0   : > { %v4933_v63 = vadd.f32 %v4932_v46, %v4889_v21 }
 0x5c1   : > { %v4574_v6 = vmax.f32 %v4523_v18, 0.0  ;;  %v4976_v51 = vpop.f32.mrf.mxu2 }
 0x5c2   : > { %v4890_v57 = vpop.f32.mrf.mxu0  ;;  %v4977_v48 = vadd.f32 %v4976_v51, %v4933_v63 }
 0x5c3   : > { %v4610_v38 = vpack.c.bf16 %v4574_v6, %v4570_v53  ;;  %v4891_v20 = vadd.f32 %v9043_v11, %v4890_v57 }
 0x5c5   : > { %5039 = vmatmul.bf16.gmra.mxu3 %v4610_v38 }
 0x5c6   : > { %v4525_v7 = vpop.f32.mrf.mxu3 }
 0x5c7   : > { %v4526_v5 = vadd.f32 %v4525_v7, %v4482_v24  ;;  %v4934_v22 = vpop.f32.mrf.mxu1 }
 0x5c8   : > { %v4935_v50 = vadd.f32 %v4934_v22, %v4891_v20 }
 0x5c9   : > { %v4578_v43 = vmax.f32 %v4526_v5, 0.0  ;;  %v4978_v60 = vpop.f32.mrf.mxu2 }
 0x5ca   : > { %v4893_v44 = vpop.f32.mrf.mxu0  ;;  %v4979_v36 = vadd.f32 %v4978_v60, %v4935_v50 }
 0x5cb   : > { %v4894_v27 = vadd.f32 %v9043_v11, %v4893_v44 }
 0x5ce   : > { %v4527_v52 = vpop.f32.mrf.mxu3 }
 0x5cf   : > { %v4528_v12 = vadd.f32 %v4527_v52, %v4484_v33  ;;  %v4937_v25 = vpop.f32.mrf.mxu1 }
 0x5d0   : > { %v4938_v53 = vadd.f32 %v4937_v25, %v4894_v27 }
 0x5d1   : > { %v4582_v62 = vmax.f32 %v4528_v12, 0.0  ;;  %v4981_v40 = vpop.f32.mrf.mxu2 }
 0x5d2   : > { %v4895_v10 = vpop.f32.mrf.mxu0  ;;  %v4982_v38 = vadd.f32 %v4981_v40, %v4938_v53 }
 0x5d3   : > { %v4614_v8 = vpack.c.bf16 %v4582_v62, %v4578_v43  ;;  %v4896_v17 = vadd.f32 %v9043_v11, %v4895_v10 }
 0x5d5   : > { %5044 = vmatmul.bf16.gmra.mxu3 %v4614_v8 }
 0x5d6   : > { %v4530_v31 = vpop.f32.mrf.mxu3 }
 0x5d7   : > { %v4531_v39 = vadd.f32 %v4530_v31, %v4487_v56  ;;  %v4939_v9 = vpop.f32.mrf.mxu1 }
 0x5d8   : > { %v4940_v26 = vadd.f32 %v4939_v9, %v4896_v17 }
 0x5d9   : > { %v4586_v13 = vmax.f32 %v4531_v39, 0.0  ;;  %v4983_v3 = vpop.f32.mrf.mxu2 }
 0x5da   : > { %v4898_v0 = vpop.f32.mrf.mxu0  ;;  %v4984_v32 = vadd.f32 %v4983_v3, %v4940_v26 }
 0x5db   : > { %v4899_v33 = vadd.f32 %v9043_v11, %v4898_v0 }
 0x5de   : > { %v4532_v41 = vpop.f32.mrf.mxu3 }
 0x5df   : > { %v4533_v16 = vadd.f32 %v4532_v41, %v4489_v54  ;;  %v4942_v28 = vpop.f32.mrf.mxu1 }
 0x5e0   : > { %v4943_v52 = vadd.f32 %v4942_v28, %v4899_v33 }
 0x5e1   : > { %v4590_v15 = vmax.f32 %v4533_v16, 0.0  ;;  %v4986_v61 = vpop.f32.mrf.mxu2 }
 0x5e2   : > { %v4900_v6 = vpop.f32.mrf.mxu0  ;;  %v4987_v14 = vadd.f32 %v4986_v61, %v4943_v52 }
 0x5e3   : > { %v4618_v34 = vpack.c.bf16 %v4590_v15, %v4586_v13  ;;  %v4901_v62 = vadd.f32 %v9043_v11, %v4900_v6 }
 0x5e5   : > { %5049 = vmatmul.bf16.gmra.mxu3 %v4618_v34 }
 0x5e7   : > { %v4944_v7 = vpop.f32.mrf.mxu1 }
 0x5e8   : > { %v4945_v58 = vadd.f32 %v4944_v7, %v4901_v62 }
 0x5e9   : > { %v4988_v1 = vpop.f32.mrf.mxu2 }
 0x5ea   : > { %v4903_v24 = vpop.f32.mrf.mxu0  ;;  %v4989_v31 = vadd.f32 %v4988_v1, %v4945_v58 }
 0x5eb   : > { %v4904_v2 = vadd.f32 %v9043_v11, %v4903_v24 }
 0x5ef   : > { %v4947_v12 = vpop.f32.mrf.mxu1 }
 0x5f0   : > { %v4948_v54 = vadd.f32 %v4947_v12, %v4904_v2 }
 0x5f1   : > { %v4991_v37 = vpop.f32.mrf.mxu2 }
 0x5f2   : > { %v4905_v45 = vpop.f32.mrf.mxu0  ;;  %v4992_v39 = vadd.f32 %v4991_v37, %v4948_v54 }
 0x5f3   : > { %v4906_v16 = vadd.f32 %v9043_v11, %v4905_v45 }
 0x5f7   : > { %v4949_v47 = vpop.f32.mrf.mxu1 }
 0x5f8   : > { %v4950_v19 = vadd.f32 %v4949_v47, %v4906_v16 }
 0x5f9   : > { %v4993_v29 = vpop.f32.mrf.mxu2 }
 0x5fa   : > { %v4908_v59 = vpop.f32.mrf.mxu0  ;;  %v4994_v51 = vadd.f32 %v4993_v29, %v4950_v19 }
 0x5fb   : > { %v4909_v22 = vadd.f32 %v9043_v11, %v4908_v59 }
 0x5ff   : > { %v4952_v13 = vpop.f32.mrf.mxu1 }
 0x600   : > { %v4953_v40 = vadd.f32 %v4952_v13, %v4909_v22 }
 0x601   : > { %v4996_v34 = vpop.f32.mrf.mxu2 }
 0x602   : > { %v4910_v46 = vpop.f32.mrf.mxu0  ;;  %v4997_v21 = vadd.f32 %v4996_v34, %v4953_v40 }
 0x607   : > { %v4954_v44 = vpop.f32.mrf.mxu1 }
 0x608   : > { %v5020_v30 = vpop.f32.mrf.mxu3 }
 0x609   : > { %v9047_v42 = vadd.f32 %v5020_v30, %v4977_v48  ;;  %v4998_v25 = vpop.f32.mrf.mxu2  ;;  %v4911_v48 = vadd.f32 %v9043_v11, %v4910_v46 }
 0x60a   : > { %v4913_v10 = vpop.f32.mrf.mxu0 }
 0x60b   : > { %5055 = vmax.xlane.f32.xlu0 %v9047_v42  ;;  %v4955_v3 = vadd.f32 %v4954_v44, %v4911_v48 }
 0x60d   : > { %v4999_v0 = vadd.f32 %v4998_v25, %v4955_v3 }
 0x60f   : > { %v4957_v30 = vpop.f32.mrf.mxu1 }
 0x610   : > { %v5022_v49 = vpop.f32.mrf.mxu3 }
 0x611   : > { %v9051_v18 = vadd.f32 %v5022_v49, %v4979_v36  ;;  %v5001_v20 = vpop.f32.mrf.mxu2  ;;  %v4914_v36 = vadd.f32 %v9043_v11, %v4913_v10 }
 0x612   : > { %v4915_v27 = vpop.f32.mrf.mxu0 }
 0x613   : > { %5057 = vmax.xlane.f32.xlu0 %v9051_v18  ;;  %v4958_v28 = vadd.f32 %v4957_v30, %v4914_v36 }
 0x615   : > { %v5002_v61 = vadd.f32 %v5001_v20, %v4958_v28 }
 0x617   : > { %v4959_v53 = vpop.f32.mrf.mxu1 }
 0x618   : > { %v5025_v55 = vpop.f32.mrf.mxu3 }
 0x619   : > { %v9055_v23 = vadd.f32 %v5025_v55, %v4982_v38  ;;  %v5003_v6 = vpop.f32.mrf.mxu2  ;;  %v4916_v55 = vadd.f32 %v9043_v11, %v4915_v27 }
 0x61a   : > { %v4918_v7 = vpop.f32.mrf.mxu0 }
 0x61b   : > { %5059 = vmax.xlane.f32.xlu1 %v9055_v23  ;;  %v4960_v1 = vadd.f32 %v4959_v53, %v4916_v55  ;;  %v4919_v24 = vadd.f32 %v9043_v11, %v4918_v7 }
 0x61d   : > { %v5004_v26 = vadd.f32 %v5003_v6, %v4960_v1 }
 0x61f   : > { %v4962_v33 = vpop.f32.mrf.mxu1 }
 0x620   : > { %v5027_v4 = vpop.f32.mrf.mxu3  ;;  %v4963_v12 = vadd.f32 %v4962_v33, %v4919_v24 }
 0x621   : > { %v9059_v5 = vadd.f32 %v5027_v4, %v4984_v32  ;;  %v5006_v52 = vpop.f32.mrf.mxu2 }
 0x622   : > { %v4920_v37 = vpop.f32.mrf.mxu0 }
 0x623   : > { %5061 = vmax.xlane.f32.xlu1 %v9059_v5  ;;  %v4921_v62 = vadd.f32 %v9043_v11, %v4920_v37 }
 0x627   : > { %v4964_v58 = vpop.f32.mrf.mxu1 }
 0x628   : > { %v5030_v43 = vpop.f32.mrf.mxu3  ;;  %v4965_v47 = vadd.f32 %v4964_v58, %v4921_v62 }
 0x629   : > { %v9063_v8 = vadd.f32 %v5030_v43, %v4987_v14  ;;  %v5007_v14 = vadd.f32 %v5006_v52, %v4963_v12 }
 0x62b   : > { %5063 = vmax.xlane.f32.xlu2 %v9063_v8 }
 0x630   : > { %v5032_v35 = vpop.f32.mrf.mxu3 }
 0x631   : > { %v9067_v56 = vadd.f32 %v5032_v35, %v4989_v31  ;;  %v5008_v31 = vpop.f32.mrf.mxu2 }
 0x632   : > { %v5009_v29 = vadd.f32 %v5008_v31, %v4965_v47 }
 0x633   : > { %5065 = vmax.xlane.f32.xlu2 %v9067_v56 }
 0x638   : > { %v5035_v41 = vpop.f32.mrf.mxu3 }
 0x639   : > { %v9071_v15 = vadd.f32 %v5035_v41, %v4992_v39 }
 0x63b   : > { %5067 = vmax.xlane.f32.xlu0 %v9071_v15 }
 0x640   : > { %v5037_v57 = vpop.f32.mrf.mxu3 }
 0x641   : > { %v9075_v60 = vadd.f32 %v5037_v57, %v4994_v51 }
 0x643   : > { %5069 = vmax.xlane.f32.xlu1 %v9075_v60 }
 0x648   : > { %v5040_v63 = vpop.f32.mrf.mxu3 }
 0x649   : > { %v9079_v9 = vadd.f32 %v5040_v63, %v4997_v21 }
 0x64b   : > { %5071 = vmax.xlane.f32.xlu2 %v9079_v9 }
 0x650   : > { %v5042_v50 = vpop.f32.mrf.mxu3 }
 0x651   : > { %v9083_v49 = vadd.f32 %v5042_v50, %v4999_v0 }
 0x653   : > { %5073 = vmax.xlane.f32.xlu0 %v9083_v49 }
 0x658   : > { %v5045_v38 = vpop.f32.mrf.mxu3 }
 0x659   : > { %v9087_v17 = vadd.f32 %v5045_v38, %v5002_v61 }
 0x65b   : > { %5075 = vmax.xlane.f32.xlu1 %v9087_v17 }
 0x660   : > { %v5047_v32 = vpop.f32.mrf.mxu3 }
 0x661   : > { %v9091_v4 = vadd.f32 %v5047_v32, %v5004_v26 }
 0x663   : > { %5077 = vmax.xlane.f32.xlu2 %v9091_v4 }
 0x668   : > { %v5050_v43 = vpop.f32.mrf.mxu3 }
 0x669   : > { %v9095_v45 = vadd.f32 %v5050_v43, %v5007_v14 }
 0x66b   : > { %5079 = vmax.xlane.f32.xlu0 %v9095_v45 }
 0x670   : > { %v5052_v35 = vpop.f32.mrf.mxu3 }
 0x671   : > { %v9098_v2 = vadd.f32 %v5052_v35, %v5009_v29 }
 0x673   : > { %5081 = vmax.xlane.f32.xlu1 %v9098_v2 }
 0x67e   : > { %v5056_v59 = vpop.xlane.xlu0 %5055 }
 0x67f   : > { %v5083_v54 = vsub.f32 %v9047_v42, %v5056_v59 }
 0x681   : > { %v5097_v39 = vmul.f32 1.442695, %v5083_v54 }
 0x683   : > { %7270 = vpow2.f32 %v5097_v39 }
 0x686   : > { %v5058_v41 = vpop.xlane.xlu0 %5057 }
 0x687   : > { %v5084_v11 = vsub.f32 %v9051_v18, %v5058_v41 }
 0x689   : > { %v9103_v16 = vpop.eup %7270  ;;  %v5099_v13 = vmul.f32 1.442695, %v5084_v11 }
 0x68a   : > { %5125 = vadd.xlane.f32.xlu2 %v9103_v16 }
 0x68b   : > { %7272 = vpow2.f32 %v5099_v13 }
 0x68e   : > { %v5060_v34 = vpop.xlane.xlu1 %5059 }
 0x68f   : > { %v5085_v19 = vsub.f32 %v9055_v23, %v5060_v34 }
 0x691   : > { %v9107_v46 = vpop.eup %7272  ;;  %v5101_v51 = vmul.f32 1.442695, %v5085_v19 }
 0x692   : > { %5127 = vadd.xlane.f32.xlu0 %v9107_v46 }
 0x693   : > { %7274 = vpow2.f32 %v5101_v51 }
 0x696   : > { %v5062_v42 = vpop.xlane.xlu1 %5061 }
 0x697   : > { %v5086_v57 = vsub.f32 %v9059_v5, %v5062_v42 }
 0x699   : > { %v9111_v22 = vpop.eup %7274  ;;  %v5103_v18 = vmul.f32 1.442695, %v5086_v57 }
 0x69a   : > { %5129 = vadd.xlane.f32.xlu1 %v9111_v22 }
 0x69b   : > { %7276 = vpow2.f32 %v5103_v18 }
 0x69e   : > { %v5064_v44 = vpop.xlane.xlu2 %5063 }
 0x69f   : > { %v5087_v25 = vsub.f32 %v9063_v8, %v5064_v44 }
 0x6a1   : > { %v9115_v40 = vpop.eup %7276  ;;  %v5105_v23 = vmul.f32 1.442695, %v5087_v25 }
 0x6a2   : > { %5131 = vadd.xlane.f32.xlu2 %v9115_v40 }
 0x6a3   : > { %7278 = vpow2.f32 %v5105_v23 }
 0x6a6   : > { %v5066_v21 = vpop.xlane.xlu2 %5065 }
 0x6a7   : > { %v5088_v10 = vsub.f32 %v9067_v56, %v5066_v21 }
 0x6a9   : > { %v9119_v63 = vpop.eup %7278  ;;  %v5107_v5 = vmul.f32 1.442695, %v5088_v10 }
 0x6aa   : > { %5133 = vadd.xlane.f32.xlu0 %v9119_v63 }
 0x6ab   : > { %7280 = vpow2.f32 %v5107_v5 }
 0x6ae   : > { %v5068_v48 = vpop.xlane.xlu0 %5067 }
 0x6af   : > { %v5089_v3 = vsub.f32 %v9071_v15, %v5068_v48 }
 0x6b1   : > { %v9123_v30 = vpop.eup %7280  ;;  %v5109_v8 = vmul.f32 1.442695, %v5089_v3 }
 0x6b2   : > { %5135 = vadd.xlane.f32.xlu1 %v9123_v30 }
 0x6b3   : > { %7282 = vpow2.f32 %v5109_v8 }
 0x6b6   : > { %v5070_v20 = vpop.xlane.xlu1 %5069 }
 0x6b7   : > { %v5090_v0 = vsub.f32 %v9075_v60, %v5070_v20 }
 0x6b9   : > { %v9127_v50 = vpop.eup %7282  ;;  %v5111_v56 = vmul.f32 1.442695, %v5090_v0 }
 0x6ba   : > { %5137 = vadd.xlane.f32.xlu2 %v9127_v50 }
 0x6bb   : > { %7284 = vpow2.f32 %v5111_v56 }
 0x6be   : > { %v5072_v36 = vpop.xlane.xlu2 %5071 }
 0x6bf   : > { %v5091_v27 = vsub.f32 %v9079_v9, %v5072_v36 }
 0x6c1   : > { %v9131_v28 = vpop.eup %7284  ;;  %v5113_v15 = vmul.f32 1.442695, %v5091_v27 }
 0x6c2   : > { %5139 = vadd.xlane.f32.xlu0 %v9131_v28 }
 0x6c3   : > { %7286 = vpow2.f32 %v5113_v15 }
 0x6c6   : > { %v5074_v61 = vpop.xlane.xlu0 %5073 }
 0x6c7   : > { %v5092_v53 = vsub.f32 %v9083_v49, %v5074_v61 }
 0x6c9   : > { %v9135_v6 = vpop.eup %7286  ;;  %v5115_v60 = vmul.f32 1.442695, %v5092_v53 }
 0x6ca   : > { %5141 = vadd.xlane.f32.xlu1 %v9135_v6 }
 0x6cb   : > { %7288 = vpow2.f32 %v5115_v60 }
 0x6ce   : > { %v5076_v38 = vpop.xlane.xlu1 %5075 }
 0x6cf   : > { %v5093_v55 = vsub.f32 %v9087_v17, %v5076_v38 }
 0x6d1   : > { %v9139_v7 = vpop.eup %7288  ;;  %v5117_v9 = vmul.f32 1.442695, %v5093_v55 }
 0x6d2   : > { %5143 = vadd.xlane.f32.xlu2 %v9139_v7 }
 0x6d3   : > { %7290 = vpow2.f32 %v5117_v9 }
 0x6d6   : > { %v5078_v1 = vpop.xlane.xlu2 %5077 }
 0x6d7   : > { %v5094_v26 = vsub.f32 %v9091_v4, %v5078_v1 }
 0x6d9   : > { %v9143_v32 = vpop.eup %7290  ;;  %v5119_v49 = vmul.f32 1.442695, %v5094_v26 }
 0x6da   : > { %5145 = vadd.xlane.f32.xlu0 %v9143_v32 }
 0x6db   : > { %7292 = vpow2.f32 %v5119_v49 }
 0x6de   : > { %v5080_v24 = vpop.xlane.xlu0 %5079 }
 0x6df   : > { %v5095_v33 = vsub.f32 %v9095_v45, %v5080_v24 }
 0x6e1   : > { %v9147_v17 = vpop.eup %7292  ;;  %v5121_v52 = vmul.f32 1.442695, %v5095_v33 }
 0x6e2   : > { %5147 = vadd.xlane.f32.xlu1 %v9147_v17 }
 0x6e3   : > { %7294 = vpow2.f32 %v5121_v52 }
 0x6e6   : > { %v5082_v12 = vpop.xlane.xlu1 %5081 }
 0x6e7   : > { %v5096_v37 = vsub.f32 %v9098_v2, %v5082_v12 }
 0x6e9   : > { %v9151_v4 = vpop.eup %7294  ;;  %v5123_v14 = vmul.f32 1.442695, %v5096_v37 }
 0x6ea   : > { %5149 = vadd.xlane.f32.xlu2 %v9151_v4 }
 0x6eb   : > { %7296 = vpow2.f32 %v5123_v14 }
 0x6f1   : > { %v9154_v43 = vpop.eup %7296 }
 0x6f2   : > { %5151 = vadd.xlane.f32.xlu0 %v9154_v43 }
 0x6fd   : > { %v5126_v62 = vpop.xlane.xlu2 %5125 }
 0x6fe   : > { %7298 = vrcp.f32 %v5126_v62 }
 0x704   : > { %v7299_v45 = vpop.eup %7298 }
 0x705   : > { %v5167_v58 = vmul.f32 %v7299_v45, %v9103_v16  ;;  %v5128_v31 = vpop.xlane.xlu0 %5127 }
 0x706   : > { %7300 = vrcp.f32 %v5128_v31 }
 0x707   : > { %5181 = vst [vmem:[%s9159_s19] sm:$0xff] %v5167_v58 }
 0x70c   : > { %v7301_v47 = vpop.eup %7300 }
 0x70d   : > { %v5168_v29 = vmul.f32 %v7301_v47, %v9107_v46  ;;  %v5130_v35 = vpop.xlane.xlu1 %5129 }
 0x70e   : > { %7302 = vrcp.f32 %v5130_v35 }
 0x70f   : > { %5182 = vst [vmem:[%s9159_s19 + $0x8] sm:$0xff] %v5168_v29 }
 0x714   : > { %v7303_v2 = vpop.eup %7302 }
 0x715   : > { %v5169_v59 = vmul.f32 %v7303_v2, %v9111_v22  ;;  %v5132_v54 = vpop.xlane.xlu2 %5131 }
 0x716   : > { %7304 = vrcp.f32 %v5132_v54 }
 0x717   : > { %5183 = vst [vmem:[%s9159_s19 + $0x10] sm:$0xff] %v5169_v59 }
 0x71c   : > { %v7305_v39 = vpop.eup %7304 }
 0x71d   : > { %v5170_v41 = vmul.f32 %v7305_v39, %v9115_v40  ;;  %v5134_v11 = vpop.xlane.xlu0 %5133 }
 0x71e   : > { %7306 = vrcp.f32 %v5134_v11 }
 0x71f   : > { %5184 = vst [vmem:[%s9159_s19 + $0x18] sm:$0xff] %v5170_v41 }
 0x724   : > { %v7307_v16 = vpop.eup %7306 }
 0x725   : > { %v5171_v13 = vmul.f32 %v7307_v16, %v9119_v63  ;;  %v5136_v34 = vpop.xlane.xlu1 %5135 }
 0x726   : > { %7308 = vrcp.f32 %v5136_v34 }
 0x727   : > { %5185 = vst [vmem:[%s9159_s19 + $0x20] sm:$0xff] %v5171_v13 }
 0x72c   : > { %v7309_v19 = vpop.eup %7308 }
 0x72d   : > { %v5172_v46 = vmul.f32 %v7309_v19, %v9123_v30  ;;  %v5138_v51 = vpop.xlane.xlu2 %5137 }
 0x72e   : > { %7310 = vrcp.f32 %v5138_v51 }
 0x72f   : > { %5186 = vst [vmem:[%s9159_s19 + $0x28] sm:$0xff] %v5172_v46 }
 0x734   : > { %v7311_v42 = vpop.eup %7310 }
 0x735   : > { %v5173_v57 = vmul.f32 %v7311_v42, %v9127_v50  ;;  %v5140_v22 = vpop.xlane.xlu0 %5139 }
 0x736   : > { %7312 = vrcp.f32 %v5140_v22 }
 0x737   : > { %5187 = vst [vmem:[%s9159_s19 + $0x30] sm:$0xff] %v5173_v57 }
 0x73c   : > { %v7313_v18 = vpop.eup %7312 }
 0x73d   : > { %v5174_v44 = vmul.f32 %v7313_v18, %v9131_v28  ;;  %v5142_v25 = vpop.xlane.xlu1 %5141 }
 0x73e   : > { %7314 = vrcp.f32 %v5142_v25 }
 0x73f   : > { %5188 = vst [vmem:[%s9159_s19 + $0x38] sm:$0xff] %v5174_v44 }
 0x744   : > { %v7315_v40 = vpop.eup %7314 }
 0x745   : > { %v5175_v23 = vmul.f32 %v7315_v40, %v9135_v6  ;;  %v5144_v21 = vpop.xlane.xlu2 %5143 }
 0x746   : > { %7316 = vrcp.f32 %v5144_v21 }
 0x747   : > { %5189 = vst [vmem:[%s9159_s19 + $0x40] sm:$0xff] %v5175_v23 }
 0x74c   : > { %v7317_v10 = vpop.eup %7316 }
 0x74d   : > { %v5176_v63 = vmul.f32 %v7317_v10, %v9139_v7  ;;  %v5146_v5 = vpop.xlane.xlu0 %5145 }
 0x74e   : > { %7318 = vrcp.f32 %v5146_v5 }
 0x74f   : > { %5190 = vst [vmem:[%s9159_s19 + $0x48] sm:$0xff] %v5176_v63 }
 0x754   : > { %v7319_v48 = vpop.eup %7318 }
 0x755   : > { %v5177_v3 = vmul.f32 %v7319_v48, %v9143_v32  ;;  %v5148_v30 = vpop.xlane.xlu1 %5147 }
 0x756   : > { %7320 = vrcp.f32 %v5148_v30 }
 0x757   : > { %5191 = vst [vmem:[%s9159_s19 + $0x50] sm:$0xff] %v5177_v3 }
 0x75c   : > { %v7321_v8 = vpop.eup %7320 }
 0x75d   : > { %v5178_v20 = vmul.f32 %v7321_v8, %v9147_v17  ;;  %v5150_v0 = vpop.xlane.xlu2 %5149 }
 0x75e   : > { %7322 = vrcp.f32 %v5150_v0 }
 0x75f   : > { %5192 = vst [vmem:[%s9159_s19 + $0x58] sm:$0xff] %v5178_v20 }
 0x764   : > { %v7323_v50 = vpop.eup %7322 }
 0x765   : > { %v5179_v56 = vmul.f32 %v7323_v50, %v9151_v4  ;;  %v5152_v36 = vpop.xlane.xlu0 %5151 }
 0x766   : > { %7324 = vrcp.f32 %v5152_v36 }
 0x767   : > { %5193 = vst [vmem:[%s9159_s19 + $0x60] sm:$0xff] %v5179_v56 }
 0x76c   : > { %v7325_v27 = vpop.eup %7324 }
 0x76d   : > { %v5180_v28 = vmul.f32 %v7325_v27, %v9154_v43 }
 0x76f   : > { %5194 = vst [vmem:[%s9159_s19 + $0x68] sm:$0xff] %v5180_v28 }
 0x770   : > { %7536 = shalt.err (!%p7533_p9)
}
 0x771   : > { %s7600_s2 = smov 128   ;;  %s7601_s10 = smov 8  }
 0x772   : > { %7185 = dma.vmem_to_hbm [thread:$0]  (%p7730_p4), %s5209_s16, 1792, %s5211_s17, %s5196_s8, %s7600_s2, %s7600_s2, %s7601_s10  }
 0x773 PF: > { %s5225_s15 = sand.u32 1, %s7575_s24   ;;  %p9391_p10 = scmp.ge.s32.totalorder %s7587_s27, 2 }
 0x774   : > { %s5226_s19 = scalar_lea.sflag [#allocation4], %s5225_s15 }
 0x775   : > { %p7208_p11 = pnand %p9391_p10, %p7734_p6 }
 0x777   : > { %p7209_p13 = pneg %p7208_p11 }
 0x779   : > { %7570 = dma.done.wait (%p7209_p13), %s5226_s19, 1792  }
 0x77a   : > { %7572 = vsyncadd (%p7209_p13), %s5226_s19, 4294965504  ;;  %p23_p0 = scmp.ge.s32.totalorder %s7708_s22, 4   ;;  %s9392_s24 = smov %s7579_s25 }
 0x77b   : > { %s9393_s25 = smov %s7583_s26  ;;  %s9394_s26 = smov %s7719_s29 }
 0x77c   : > { %s9395_s27 = smov %s7708_s22  ;;  %25 = sbr.rel (!%p23_p0) target bundleno = 12 (0xc), region = 113 }
 0x781   :  { %5232 = vsyncpa [#allocation3], 1 }
 0x782   :  { %5234 = vsyncpa [#allocation3 + $0x1], 1 }
 0x783   :  { %5235 = vsyncpa [#allocation6], 1 }
 0x784   :  { %5236 = vsyncpa [#allocation9], 1 }
 0x785   :  { %5237 = vsyncpa [#allocation12], 1 }
 0x786   :  { %5238 = vsyncpa [#allocation4], 1 }
 0x787   :  { %5240 = vsyncpa [#allocation4 + $0x1], 1 }

</bundles_post_ra>
